<compile_context>
chip_gen: v6e
topology: v6e:2x2x1
jax: 0.10.0
libtpu: 0.0.40
codegen_flags: <defaults>
</compile_context>

<pallas_src>
import jax
import jax.numpy as jnp
from jax.experimental import pallas as pl
from jax.experimental.pallas import tpu as pltpu

# MXU operand dtype (per perf review). Accumulation / state / biases stay float32.
MATMUL_DTYPE = jnp.bfloat16


def _round_up(x, m):
    return (x + m - 1) // m * m


# ----------------------------------------------------------------------------
# Tiled linear kernel: out = x @ w + b   (bf16 MXU operands, f32 accumulation)
# ----------------------------------------------------------------------------
def _linear_kernel(x_ref, w_ref, b_ref, o_ref, acc_ref):
    @pl.when(pl.program_id(2) == 0)
    def _():
        acc_ref[...] = jnp.zeros_like(acc_ref)

    acc_ref[...] += jnp.dot(
        x_ref[...].astype(w_ref.dtype), w_ref[...],
        preferred_element_type=jnp.float32)

    @pl.when(pl.program_id(2) == pl.num_programs(2) - 1)
    def _():
        o_ref[...] = (acc_ref[...] + b_ref[...]).astype(o_ref.dtype)


def linear(x2d, w, b, *, tm=256, tn=256, tk=512):
    """x2d: (M, K) f32, w: (K, N) bf16/f32, b: (N,) f32 -> (M, N) f32."""
    M, K = x2d.shape
    Kw, N = w.shape
    assert K == Kw
    tm = min(tm, _round_up(M, 8))
    tn = min(tn, _round_up(N, 128))   # lane-dense output tiles
    tk = min(tk, _round_up(K, 128))
    Mp, Np, Kp = _round_up(M, tm), _round_up(N, tn), _round_up(K, tk)

    xp = jnp.pad(x2d, ((0, Mp - M), (0, Kp - K))) if (Mp > M or Kp > K) else x2d
    wp = jnp.pad(w, ((0, Kp - K), (0, Np - N))) if (Kp > K or Np > N) else w
    bp = (jnp.pad(b, (0, Np - N)) if Np > N else b).reshape(1, Np)

    out = pl.pallas_call(
        _linear_kernel,
        out_shape=jax.ShapeDtypeStruct((Mp, Np), jnp.float32),
        grid_spec=pltpu.PrefetchScalarGridSpec(
            num_scalar_prefetch=0,
            grid=(Mp // tm, Np // tn, Kp // tk),
            in_specs=[
                pl.BlockSpec((tm, tk), lambda i, j, k: (i, k)),
                pl.BlockSpec((tk, tn), lambda i, j, k: (k, j)),
                pl.BlockSpec((1, tn), lambda i, j, k: (0, j)),
            ],
            out_specs=pl.BlockSpec((tm, tn), lambda i, j, k: (i, j)),
            scratch_shapes=[pltpu.VMEM((tm, tn), jnp.float32)],
        ),
        compiler_params=pltpu.CompilerParams(
            dimension_semantics=("parallel", "parallel", "arbitrary")),
    )(xp, wp, bp)
    return out[:M, :N]


# ----------------------------------------------------------------------------
# LSTM recurrence kernel.
# The input projection of the gates (x @ W_ih + b) is PRE-computed (hoisted); the
# kernel only does the recurrent h @ W_hh per step, T steps per grid iteration.
# ----------------------------------------------------------------------------
def _lstm_kernel(gx_ref, whh_ref, h_out_ref, h_sc, c_sc):
    # grid = (batch_tiles ["parallel"], time_chunks ["arbitrary"])
    @pl.when(pl.program_id(1) == 0)
    def _():
        h_sc[...] = jnp.zeros_like(h_sc)
        c_sc[...] = jnp.zeros_like(c_sc)

    D = h_sc.shape[-1]
    T = gx_ref.shape[0]
    w_hh = whh_ref[...]  # (D, 4D) bf16, resident across the chunk

    def step(t, carry):
        h, c = carry
        gates = gx_ref[t] + jnp.dot(h.astype(w_hh.dtype), w_hh,
                                    preferred_element_type=jnp.float32)
        # PyTorch gate order: i, f, g, o   (lane-aligned when D % 128 == 0)
        i_g = jax.nn.sigmoid(gates[:, 0 * D:1 * D])
        f_g = jax.nn.sigmoid(gates[:, 1 * D:2 * D])
        g_g = jnp.tanh(gates[:, 2 * D:3 * D])
        o_g = jax.nn.sigmoid(gates[:, 3 * D:4 * D])
        c = f_g * c + i_g * g_g
        h = o_g * jnp.tanh(c)
        h_out_ref[t] = h.astype(h_out_ref.dtype)
        return h, c

    h, c = jax.lax.fori_loop(0, T, step, (h_sc[...], c_sc[...]), unroll=True)
    h_sc[...] = h
    c_sc[...] = c


def lstm_recurrence(gates_x, w_hh, *, time_chunk=8, batch_tile=128):
    """gates_x: (L, N, 4D) f32 time-major, already = x @ W_ih + b_ih + b_hh.
       w_hh: (D, 4D) bf16. Returns all hidden states h: (L, N, D) f32."""
    L, N, D4 = gates_x.shape
    D = D4 // 4

    bn = min(batch_tile, _round_up(N, 8))   # sublane-aligned batch tile
    Np = _round_up(N, bn)
    T = min(time_chunk, L)
    Lp = _round_up(L, T)
    gp = gates_x
    if Np > N or Lp > L:
        # Padded batch rows / trailing time steps are independent of the real ones
        # (per-row recurrence, causal in time) and are sliced off below.
        gp = jnp.pad(gates_x, ((0, Lp - L), (0, Np - N), (0, 0)))

    h = pl.pallas_call(
        _lstm_kernel,
        out_shape=jax.ShapeDtypeStruct((Lp, Np, D), jnp.float32),
        grid_spec=pltpu.PrefetchScalarGridSpec(
            num_scalar_prefetch=0,
            grid=(Np // bn, Lp // T),
            in_specs=[
                pl.BlockSpec((T, bn, 4 * D), lambda b, tc: (tc, b, 0)),
                pl.BlockSpec((D, 4 * D), lambda b, tc: (0, 0)),
            ],
            out_specs=pl.BlockSpec((T, bn, D), lambda b, tc: (tc, b, 0)),
            scratch_shapes=[
                pltpu.VMEM((bn, D), jnp.float32),  # h state (f32)
                pltpu.VMEM((bn, D), jnp.float32),  # c state (f32)
            ],
        ),
        compiler_params=pltpu.CompilerParams(
            # batch tiles can be split across TensorCores; time must stay sequential
            dimension_semantics=("parallel", "arbitrary")),
    )(gp, w_hh)
    return h[:L, :N, :]


# ----------------------------------------------------------------------------
# Parameter construction (deterministic, mimics PyTorch default init bounds).
# Weights stored pre-transposed (in, out) and in bf16 (MXU operands); biases f32.
# ----------------------------------------------------------------------------
def _uniform(key, shape, bound):
    return jax.random.uniform(key, shape, jnp.float32, -bound, bound)


def init_params(key, d_input, d_model, d_output, n_decoder):
    params = {}
    keys = jax.random.split(key, 8 + 2 * n_decoder)
    ki = iter(keys)
    wdt = MATMUL_DTYPE

    bp = 1.0 / (d_input ** 0.5)
    params["proj_w"] = _uniform(next(ki), (d_input, d_model), bp).astype(wdt)
    params["proj_b"] = _uniform(next(ki), (d_model,), bp)

    bl = 1.0 / (d_model ** 0.5)
    params["lstm_w_ih"] = _uniform(next(ki), (d_model, 4 * d_model), bl).astype(wdt)
    params["lstm_w_hh"] = _uniform(next(ki), (d_model, 4 * d_model), bl).astype(wdt)
    b_ih = _uniform(next(ki), (4 * d_model,), bl)
    b_hh = _uniform(next(ki), (4 * d_model,), bl)
    params["lstm_b"] = b_ih + b_hh  # combined bias, folded into hoisted gates_x

    d_in, d_out = d_model, d_model * 2
    params["dec_w"], params["dec_b"] = [], []
    for _ in range(n_decoder):
        bd = 1.0 / (d_in ** 0.5)
        params["dec_w"].append(_uniform(next(ki), (d_in, d_out), bd).astype(wdt))
        params["dec_b"].append(_uniform(next(ki), (d_out,), bd))
        d_in, d_out = d_out, d_out * 2

    bo = 1.0 / (d_in ** 0.5)
    params["out_w"] = _uniform(next(ki), (d_in, d_output), bo).astype(wdt)
    params["out_b"] = _uniform(next(ki), (d_output,), bo)
    return params


# ----------------------------------------------------------------------------
# Forward pass. All wide activations stay time-major; the only HBM transposes are
# on the narrow (d_input / d_output) tensors at the boundaries.
# ----------------------------------------------------------------------------
@jax.jit
def lstm_model_forward(params, inputs):
    # inputs: (N, L, d_input), batch_first like the PyTorch module
    N, L, d_input = inputs.shape
    D = params["lstm_w_hh"].shape[0]

    # go time-major on the narrowest tensor
    x_tm = jnp.transpose(inputs, (1, 0, 2)).reshape(L * N, d_input)

    # projection Linear (could additionally be fused with W_ih since there is no
    # nonlinearity in between; kept separate to preserve f32 association)
    x = linear(x_tm, params["proj_w"], params["proj_b"])           # (L*N, D)

    # hoisted, time-independent half of the LSTM gates (bias folded in here)
    gates_x = linear(x, params["lstm_w_ih"], params["lstm_b"])     # (L*N, 4D)
    gates_x = gates_x.reshape(L, N, 4 * D)

    # sequential recurrence: only h @ W_hh per step
    h = lstm_recurrence(gates_x, params["lstm_w_hh"])              # (L, N, D)

    # decoder Linear(s); dropout=0 and the activation result is discarded in the
    # PyTorch forward, so neither is applied
    x = h.reshape(L * N, D)
    for w, b in zip(params["dec_w"], params["dec_b"]):
        x = linear(x, w, b)

    # output Linear, then back to batch-major (N, L, d_output)
    x = linear(x, params["out_w"], params["out_b"])
    d_output = params["out_w"].shape[1]
    return jnp.transpose(x.reshape(L, N, d_output), (1, 0, 2))


# ----------------------------------------------------------------------------
# Pure-JAX reference (same bf16-operand / f32-accumulation policy) for a check.
# ----------------------------------------------------------------------------
def reference_forward(params, inputs):
    bf = MATMUL_DTYPE

    def lin(x, w, b):
        return jnp.dot(x.astype(bf), w.astype(bf),
                       preferred_element_type=jnp.float32) + b

    N, L, _ = inputs.shape
    D = params["lstm_w_hh"].shape[0]

    x = lin(inputs, params["proj_w"], params["proj_b"])            # (N, L, D)
    gates_x = lin(x, params["lstm_w_ih"], params["lstm_b"])        # (N, L, 4D)

    def step(carry, gx_t):
        h, c = carry
        gates = gx_t + jnp.dot(h.astype(bf), params["lstm_w_hh"].astype(bf),
                               preferred_element_type=jnp.float32)
        i_g = jax.nn.sigmoid(gates[:, 0 * D:1 * D])
        f_g = jax.nn.sigmoid(gates[:, 1 * D:2 * D])
        g_g = jnp.tanh(gates[:, 2 * D:3 * D])
        o_g = jax.nn.sigmoid(gates[:, 3 * D:4 * D])
        c_new = f_g * c + i_g * g_g
        h_new = o_g * jnp.tanh(c_new)
        return (h_new, c_new), h_new

    h0 = jnp.zeros((N, D), jnp.float32)
    c0 = jnp.zeros((N, D), jnp.float32)
    _, hs = jax.lax.scan(step, (h0, c0), jnp.transpose(gates_x, (1, 0, 2)))
    x = jnp.transpose(hs, (1, 0, 2))                               # (N, L, D)

    for w, b in zip(params["dec_w"], params["dec_b"]):
        x = lin(x, w, b)
    return lin(x, params["out_w"], params["out_b"])


# ----------------------------------------------------------------------------
if __name__ == "__main__":
    # Small shapes; d_model=128 chosen so gate slices are 128-lane aligned and
    # batch=8 fills a full sublane group.
    N, L, d_input = 8, 32, 16
    d_model, d_output, n_decoder = 128, 10, 1

    key = jax.random.PRNGKey(0)
    k_param, k_x = jax.random.split(key)
    params = init_params(k_param, d_input, d_model, d_output, n_decoder)
    x = jax.random.normal(k_x, (N, L, d_input), jnp.float32)

    out = jax.block_until_ready(lstm_model_forward(params, x))
    assert out.shape == (N, L, d_output), out.shape

    ref = jax.block_until_ready(reference_forward(params, x))
    max_err = float(jnp.max(jnp.abs(out - ref)))
    assert jnp.allclose(out, ref, atol=2e-3, rtol=2e-3), (
        f"mismatch vs reference (max abs err {max_err})")

    print("KERNEL_OK")
</pallas_src>

<mosaic_0001>
module attributes {stable_mosaic.version = 11 : i64} {
  func.func @_linear_kernel(%arg0: i32, %arg1: i32, %arg2: i32, %arg3: memref<256x128xf32, #tpu.memory_space<vmem>>, %arg4: memref<128x128xbf16, #tpu.memory_space<vmem>>, %arg5: memref<1x128xf32, #tpu.memory_space<vmem>>, %arg6: memref<256x128xf32, #tpu.memory_space<vmem>>, %arg7: memref<256x128xf32, #tpu.memory_space<vmem>>) attributes {dimension_semantics = [#tpu.dimension_semantics<parallel>, #tpu.dimension_semantics<parallel>, #tpu.dimension_semantics<arbitrary>], iteration_bounds = array<i64: 1, 1, 1>, scalar_prefetch = 0 : i64, scratch_operands = 1 : i64, tpu.core_type = #tpu.core_type<tc>, window_params = [{transform_indices = @transform_0, window_bounds = array<i64: 256, 128>}, {transform_indices = @transform_1, window_bounds = array<i64: 128, 128>}, {transform_indices = @transform_2, window_bounds = array<i64: 1, 128>}, {transform_indices = @transform_3, window_bounds = array<i64: 256, 128>}]} {
    %c0_i32 = arith.constant 0 : i32
    %0 = arith.cmpi eq, %arg2, %c0_i32 : i32
    %1 = arith.extui %0 : i1 to i32
    %c0_i32_0 = arith.constant 0 : i32
    %2 = arith.cmpi ne, %1, %c0_i32_0 : i32
    scf.if %2 {
      %cst_10 = arith.constant 0.000000e+00 : f32
      %13 = vector.broadcast %cst_10 : f32 to vector<256x128xf32>
      %c0_11 = arith.constant 0 : index
      %c0_12 = arith.constant 0 : index
      %14 = vector.load %arg7[%c0_11, %c0_12] : memref<256x128xf32, #tpu.memory_space<vmem>>, vector<256x128xf32>
      tpu.vector_store %arg7[%c0_11, %c0_12], %13 {strides = array<i32>} : memref<256x128xf32, #tpu.memory_space<vmem>>, vector<256x128xf32>,
    } else {
    }
    %c0 = arith.constant 0 : index
    %c0_1 = arith.constant 0 : index
    %3 = vector.load %arg7[%c0, %c0_1] : memref<256x128xf32, #tpu.memory_space<vmem>>, vector<256x128xf32>
    %c0_2 = arith.constant 0 : index
    %c0_3 = arith.constant 0 : index
    %4 = vector.load %arg3[%c0_2, %c0_3] : memref<256x128xf32, #tpu.memory_space<vmem>>, vector<256x128xf32>
    %5 = arith.truncf %4 : vector<256x128xf32> to vector<256x128xbf16>
    %c0_4 = arith.constant 0 : index
    %c0_5 = arith.constant 0 : index
    %6 = vector.load %arg4[%c0_4, %c0_5] : memref<128x128xbf16, #tpu.memory_space<vmem>>, vector<128x128xbf16>
    %cst = arith.constant dense<0.000000e+00> : vector<256x128xf32>
    %7 = tpu.matmul %5, %6, %cst {dimension_numbers = #tpu.dot_dimension_numbers<[1], [0], [0], [1], [0, 0, 1, 1], [], []>} : vector<256x128xbf16>, vector<128x128xbf16>, vector<256x128xf32> -> vector<256x128xf32>
    %8 = arith.addf %3, %7 : vector<256x128xf32>
    %c0_6 = arith.constant 0 : index
    %c0_7 = arith.constant 0 : index
    %9 = vector.load %arg7[%c0_6, %c0_7] : memref<256x128xf32, #tpu.memory_space<vmem>>, vector<256x128xf32>
    tpu.vector_store %arg7[%c0_6, %c0_7], %8 {strides = array<i32>} : memref<256x128xf32, #tpu.memory_space<vmem>>, vector<256x128xf32>,
    %c0_i32_8 = arith.constant 0 : i32
    %10 = arith.cmpi eq, %arg2, %c0_i32_8 : i32
    %11 = arith.extui %10 : i1 to i32
    %c0_i32_9 = arith.constant 0 : i32
    %12 = arith.cmpi ne, %11, %c0_i32_9 : i32
    scf.if %12 {
      %c0_10 = arith.constant 0 : index
      %c0_11 = arith.constant 0 : index
      %13 = vector.load %arg7[%c0_10, %c0_11] : memref<256x128xf32, #tpu.memory_space<vmem>>, vector<256x128xf32>
      %c0_12 = arith.constant 0 : index
      %c0_13 = arith.constant 0 : index
      %14 = vector.load %arg5[%c0_12, %c0_13] : memref<1x128xf32, #tpu.memory_space<vmem>>, vector<1x128xf32>
      %15 = vector.broadcast %14 : vector<1x128xf32> to vector<256x128xf32>
      %16 = arith.addf %13, %15 : vector<256x128xf32>
      %c0_14 = arith.constant 0 : index
      %c0_15 = arith.constant 0 : index
      %17 = vector.load %arg6[%c0_14, %c0_15] : memref<256x128xf32, #tpu.memory_space<vmem>>, vector<256x128xf32>
      tpu.vector_store %arg6[%c0_14, %c0_15], %16 {strides = array<i32>} : memref<256x128xf32, #tpu.memory_space<vmem>>, vector<256x128xf32>,
    } else {
    }
    return
  }
  func.func @transform_0(%arg0: i32, %arg1: i32, %arg2: i32) -> (i32, i32) {
    %c0_i32 = arith.constant 0 : i32
    return %arg0, %arg2 : i32, i32
  }
  func.func @transform_1(%arg0: i32, %arg1: i32, %arg2: i32) -> (i32, i32) {
    %c0_i32 = arith.constant 0 : i32
    return %arg2, %arg1 : i32, i32
  }
  func.func @transform_2(%arg0: i32, %arg1: i32, %arg2: i32) -> (i32, i32) {
    %c0_i32 = arith.constant 0 : i32
    %c0_i32_0 = arith.constant 0 : i32
    return %c0_i32, %arg1 : i32, i32
  }
  func.func @transform_3(%arg0: i32, %arg1: i32, %arg2: i32) -> (i32, i32) {
    %c0_i32 = arith.constant 0 : i32
    return %arg0, %arg1 : i32, i32
  }
}

module attributes {stable_mosaic.version = 11 : i64} {
  func.func @_linear_kernel(%arg0: i32, %arg1: i32, %arg2: i32, %arg3: memref<256x128xf32, #tpu.memory_space<vmem>>, %arg4: memref<128x256xbf16, #tpu.memory_space<vmem>>, %arg5: memref<1x256xf32, #tpu.memory_space<vmem>>, %arg6: memref<256x256xf32, #tpu.memory_space<vmem>>, %arg7: memref<256x256xf32, #tpu.memory_space<vmem>>) attributes {dimension_semantics = [#tpu.dimension_semantics<parallel>, #tpu.dimension_semantics<parallel>, #tpu.dimension_semantics<arbitrary>], iteration_bounds = array<i64: 1, 2, 1>, scalar_prefetch = 0 : i64, scratch_operands = 1 : i64, tpu.core_type = #tpu.core_type<tc>, window_params = [{transform_indices = @transform_0, window_bounds = array<i64: 256, 128>}, {transform_indices = @transform_1, window_bounds = array<i64: 128, 256>}, {transform_indices = @transform_2, window_bounds = array<i64: 1, 256>}, {transform_indices = @transform_3, window_bounds = array<i64: 256, 256>}]} {
    %c0_i32 = arith.constant 0 : i32
    %0 = arith.cmpi eq, %arg2, %c0_i32 : i32
    %1 = arith.extui %0 : i1 to i32
    %c0_i32_0 = arith.constant 0 : i32
    %2 = arith.cmpi ne, %1, %c0_i32_0 : i32
    scf.if %2 {
      %cst_10 = arith.constant 0.000000e+00 : f32
      %13 = vector.broadcast %cst_10 : f32 to vector<256x256xf32>
      %c0_11 = arith.constant 0 : index
      %c0_12 = arith.constant 0 : index
      %14 = vector.load %arg7[%c0_11, %c0_12] : memref<256x256xf32, #tpu.memory_space<vmem>>, vector<256x256xf32>
      tpu.vector_store %arg7[%c0_11, %c0_12], %13 {strides = array<i32>} : memref<256x256xf32, #tpu.memory_space<vmem>>, vector<256x256xf32>,
    } else {
    }
    %c0 = arith.constant 0 : index
    %c0_1 = arith.constant 0 : index
    %3 = vector.load %arg7[%c0, %c0_1] : memref<256x256xf32, #tpu.memory_space<vmem>>, vector<256x256xf32>
    %c0_2 = arith.constant 0 : index
    %c0_3 = arith.constant 0 : index
    %4 = vector.load %arg3[%c0_2, %c0_3] : memref<256x128xf32, #tpu.memory_space<vmem>>, vector<256x128xf32>
    %5 = arith.truncf %4 : vector<256x128xf32> to vector<256x128xbf16>
    %c0_4 = arith.constant 0 : index
    %c0_5 = arith.constant 0 : index
    %6 = vector.load %arg4[%c0_4, %c0_5] : memref<128x256xbf16, #tpu.memory_space<vmem>>, vector<128x256xbf16>
    %cst = arith.constant dense<0.000000e+00> : vector<256x256xf32>
    %7 = tpu.matmul %5, %6, %cst {dimension_numbers = #tpu.dot_dimension_numbers<[1], [0], [0], [1], [0, 0, 1, 1], [], []>} : vector<256x128xbf16>, vector<128x256xbf16>, vector<256x256xf32> -> vector<256x256xf32>
    %8 = arith.addf %3, %7 : vector<256x256xf32>
    %c0_6 = arith.constant 0 : index
    %c0_7 = arith.constant 0 : index
    %9 = vector.load %arg7[%c0_6, %c0_7] : memref<256x256xf32, #tpu.memory_space<vmem>>, vector<256x256xf32>
    tpu.vector_store %arg7[%c0_6, %c0_7], %8 {strides = array<i32>} : memref<256x256xf32, #tpu.memory_space<vmem>>, vector<256x256xf32>,
    %c0_i32_8 = arith.constant 0 : i32
    %10 = arith.cmpi eq, %arg2, %c0_i32_8 : i32
    %11 = arith.extui %10 : i1 to i32
    %c0_i32_9 = arith.constant 0 : i32
    %12 = arith.cmpi ne, %11, %c0_i32_9 : i32
    scf.if %12 {
      %c0_10 = arith.constant 0 : index
      %c0_11 = arith.constant 0 : index
      %13 = vector.load %arg7[%c0_10, %c0_11] : memref<256x256xf32, #tpu.memory_space<vmem>>, vector<256x256xf32>
      %c0_12 = arith.constant 0 : index
      %c0_13 = arith.constant 0 : index
      %14 = vector.load %arg5[%c0_12, %c0_13] : memref<1x256xf32, #tpu.memory_space<vmem>>, vector<1x256xf32>
      %15 = vector.broadcast %14 : vector<1x256xf32> to vector<256x256xf32>
      %16 = arith.addf %13, %15 : vector<256x256xf32>
      %c0_14 = arith.constant 0 : index
      %c0_15 = arith.constant 0 : index
      %17 = vector.load %arg6[%c0_14, %c0_15] : memref<256x256xf32, #tpu.memory_space<vmem>>, vector<256x256xf32>
      tpu.vector_store %arg6[%c0_14, %c0_15], %16 {strides = array<i32>} : memref<256x256xf32, #tpu.memory_space<vmem>>, vector<256x256xf32>,
    } else {
    }
    return
  }
  func.func @transform_0(%arg0: i32, %arg1: i32, %arg2: i32) -> (i32, i32) {
    %c0_i32 = arith.constant 0 : i32
    return %arg0, %arg2 : i32, i32
  }
  func.func @transform_1(%arg0: i32, %arg1: i32, %arg2: i32) -> (i32, i32) {
    %c0_i32 = arith.constant 0 : i32
    return %arg2, %arg1 : i32, i32
  }
  func.func @transform_2(%arg0: i32, %arg1: i32, %arg2: i32) -> (i32, i32) {
    %c0_i32 = arith.constant 0 : i32
    %c0_i32_0 = arith.constant 0 : i32
    return %c0_i32, %arg1 : i32, i32
  }
  func.func @transform_3(%arg0: i32, %arg1: i32, %arg2: i32) -> (i32, i32) {
    %c0_i32 = arith.constant 0 : i32
    return %arg0, %arg1 : i32, i32
  }
}

module attributes {stable_mosaic.version = 11 : i64} {
  func.func @_lstm_kernel(%arg0: i32, %arg1: i32, %arg2: memref<8x8x512xf32, #tpu.memory_space<vmem>>, %arg3: memref<128x512xbf16, #tpu.memory_space<vmem>>, %arg4: memref<8x8x128xf32, #tpu.memory_space<vmem>>, %arg5: memref<8x128xf32, #tpu.memory_space<vmem>>, %arg6: memref<8x128xf32, #tpu.memory_space<vmem>>) attributes {dimension_semantics = [#tpu.dimension_semantics<parallel>, #tpu.dimension_semantics<arbitrary>], iteration_bounds = array<i64: 1, 4>, scalar_prefetch = 0 : i64, scratch_operands = 2 : i64, tpu.core_type = #tpu.core_type<tc>, window_params = [{transform_indices = @transform_0, window_bounds = array<i64: 8, 8, 512>}, {pipeline_mode = #tpu.pipeline_mode<synchronous>, transform_indices = @transform_1, window_bounds = array<i64: 128, 512>}, {transform_indices = @transform_2, window_bounds = array<i64: 8, 8, 128>}]} {
    %c0_i32 = arith.constant 0 : i32
    %0 = arith.cmpi eq, %arg1, %c0_i32 : i32
    %1 = arith.extui %0 : i1 to i32
    %c0_i32_0 = arith.constant 0 : i32
    %2 = arith.cmpi ne, %1, %c0_i32_0 : i32
    scf.if %2 {
      %cst_74 = arith.constant 0.000000e+00 : f32
      %288 = vector.broadcast %cst_74 : f32 to vector<8x128xf32>
      %c0_75 = arith.constant 0 : index
      %c0_76 = arith.constant 0 : index
      %289 = vector.load %arg5[%c0_75, %c0_76] : memref<8x128xf32, #tpu.memory_space<vmem>>, vector<8x128xf32>
      tpu.vector_store %arg5[%c0_75, %c0_76], %288 {strides = array<i32>} : memref<8x128xf32, #tpu.memory_space<vmem>>, vector<8x128xf32>,
      %cst_77 = arith.constant 0.000000e+00 : f32
      %290 = vector.broadcast %cst_77 : f32 to vector<8x128xf32>
      %c0_78 = arith.constant 0 : index
      %c0_79 = arith.constant 0 : index
      %291 = vector.load %arg6[%c0_78, %c0_79] : memref<8x128xf32, #tpu.memory_space<vmem>>, vector<8x128xf32>
      tpu.vector_store %arg6[%c0_78, %c0_79], %290 {strides = array<i32>} : memref<8x128xf32, #tpu.memory_space<vmem>>, vector<8x128xf32>,
    } else {
    }
    %c0 = arith.constant 0 : index
    %c0_1 = arith.constant 0 : index
    %3 = vector.load %arg3[%c0, %c0_1] : memref<128x512xbf16, #tpu.memory_space<vmem>>, vector<128x512xbf16>
    %c0_2 = arith.constant 0 : index
    %c0_3 = arith.constant 0 : index
    %4 = vector.load %arg5[%c0_2, %c0_3] : memref<8x128xf32, #tpu.memory_space<vmem>>, vector<8x128xf32>
    %c0_4 = arith.constant 0 : index
    %c0_5 = arith.constant 0 : index
    %5 = vector.load %arg6[%c0_4, %c0_5] : memref<8x128xf32, #tpu.memory_space<vmem>>, vector<8x128xf32>
    %c0_i32_6 = arith.constant 0 : i32
    %6 = arith.index_cast %c0_i32_6 : i32 to index
    %c0_7 = arith.constant 0 : index
    %c0_8 = arith.constant 0 : index
    %7 = vector.load %arg2[%6, %c0_7, %c0_8] : memref<8x8x512xf32, #tpu.memory_space<vmem>>, vector<1x8x512xf32>
    %8 = vector.shape_cast %7 : vector<1x8x512xf32> to vector<8x512xf32>
    %9 = arith.truncf %4 : vector<8x128xf32> to vector<8x128xbf16>
    %cst = arith.constant dense<0.000000e+00> : vector<8x512xf32>
    %10 = tpu.matmul %9, %3, %cst {dimension_numbers = #tpu.dot_dimension_numbers<[1], [0], [0], [1], [0, 0, 1, 1], [], []>} : vector<8x128xbf16>, vector<128x512xbf16>, vector<8x512xf32> -> vector<8x512xf32>
    %11 = arith.addf %8, %10 : vector<8x512xf32>
    %12 = vector.extract_strided_slice %11 {offsets = [0, 0], sizes = [8, 128], strides = [1, 1]} : vector<8x512xf32> to vector<8x128xf32>
    %13 = arith.negf %12 : vector<8x128xf32>
    %14 = math.exp %13 : vector<8x128xf32>
    %cst_9 = arith.constant 1.000000e+00 : f32
    %15 = vector.broadcast %cst_9 : f32 to vector<8x128xf32>
    %16 = arith.addf %15, %14 : vector<8x128xf32>
    %17 = arith.divf %15, %16 : vector<8x128xf32>
    %18 = vector.extract_strided_slice %11 {offsets = [0, 128], sizes = [8, 128], strides = [1, 1]} : vector<8x512xf32> to vector<8x128xf32>
    %19 = arith.negf %18 : vector<8x128xf32>
    %20 = math.exp %19 : vector<8x128xf32>
    %cst_10 = arith.constant 1.000000e+00 : f32
    %21 = vector.broadcast %cst_10 : f32 to vector<8x128xf32>
    %22 = arith.addf %21, %20 : vector<8x128xf32>
    %23 = arith.divf %21, %22 : vector<8x128xf32>
    %24 = vector.extract_strided_slice %11 {offsets = [0, 256], sizes = [8, 128], strides = [1, 1]} : vector<8x512xf32> to vector<8x128xf32>
    %25 = math.tanh %24 : vector<8x128xf32>
    %26 = vector.extract_strided_slice %11 {offsets = [0, 384], sizes = [8, 128], strides = [1, 1]} : vector<8x512xf32> to vector<8x128xf32>
    %27 = arith.negf %26 : vector<8x128xf32>
    %28 = math.exp %27 : vector<8x128xf32>
    %cst_11 = arith.constant 1.000000e+00 : f32
    %29 = vector.broadcast %cst_11 : f32 to vector<8x128xf32>
    %30 = arith.addf %29, %28 : vector<8x128xf32>
    %31 = arith.divf %29, %30 : vector<8x128xf32>
    %32 = arith.mulf %23, %5 : vector<8x128xf32>
    %33 = arith.mulf %17, %25 : vector<8x128xf32>
    %34 = arith.addf %32, %33 : vector<8x128xf32>
    %35 = math.tanh %34 : vector<8x128xf32>
    %36 = arith.mulf %31, %35 : vector<8x128xf32>
    %37 = arith.index_cast %c0_i32_6 : i32 to index
    %c0_12 = arith.constant 0 : index
    %c0_13 = arith.constant 0 : index
    %38 = vector.load %arg4[%37, %c0_12, %c0_13] : memref<8x8x128xf32, #tpu.memory_space<vmem>>, vector<1x8x128xf32>
    %39 = vector.shape_cast %38 : vector<1x8x128xf32> to vector<8x128xf32>
    %40 = vector.shape_cast %36 : vector<8x128xf32> to vector<1x8x128xf32>
    tpu.vector_store %arg4[%37, %c0_12, %c0_13], %40 {strides = array<i32>} : memref<8x8x128xf32, #tpu.memory_space<vmem>>, vector<1x8x128xf32>,
    %c1_i32 = arith.constant 1 : i32
    %41 = arith.index_cast %c1_i32 : i32 to index
    %c0_14 = arith.constant 0 : index
    %c0_15 = arith.constant 0 : index
    %42 = vector.load %arg2[%41, %c0_14, %c0_15] : memref<8x8x512xf32, #tpu.memory_space<vmem>>, vector<1x8x512xf32>
    %43 = vector.shape_cast %42 : vector<1x8x512xf32> to vector<8x512xf32>
    %44 = arith.truncf %36 : vector<8x128xf32> to vector<8x128xbf16>
    %cst_16 = arith.constant dense<0.000000e+00> : vector<8x512xf32>
    %45 = tpu.matmul %44, %3, %cst_16 {dimension_numbers = #tpu.dot_dimension_numbers<[1], [0], [0], [1], [0, 0, 1, 1], [], []>} : vector<8x128xbf16>, vector<128x512xbf16>, vector<8x512xf32> -> vector<8x512xf32>
    %46 = arith.addf %43, %45 : vector<8x512xf32>
    %47 = vector.extract_strided_slice %46 {offsets = [0, 0], sizes = [8, 128], strides = [1, 1]} : vector<8x512xf32> to vector<8x128xf32>
    %48 = arith.negf %47 : vector<8x128xf32>
    %49 = math.exp %48 : vector<8x128xf32>
    %cst_17 = arith.constant 1.000000e+00 : f32
    %50 = vector.broadcast %cst_17 : f32 to vector<8x128xf32>
    %51 = arith.addf %50, %49 : vector<8x128xf32>
    %52 = arith.divf %50, %51 : vector<8x128xf32>
    %53 = vector.extract_strided_slice %46 {offsets = [0, 128], sizes = [8, 128], strides = [1, 1]} : vector<8x512xf32> to vector<8x128xf32>
    %54 = arith.negf %53 : vector<8x128xf32>
    %55 = math.exp %54 : vector<8x128xf32>
    %cst_18 = arith.constant 1.000000e+00 : f32
    %56 = vector.broadcast %cst_18 : f32 to vector<8x128xf32>
    %57 = arith.addf %56, %55 : vector<8x128xf32>
    %58 = arith.divf %56, %57 : vector<8x128xf32>
    %59 = vector.extract_strided_slice %46 {offsets = [0, 256], sizes = [8, 128], strides = [1, 1]} : vector<8x512xf32> to vector<8x128xf32>
    %60 = math.tanh %59 : vector<8x128xf32>
    %61 = vector.extract_strided_slice %46 {offsets = [0, 384], sizes = [8, 128], strides = [1, 1]} : vector<8x512xf32> to vector<8x128xf32>
    %62 = arith.negf %61 : vector<8x128xf32>
    %63 = math.exp %62 : vector<8x128xf32>
    %cst_19 = arith.constant 1.000000e+00 : f32
    %64 = vector.broadcast %cst_19 : f32 to vector<8x128xf32>
    %65 = arith.addf %64, %63 : vector<8x128xf32>
    %66 = arith.divf %64, %65 : vector<8x128xf32>
    %67 = arith.mulf %58, %34 : vector<8x128xf32>
    %68 = arith.mulf %52, %60 : vector<8x128xf32>
    %69 = arith.addf %67, %68 : vector<8x128xf32>
    %70 = math.tanh %69 : vector<8x128xf32>
    %71 = arith.mulf %66, %70 : vector<8x128xf32>
    %72 = arith.index_cast %c1_i32 : i32 to index
    %c0_20 = arith.constant 0 : index
    %c0_21 = arith.constant 0 : index
    %73 = vector.load %arg4[%72, %c0_20, %c0_21] : memref<8x8x128xf32, #tpu.memory_space<vmem>>, vector<1x8x128xf32>
    %74 = vector.shape_cast %73 : vector<1x8x128xf32> to vector<8x128xf32>
    %75 = vector.shape_cast %71 : vector<8x128xf32> to vector<1x8x128xf32>
    tpu.vector_store %arg4[%72, %c0_20, %c0_21], %75 {strides = array<i32>} : memref<8x8x128xf32, #tpu.memory_space<vmem>>, vector<1x8x128xf32>,
    %c2_i32 = arith.constant 2 : i32
    %76 = arith.index_cast %c2_i32 : i32 to index
    %c0_22 = arith.constant 0 : index
    %c0_23 = arith.constant 0 : index
    %77 = vector.load %arg2[%76, %c0_22, %c0_23] : memref<8x8x512xf32, #tpu.memory_space<vmem>>, vector<1x8x512xf32>
    %78 = vector.shape_cast %77 : vector<1x8x512xf32> to vector<8x512xf32>
    %79 = arith.truncf %71 : vector<8x128xf32> to vector<8x128xbf16>
    %cst_24 = arith.constant dense<0.000000e+00> : vector<8x512xf32>
    %80 = tpu.matmul %79, %3, %cst_24 {dimension_numbers = #tpu.dot_dimension_numbers<[1], [0], [0], [1], [0, 0, 1, 1], [], []>} : vector<8x128xbf16>, vector<128x512xbf16>, vector<8x512xf32> -> vector<8x512xf32>
    %81 = arith.addf %78, %80 : vector<8x512xf32>
    %82 = vector.extract_strided_slice %81 {offsets = [0, 0], sizes = [8, 128], strides = [1, 1]} : vector<8x512xf32> to vector<8x128xf32>
    %83 = arith.negf %82 : vector<8x128xf32>
    %84 = math.exp %83 : vector<8x128xf32>
    %cst_25 = arith.constant 1.000000e+00 : f32
    %85 = vector.broadcast %cst_25 : f32 to vector<8x128xf32>
    %86 = arith.addf %85, %84 : vector<8x128xf32>
    %87 = arith.divf %85, %86 : vector<8x128xf32>
    %88 = vector.extract_strided_slice %81 {offsets = [0, 128], sizes = [8, 128], strides = [1, 1]} : vector<8x512xf32> to vector<8x128xf32>
    %89 = arith.negf %88 : vector<8x128xf32>
    %90 = math.exp %89 : vector<8x128xf32>
    %cst_26 = arith.constant 1.000000e+00 : f32
    %91 = vector.broadcast %cst_26 : f32 to vector<8x128xf32>
    %92 = arith.addf %91, %90 : vector<8x128xf32>
    %93 = arith.divf %91, %92 : vector<8x128xf32>
    %94 = vector.extract_strided_slice %81 {offsets = [0, 256], sizes = [8, 128], strides = [1, 1]} : vector<8x512xf32> to vector<8x128xf32>
    %95 = math.tanh %94 : vector<8x128xf32>
    %96 = vector.extract_strided_slice %81 {offsets = [0, 384], sizes = [8, 128], strides = [1, 1]} : vector<8x512xf32> to vector<8x128xf32>
    %97 = arith.negf %96 : vector<8x128xf32>
    %98 = math.exp %97 : vector<8x128xf32>
    %cst_27 = arith.constant 1.000000e+00 : f32
    %99 = vector.broadcast %cst_27 : f32 to vector<8x128xf32>
    %100 = arith.addf %99, %98 : vector<8x128xf32>
    %101 = arith.divf %99, %100 : vector<8x128xf32>
    %102 = arith.mulf %93, %69 : vector<8x128xf32>
    %103 = arith.mulf %87, %95 : vector<8x128xf32>
    %104 = arith.addf %102, %103 : vector<8x128xf32>
    %105 = math.tanh %104 : vector<8x128xf32>
    %106 = arith.mulf %101, %105 : vector<8x128xf32>
    %107 = arith.index_cast %c2_i32 : i32 to index
    %c0_28 = arith.constant 0 : index
    %c0_29 = arith.constant 0 : index
    %108 = vector.load %arg4[%107, %c0_28, %c0_29] : memref<8x8x128xf32, #tpu.memory_space<vmem>>, vector<1x8x128xf32>
    %109 = vector.shape_cast %108 : vector<1x8x128xf32> to vector<8x128xf32>
    %110 = vector.shape_cast %106 : vector<8x128xf32> to vector<1x8x128xf32>
    tpu.vector_store %arg4[%107, %c0_28, %c0_29], %110 {strides = array<i32>} : memref<8x8x128xf32, #tpu.memory_space<vmem>>, vector<1x8x128xf32>,
    %c3_i32 = arith.constant 3 : i32
    %111 = arith.index_cast %c3_i32 : i32 to index
    %c0_30 = arith.constant 0 : index
    %c0_31 = arith.constant 0 : index
    %112 = vector.load %arg2[%111, %c0_30, %c0_31] : memref<8x8x512xf32, #tpu.memory_space<vmem>>, vector<1x8x512xf32>
    %113 = vector.shape_cast %112 : vector<1x8x512xf32> to vector<8x512xf32>
    %114 = arith.truncf %106 : vector<8x128xf32> to vector<8x128xbf16>
    %cst_32 = arith.constant dense<0.000000e+00> : vector<8x512xf32>
    %115 = tpu.matmul %114, %3, %cst_32 {dimension_numbers = #tpu.dot_dimension_numbers<[1], [0], [0], [1], [0, 0, 1, 1], [], []>} : vector<8x128xbf16>, vector<128x512xbf16>, vector<8x512xf32> -> vector<8x512xf32>
    %116 = arith.addf %113, %115 : vector<8x512xf32>
    %117 = vector.extract_strided_slice %116 {offsets = [0, 0], sizes = [8, 128], strides = [1, 1]} : vector<8x512xf32> to vector<8x128xf32>
    %118 = arith.negf %117 : vector<8x128xf32>
    %119 = math.exp %118 : vector<8x128xf32>
    %cst_33 = arith.constant 1.000000e+00 : f32
    %120 = vector.broadcast %cst_33 : f32 to vector<8x128xf32>
    %121 = arith.addf %120, %119 : vector<8x128xf32>
    %122 = arith.divf %120, %121 : vector<8x128xf32>
    %123 = vector.extract_strided_slice %116 {offsets = [0, 128], sizes = [8, 128], strides = [1, 1]} : vector<8x512xf32> to vector<8x128xf32>
    %124 = arith.negf %123 : vector<8x128xf32>
    %125 = math.exp %124 : vector<8x128xf32>
    %cst_34 = arith.constant 1.000000e+00 : f32
    %126 = vector.broadcast %cst_34 : f32 to vector<8x128xf32>
    %127 = arith.addf %126, %125 : vector<8x128xf32>
    %128 = arith.divf %126, %127 : vector<8x128xf32>
    %129 = vector.extract_strided_slice %116 {offsets = [0, 256], sizes = [8, 128], strides = [1, 1]} : vector<8x512xf32> to vector<8x128xf32>
    %130 = math.tanh %129 : vector<8x128xf32>
    %131 = vector.extract_strided_slice %116 {offsets = [0, 384], sizes = [8, 128], strides = [1, 1]} : vector<8x512xf32> to vector<8x128xf32>
    %132 = arith.negf %131 : vector<8x128xf32>
    %133 = math.exp %132 : vector<8x128xf32>
    %cst_35 = arith.constant 1.000000e+00 : f32
    %134 = vector.broadcast %cst_35 : f32 to vector<8x128xf32>
    %135 = arith.addf %134, %133 : vector<8x128xf32>
    %136 = arith.divf %134, %135 : vector<8x128xf32>
    %137 = arith.mulf %128, %104 : vector<8x128xf32>
    %138 = arith.mulf %122, %130 : vector<8x128xf32>
    %139 = arith.addf %137, %138 : vector<8x128xf32>
    %140 = math.tanh %139 : vector<8x128xf32>
    %141 = arith.mulf %136, %140 : vector<8x128xf32>
    %142 = arith.index_cast %c3_i32 : i32 to index
    %c0_36 = arith.constant 0 : index
    %c0_37 = arith.constant 0 : index
    %143 = vector.load %arg4[%142, %c0_36, %c0_37] : memref<8x8x128xf32, #tpu.memory_space<vmem>>, vector<1x8x128xf32>
    %144 = vector.shape_cast %143 : vector<1x8x128xf32> to vector<8x128xf32>
    %145 = vector.shape_cast %141 : vector<8x128xf32> to vector<1x8x128xf32>
    tpu.vector_store %arg4[%142, %c0_36, %c0_37], %145 {strides = array<i32>} : memref<8x8x128xf32, #tpu.memory_space<vmem>>, vector<1x8x128xf32>,
    %c4_i32 = arith.constant 4 : i32
    %146 = arith.index_cast %c4_i32 : i32 to index
    %c0_38 = arith.constant 0 : index
    %c0_39 = arith.constant 0 : index
    %147 = vector.load %arg2[%146, %c0_38, %c0_39] : memref<8x8x512xf32, #tpu.memory_space<vmem>>, vector<1x8x512xf32>
    %148 = vector.shape_cast %147 : vector<1x8x512xf32> to vector<8x512xf32>
    %149 = arith.truncf %141 : vector<8x128xf32> to vector<8x128xbf16>
    %cst_40 = arith.constant dense<0.000000e+00> : vector<8x512xf32>
    %150 = tpu.matmul %149, %3, %cst_40 {dimension_numbers = #tpu.dot_dimension_numbers<[1], [0], [0], [1], [0, 0, 1, 1], [], []>} : vector<8x128xbf16>, vector<128x512xbf16>, vector<8x512xf32> -> vector<8x512xf32>
    %151 = arith.addf %148, %150 : vector<8x512xf32>
    %152 = vector.extract_strided_slice %151 {offsets = [0, 0], sizes = [8, 128], strides = [1, 1]} : vector<8x512xf32> to vector<8x128xf32>
    %153 = arith.negf %152 : vector<8x128xf32>
    %154 = math.exp %153 : vector<8x128xf32>
    %cst_41 = arith.constant 1.000000e+00 : f32
    %155 = vector.broadcast %cst_41 : f32 to vector<8x128xf32>
    %156 = arith.addf %155, %154 : vector<8x128xf32>
    %157 = arith.divf %155, %156 : vector<8x128xf32>
    %158 = vector.extract_strided_slice %151 {offsets = [0, 128], sizes = [8, 128], strides = [1, 1]} : vector<8x512xf32> to vector<8x128xf32>
    %159 = arith.negf %158 : vector<8x128xf32>
    %160 = math.exp %159 : vector<8x128xf32>
    %cst_42 = arith.constant 1.000000e+00 : f32
    %161 = vector.broadcast %cst_42 : f32 to vector<8x128xf32>
    %162 = arith.addf %161, %160 : vector<8x128xf32>
    %163 = arith.divf %161, %162 : vector<8x128xf32>
    %164 = vector.extract_strided_slice %151 {offsets = [0, 256], sizes = [8, 128], strides = [1, 1]} : vector<8x512xf32> to vector<8x128xf32>
    %165 = math.tanh %164 : vector<8x128xf32>
    %166 = vector.extract_strided_slice %151 {offsets = [0, 384], sizes = [8, 128], strides = [1, 1]} : vector<8x512xf32> to vector<8x128xf32>
    %167 = arith.negf %166 : vector<8x128xf32>
    %168 = math.exp %167 : vector<8x128xf32>
    %cst_43 = arith.constant 1.000000e+00 : f32
    %169 = vector.broadcast %cst_43 : f32 to vector<8x128xf32>
    %170 = arith.addf %169, %168 : vector<8x128xf32>
    %171 = arith.divf %169, %170 : vector<8x128xf32>
    %172 = arith.mulf %163, %139 : vector<8x128xf32>
    %173 = arith.mulf %157, %165 : vector<8x128xf32>
    %174 = arith.addf %172, %173 : vector<8x128xf32>
    %175 = math.tanh %174 : vector<8x128xf32>
    %176 = arith.mulf %171, %175 : vector<8x128xf32>
    %177 = arith.index_cast %c4_i32 : i32 to index
    %c0_44 = arith.constant 0 : index
    %c0_45 = arith.constant 0 : index
    %178 = vector.load %arg4[%177, %c0_44, %c0_45] : memref<8x8x128xf32, #tpu.memory_space<vmem>>, vector<1x8x128xf32>
    %179 = vector.shape_cast %178 : vector<1x8x128xf32> to vector<8x128xf32>
    %180 = vector.shape_cast %176 : vector<8x128xf32> to vector<1x8x128xf32>
    tpu.vector_store %arg4[%177, %c0_44, %c0_45], %180 {strides = array<i32>} : memref<8x8x128xf32, #tpu.memory_space<vmem>>, vector<1x8x128xf32>,
    %c5_i32 = arith.constant 5 : i32
    %181 = arith.index_cast %c5_i32 : i32 to index
    %c0_46 = arith.constant 0 : index
    %c0_47 = arith.constant 0 : index
    %182 = vector.load %arg2[%181, %c0_46, %c0_47] : memref<8x8x512xf32, #tpu.memory_space<vmem>>, vector<1x8x512xf32>
    %183 = vector.shape_cast %182 : vector<1x8x512xf32> to vector<8x512xf32>
    %184 = arith.truncf %176 : vector<8x128xf32> to vector<8x128xbf16>
    %cst_48 = arith.constant dense<0.000000e+00> : vector<8x512xf32>
    %185 = tpu.matmul %184, %3, %cst_48 {dimension_numbers = #tpu.dot_dimension_numbers<[1], [0], [0], [1], [0, 0, 1, 1], [], []>} : vector<8x128xbf16>, vector<128x512xbf16>, vector<8x512xf32> -> vector<8x512xf32>
    %186 = arith.addf %183, %185 : vector<8x512xf32>
    %187 = vector.extract_strided_slice %186 {offsets = [0, 0], sizes = [8, 128], strides = [1, 1]} : vector<8x512xf32> to vector<8x128xf32>
    %188 = arith.negf %187 : vector<8x128xf32>
    %189 = math.exp %188 : vector<8x128xf32>
    %cst_49 = arith.constant 1.000000e+00 : f32
    %190 = vector.broadcast %cst_49 : f32 to vector<8x128xf32>
    %191 = arith.addf %190, %189 : vector<8x128xf32>
    %192 = arith.divf %190, %191 : vector<8x128xf32>
    %193 = vector.extract_strided_slice %186 {offsets = [0, 128], sizes = [8, 128], strides = [1, 1]} : vector<8x512xf32> to vector<8x128xf32>
    %194 = arith.negf %193 : vector<8x128xf32>
    %195 = math.exp %194 : vector<8x128xf32>
    %cst_50 = arith.constant 1.000000e+00 : f32
    %196 = vector.broadcast %cst_50 : f32 to vector<8x128xf32>
    %197 = arith.addf %196, %195 : vector<8x128xf32>
    %198 = arith.divf %196, %197 : vector<8x128xf32>
    %199 = vector.extract_strided_slice %186 {offsets = [0, 256], sizes = [8, 128], strides = [1, 1]} : vector<8x512xf32> to vector<8x128xf32>
    %200 = math.tanh %199 : vector<8x128xf32>
    %201 = vector.extract_strided_slice %186 {offsets = [0, 384], sizes = [8, 128], strides = [1, 1]} : vector<8x512xf32> to vector<8x128xf32>
    %202 = arith.negf %201 : vector<8x128xf32>
    %203 = math.exp %202 : vector<8x128xf32>
    %cst_51 = arith.constant 1.000000e+00 : f32
    %204 = vector.broadcast %cst_51 : f32 to vector<8x128xf32>
    %205 = arith.addf %204, %203 : vector<8x128xf32>
    %206 = arith.divf %204, %205 : vector<8x128xf32>
    %207 = arith.mulf %198, %174 : vector<8x128xf32>
    %208 = arith.mulf %192, %200 : vector<8x128xf32>
    %209 = arith.addf %207, %208 : vector<8x128xf32>
    %210 = math.tanh %209 : vector<8x128xf32>
    %211 = arith.mulf %206, %210 : vector<8x128xf32>
    %212 = arith.index_cast %c5_i32 : i32 to index
    %c0_52 = arith.constant 0 : index
    %c0_53 = arith.constant 0 : index
    %213 = vector.load %arg4[%212, %c0_52, %c0_53] : memref<8x8x128xf32, #tpu.memory_space<vmem>>, vector<1x8x128xf32>
    %214 = vector.shape_cast %213 : vector<1x8x128xf32> to vector<8x128xf32>
    %215 = vector.shape_cast %211 : vector<8x128xf32> to vector<1x8x128xf32>
    tpu.vector_store %arg4[%212, %c0_52, %c0_53], %215 {strides = array<i32>} : memref<8x8x128xf32, #tpu.memory_space<vmem>>, vector<1x8x128xf32>,
    %c6_i32 = arith.constant 6 : i32
    %216 = arith.index_cast %c6_i32 : i32 to index
    %c0_54 = arith.constant 0 : index
    %c0_55 = arith.constant 0 : index
    %217 = vector.load %arg2[%216, %c0_54, %c0_55] : memref<8x8x512xf32, #tpu.memory_space<vmem>>, vector<1x8x512xf32>
    %218 = vector.shape_cast %217 : vector<1x8x512xf32> to vector<8x512xf32>
    %219 = arith.truncf %211 : vector<8x128xf32> to vector<8x128xbf16>
    %cst_56 = arith.constant dense<0.000000e+00> : vector<8x512xf32>
    %220 = tpu.matmul %219, %3, %cst_56 {dimension_numbers = #tpu.dot_dimension_numbers<[1], [0], [0], [1], [0, 0, 1, 1], [], []>} : vector<8x128xbf16>, vector<128x512xbf16>, vector<8x512xf32> -> vector<8x512xf32>
    %221 = arith.addf %218, %220 : vector<8x512xf32>
    %222 = vector.extract_strided_slice %221 {offsets = [0, 0], sizes = [8, 128], strides = [1, 1]} : vector<8x512xf32> to vector<8x128xf32>
    %223 = arith.negf %222 : vector<8x128xf32>
    %224 = math.exp %223 : vector<8x128xf32>
    %cst_57 = arith.constant 1.000000e+00 : f32
    %225 = vector.broadcast %cst_57 : f32 to vector<8x128xf32>
    %226 = arith.addf %225, %224 : vector<8x128xf32>
    %227 = arith.divf %225, %226 : vector<8x128xf32>
    %228 = vector.extract_strided_slice %221 {offsets = [0, 128], sizes = [8, 128], strides = [1, 1]} : vector<8x512xf32> to vector<8x128xf32>
    %229 = arith.negf %228 : vector<8x128xf32>
    %230 = math.exp %229 : vector<8x128xf32>
    %cst_58 = arith.constant 1.000000e+00 : f32
    %231 = vector.broadcast %cst_58 : f32 to vector<8x128xf32>
    %232 = arith.addf %231, %230 : vector<8x128xf32>
    %233 = arith.divf %231, %232 : vector<8x128xf32>
    %234 = vector.extract_strided_slice %221 {offsets = [0, 256], sizes = [8, 128], strides = [1, 1]} : vector<8x512xf32> to vector<8x128xf32>
    %235 = math.tanh %234 : vector<8x128xf32>
    %236 = vector.extract_strided_slice %221 {offsets = [0, 384], sizes = [8, 128], strides = [1, 1]} : vector<8x512xf32> to vector<8x128xf32>
    %237 = arith.negf %236 : vector<8x128xf32>
    %238 = math.exp %237 : vector<8x128xf32>
    %cst_59 = arith.constant 1.000000e+00 : f32
    %239 = vector.broadcast %cst_59 : f32 to vector<8x128xf32>
    %240 = arith.addf %239, %238 : vector<8x128xf32>
    %241 = arith.divf %239, %240 : vector<8x128xf32>
    %242 = arith.mulf %233, %209 : vector<8x128xf32>
    %243 = arith.mulf %227, %235 : vector<8x128xf32>
    %244 = arith.addf %242, %243 : vector<8x128xf32>
    %245 = math.tanh %244 : vector<8x128xf32>
    %246 = arith.mulf %241, %245 : vector<8x128xf32>
    %247 = arith.index_cast %c6_i32 : i32 to index
    %c0_60 = arith.constant 0 : index
    %c0_61 = arith.constant 0 : index
    %248 = vector.load %arg4[%247, %c0_60, %c0_61] : memref<8x8x128xf32, #tpu.memory_space<vmem>>, vector<1x8x128xf32>
    %249 = vector.shape_cast %248 : vector<1x8x128xf32> to vector<8x128xf32>
    %250 = vector.shape_cast %246 : vector<8x128xf32> to vector<1x8x128xf32>
    tpu.vector_store %arg4[%247, %c0_60, %c0_61], %250 {strides = array<i32>} : memref<8x8x128xf32, #tpu.memory_space<vmem>>, vector<1x8x128xf32>,
    %c7_i32 = arith.constant 7 : i32
    %251 = arith.index_cast %c7_i32 : i32 to index
    %c0_62 = arith.constant 0 : index
    %c0_63 = arith.constant 0 : index
    %252 = vector.load %arg2[%251, %c0_62, %c0_63] : memref<8x8x512xf32, #tpu.memory_space<vmem>>, vector<1x8x512xf32>
    %253 = vector.shape_cast %252 : vector<1x8x512xf32> to vector<8x512xf32>
    %254 = arith.truncf %246 : vector<8x128xf32> to vector<8x128xbf16>
    %cst_64 = arith.constant dense<0.000000e+00> : vector<8x512xf32>
    %255 = tpu.matmul %254, %3, %cst_64 {dimension_numbers = #tpu.dot_dimension_numbers<[1], [0], [0], [1], [0, 0, 1, 1], [], []>} : vector<8x128xbf16>, vector<128x512xbf16>, vector<8x512xf32> -> vector<8x512xf32>
    %256 = arith.addf %253, %255 : vector<8x512xf32>
    %257 = vector.extract_strided_slice %256 {offsets = [0, 0], sizes = [8, 128], strides = [1, 1]} : vector<8x512xf32> to vector<8x128xf32>
    %258 = arith.negf %257 : vector<8x128xf32>
    %259 = math.exp %258 : vector<8x128xf32>
    %cst_65 = arith.constant 1.000000e+00 : f32
    %260 = vector.broadcast %cst_65 : f32 to vector<8x128xf32>
    %261 = arith.addf %260, %259 : vector<8x128xf32>
    %262 = arith.divf %260, %261 : vector<8x128xf32>
    %263 = vector.extract_strided_slice %256 {offsets = [0, 128], sizes = [8, 128], strides = [1, 1]} : vector<8x512xf32> to vector<8x128xf32>
    %264 = arith.negf %263 : vector<8x128xf32>
    %265 = math.exp %264 : vector<8x128xf32>
    %cst_66 = arith.constant 1.000000e+00 : f32
    %266 = vector.broadcast %cst_66 : f32 to vector<8x128xf32>
    %267 = arith.addf %266, %265 : vector<8x128xf32>
    %268 = arith.divf %266, %267 : vector<8x128xf32>
    %269 = vector.extract_strided_slice %256 {offsets = [0, 256], sizes = [8, 128], strides = [1, 1]} : vector<8x512xf32> to vector<8x128xf32>
    %270 = math.tanh %269 : vector<8x128xf32>
    %271 = vector.extract_strided_slice %256 {offsets = [0, 384], sizes = [8, 128], strides = [1, 1]} : vector<8x512xf32> to vector<8x128xf32>
    %272 = arith.negf %271 : vector<8x128xf32>
    %273 = math.exp %272 : vector<8x128xf32>
    %cst_67 = arith.constant 1.000000e+00 : f32
    %274 = vector.broadcast %cst_67 : f32 to vector<8x128xf32>
    %275 = arith.addf %274, %273 : vector<8x128xf32>
    %276 = arith.divf %274, %275 : vector<8x128xf32>
    %277 = arith.mulf %268, %244 : vector<8x128xf32>
    %278 = arith.mulf %262, %270 : vector<8x128xf32>
    %279 = arith.addf %277, %278 : vector<8x128xf32>
    %280 = math.tanh %279 : vector<8x128xf32>
    %281 = arith.mulf %276, %280 : vector<8x128xf32>
    %282 = arith.index_cast %c7_i32 : i32 to index
    %c0_68 = arith.constant 0 : index
    %c0_69 = arith.constant 0 : index
    %283 = vector.load %arg4[%282, %c0_68, %c0_69] : memref<8x8x128xf32, #tpu.memory_space<vmem>>, vector<1x8x128xf32>
    %284 = vector.shape_cast %283 : vector<1x8x128xf32> to vector<8x128xf32>
    %285 = vector.shape_cast %281 : vector<8x128xf32> to vector<1x8x128xf32>
    tpu.vector_store %arg4[%282, %c0_68, %c0_69], %285 {strides = array<i32>} : memref<8x8x128xf32, #tpu.memory_space<vmem>>, vector<1x8x128xf32>,
    %c8_i32 = arith.constant 8 : i32
    %c0_70 = arith.constant 0 : index
    %c0_71 = arith.constant 0 : index
    %286 = vector.load %arg5[%c0_70, %c0_71] : memref<8x128xf32, #tpu.memory_space<vmem>>, vector<8x128xf32>
    tpu.vector_store %arg5[%c0_70, %c0_71], %281 {strides = array<i32>} : memref<8x128xf32, #tpu.memory_space<vmem>>, vector<8x128xf32>,
    %c0_72 = arith.constant 0 : index
    %c0_73 = arith.constant 0 : index
    %287 = vector.load %arg6[%c0_72, %c0_73] : memref<8x128xf32, #tpu.memory_space<vmem>>, vector<8x128xf32>
    tpu.vector_store %arg6[%c0_72, %c0_73], %279 {strides = array<i32>} : memref<8x128xf32, #tpu.memory_space<vmem>>, vector<8x128xf32>,
    return
  }
  func.func @transform_0(%arg0: i32, %arg1: i32) -> (i32, i32, i32) {
    %c0_i32 = arith.constant 0 : i32
    %c0_i32_0 = arith.constant 0 : i32
    return %arg1, %arg0, %c0_i32 : i32, i32, i32
  }
  func.func @transform_1(%arg0: i32, %arg1: i32) -> (i32, i32) {
    %c0_i32 = arith.constant 0 : i32
    %c0_i32_0 = arith.constant 0 : i32
    %c0_i32_1 = arith.constant 0 : i32
    return %c0_i32, %c0_i32_0 : i32, i32
  }
  func.func @transform_2(%arg0: i32, %arg1: i32) -> (i32, i32, i32) {
    %c0_i32 = arith.constant 0 : i32
    %c0_i32_0 = arith.constant 0 : i32
    return %arg1, %arg0, %c0_i32 : i32, i32, i32
  }
}

module attributes {stable_mosaic.version = 11 : i64} {
  func.func @_linear_kernel(%arg0: i32, %arg1: i32, %arg2: i32, %arg3: memref<256x128xf32, #tpu.memory_space<vmem>>, %arg4: memref<128x256xbf16, #tpu.memory_space<vmem>>, %arg5: memref<1x256xf32, #tpu.memory_space<vmem>>, %arg6: memref<256x256xf32, #tpu.memory_space<vmem>>, %arg7: memref<256x256xf32, #tpu.memory_space<vmem>>) attributes {dimension_semantics = [#tpu.dimension_semantics<parallel>, #tpu.dimension_semantics<parallel>, #tpu.dimension_semantics<arbitrary>], iteration_bounds = array<i64: 1, 1, 1>, scalar_prefetch = 0 : i64, scratch_operands = 1 : i64, tpu.core_type = #tpu.core_type<tc>, window_params = [{transform_indices = @transform_0, window_bounds = array<i64: 256, 128>}, {transform_indices = @transform_1, window_bounds = array<i64: 128, 256>}, {transform_indices = @transform_2, window_bounds = array<i64: 1, 256>}, {transform_indices = @transform_3, window_bounds = array<i64: 256, 256>}]} {
    %c0_i32 = arith.constant 0 : i32
    %0 = arith.cmpi eq, %arg2, %c0_i32 : i32
    %1 = arith.extui %0 : i1 to i32
    %c0_i32_0 = arith.constant 0 : i32
    %2 = arith.cmpi ne, %1, %c0_i32_0 : i32
    scf.if %2 {
      %cst_10 = arith.constant 0.000000e+00 : f32
      %13 = vector.broadcast %cst_10 : f32 to vector<256x256xf32>
      %c0_11 = arith.constant 0 : index
      %c0_12 = arith.constant 0 : index
      %14 = vector.load %arg7[%c0_11, %c0_12] : memref<256x256xf32, #tpu.memory_space<vmem>>, vector<256x256xf32>
      tpu.vector_store %arg7[%c0_11, %c0_12], %13 {strides = array<i32>} : memref<256x256xf32, #tpu.memory_space<vmem>>, vector<256x256xf32>,
    } else {
    }
    %c0 = arith.constant 0 : index
    %c0_1 = arith.constant 0 : index
    %3 = vector.load %arg7[%c0, %c0_1] : memref<256x256xf32, #tpu.memory_space<vmem>>, vector<256x256xf32>
    %c0_2 = arith.constant 0 : index
    %c0_3 = arith.constant 0 : index
    %4 = vector.load %arg3[%c0_2, %c0_3] : memref<256x128xf32, #tpu.memory_space<vmem>>, vector<256x128xf32>
    %5 = arith.truncf %4 : vector<256x128xf32> to vector<256x128xbf16>
    %c0_4 = arith.constant 0 : index
    %c0_5 = arith.constant 0 : index
    %6 = vector.load %arg4[%c0_4, %c0_5] : memref<128x256xbf16, #tpu.memory_space<vmem>>, vector<128x256xbf16>
    %cst = arith.constant dense<0.000000e+00> : vector<256x256xf32>
    %7 = tpu.matmul %5, %6, %cst {dimension_numbers = #tpu.dot_dimension_numbers<[1], [0], [0], [1], [0, 0, 1, 1], [], []>} : vector<256x128xbf16>, vector<128x256xbf16>, vector<256x256xf32> -> vector<256x256xf32>
    %8 = arith.addf %3, %7 : vector<256x256xf32>
    %c0_6 = arith.constant 0 : index
    %c0_7 = arith.constant 0 : index
    %9 = vector.load %arg7[%c0_6, %c0_7] : memref<256x256xf32, #tpu.memory_space<vmem>>, vector<256x256xf32>
    tpu.vector_store %arg7[%c0_6, %c0_7], %8 {strides = array<i32>} : memref<256x256xf32, #tpu.memory_space<vmem>>, vector<256x256xf32>,
    %c0_i32_8 = arith.constant 0 : i32
    %10 = arith.cmpi eq, %arg2, %c0_i32_8 : i32
    %11 = arith.extui %10 : i1 to i32
    %c0_i32_9 = arith.constant 0 : i32
    %12 = arith.cmpi ne, %11, %c0_i32_9 : i32
    scf.if %12 {
      %c0_10 = arith.constant 0 : index
      %c0_11 = arith.constant 0 : index
      %13 = vector.load %arg7[%c0_10, %c0_11] : memref<256x256xf32, #tpu.memory_space<vmem>>, vector<256x256xf32>
      %c0_12 = arith.constant 0 : index
      %c0_13 = arith.constant 0 : index
      %14 = vector.load %arg5[%c0_12, %c0_13] : memref<1x256xf32, #tpu.memory_space<vmem>>, vector<1x256xf32>
      %15 = vector.broadcast %14 : vector<1x256xf32> to vector<256x256xf32>
      %16 = arith.addf %13, %15 : vector<256x256xf32>
      %c0_14 = arith.constant 0 : index
      %c0_15 = arith.constant 0 : index
      %17 = vector.load %arg6[%c0_14, %c0_15] : memref<256x256xf32, #tpu.memory_space<vmem>>, vector<256x256xf32>
      tpu.vector_store %arg6[%c0_14, %c0_15], %16 {strides = array<i32>} : memref<256x256xf32, #tpu.memory_space<vmem>>, vector<256x256xf32>,
    } else {
    }
    return
  }
  func.func @transform_0(%arg0: i32, %arg1: i32, %arg2: i32) -> (i32, i32) {
    %c0_i32 = arith.constant 0 : i32
    return %arg0, %arg2 : i32, i32
  }
  func.func @transform_1(%arg0: i32, %arg1: i32, %arg2: i32) -> (i32, i32) {
    %c0_i32 = arith.constant 0 : i32
    return %arg2, %arg1 : i32, i32
  }
  func.func @transform_2(%arg0: i32, %arg1: i32, %arg2: i32) -> (i32, i32) {
    %c0_i32 = arith.constant 0 : i32
    %c0_i32_0 = arith.constant 0 : i32
    return %c0_i32, %arg1 : i32, i32
  }
  func.func @transform_3(%arg0: i32, %arg1: i32, %arg2: i32) -> (i32, i32) {
    %c0_i32 = arith.constant 0 : i32
    return %arg0, %arg1 : i32, i32
  }
}

module attributes {stable_mosaic.version = 11 : i64} {
  func.func @_linear_kernel(%arg0: i32, %arg1: i32, %arg2: i32, %arg3: memref<256x256xf32, #tpu.memory_space<vmem>>, %arg4: memref<256x128xbf16, #tpu.memory_space<vmem>>, %arg5: memref<1x128xf32, #tpu.memory_space<vmem>>, %arg6: memref<256x128xf32, #tpu.memory_space<vmem>>, %arg7: memref<256x128xf32, #tpu.memory_space<vmem>>) attributes {dimension_semantics = [#tpu.dimension_semantics<parallel>, #tpu.dimension_semantics<parallel>, #tpu.dimension_semantics<arbitrary>], iteration_bounds = array<i64: 1, 1, 1>, scalar_prefetch = 0 : i64, scratch_operands = 1 : i64, tpu.core_type = #tpu.core_type<tc>, window_params = [{transform_indices = @transform_0, window_bounds = array<i64: 256, 256>}, {transform_indices = @transform_1, window_bounds = array<i64: 256, 128>}, {transform_indices = @transform_2, window_bounds = array<i64: 1, 128>}, {transform_indices = @transform_3, window_bounds = array<i64: 256, 128>}]} {
    %c0_i32 = arith.constant 0 : i32
    %0 = arith.cmpi eq, %arg2, %c0_i32 : i32
    %1 = arith.extui %0 : i1 to i32
    %c0_i32_0 = arith.constant 0 : i32
    %2 = arith.cmpi ne, %1, %c0_i32_0 : i32
    scf.if %2 {
      %cst_10 = arith.constant 0.000000e+00 : f32
      %13 = vector.broadcast %cst_10 : f32 to vector<256x128xf32>
      %c0_11 = arith.constant 0 : index
      %c0_12 = arith.constant 0 : index
      %14 = vector.load %arg7[%c0_11, %c0_12] : memref<256x128xf32, #tpu.memory_space<vmem>>, vector<256x128xf32>
      tpu.vector_store %arg7[%c0_11, %c0_12], %13 {strides = array<i32>} : memref<256x128xf32, #tpu.memory_space<vmem>>, vector<256x128xf32>,
    } else {
    }
    %c0 = arith.constant 0 : index
    %c0_1 = arith.constant 0 : index
    %3 = vector.load %arg7[%c0, %c0_1] : memref<256x128xf32, #tpu.memory_space<vmem>>, vector<256x128xf32>
    %c0_2 = arith.constant 0 : index
    %c0_3 = arith.constant 0 : index
    %4 = vector.load %arg3[%c0_2, %c0_3] : memref<256x256xf32, #tpu.memory_space<vmem>>, vector<256x256xf32>
    %5 = arith.truncf %4 : vector<256x256xf32> to vector<256x256xbf16>
    %c0_4 = arith.constant 0 : index
    %c0_5 = arith.constant 0 : index
    %6 = vector.load %arg4[%c0_4, %c0_5] : memref<256x128xbf16, #tpu.memory_space<vmem>>, vector<256x128xbf16>
    %cst = arith.constant dense<0.000000e+00> : vector<256x128xf32>
    %7 = tpu.matmul %5, %6, %cst {dimension_numbers = #tpu.dot_dimension_numbers<[1], [0], [0], [1], [0, 0, 1, 1], [], []>} : vector<256x256xbf16>, vector<256x128xbf16>, vector<256x128xf32> -> vector<256x128xf32>
    %8 = arith.addf %3, %7 : vector<256x128xf32>
    %c0_6 = arith.constant 0 : index
    %c0_7 = arith.constant 0 : index
    %9 = vector.load %arg7[%c0_6, %c0_7] : memref<256x128xf32, #tpu.memory_space<vmem>>, vector<256x128xf32>
    tpu.vector_store %arg7[%c0_6, %c0_7], %8 {strides = array<i32>} : memref<256x128xf32, #tpu.memory_space<vmem>>, vector<256x128xf32>,
    %c0_i32_8 = arith.constant 0 : i32
    %10 = arith.cmpi eq, %arg2, %c0_i32_8 : i32
    %11 = arith.extui %10 : i1 to i32
    %c0_i32_9 = arith.constant 0 : i32
    %12 = arith.cmpi ne, %11, %c0_i32_9 : i32
    scf.if %12 {
      %c0_10 = arith.constant 0 : index
      %c0_11 = arith.constant 0 : index
      %13 = vector.load %arg7[%c0_10, %c0_11] : memref<256x128xf32, #tpu.memory_space<vmem>>, vector<256x128xf32>
      %c0_12 = arith.constant 0 : index
      %c0_13 = arith.constant 0 : index
      %14 = vector.load %arg5[%c0_12, %c0_13] : memref<1x128xf32, #tpu.memory_space<vmem>>, vector<1x128xf32>
      %15 = vector.broadcast %14 : vector<1x128xf32> to vector<256x128xf32>
      %16 = arith.addf %13, %15 : vector<256x128xf32>
      %c0_14 = arith.constant 0 : index
      %c0_15 = arith.constant 0 : index
      %17 = vector.load %arg6[%c0_14, %c0_15] : memref<256x128xf32, #tpu.memory_space<vmem>>, vector<256x128xf32>
      tpu.vector_store %arg6[%c0_14, %c0_15], %16 {strides = array<i32>} : memref<256x128xf32, #tpu.memory_space<vmem>>, vector<256x128xf32>,
    } else {
    }
    return
  }
  func.func @transform_0(%arg0: i32, %arg1: i32, %arg2: i32) -> (i32, i32) {
    %c0_i32 = arith.constant 0 : i32
    return %arg0, %arg2 : i32, i32
  }
  func.func @transform_1(%arg0: i32, %arg1: i32, %arg2: i32) -> (i32, i32) {
    %c0_i32 = arith.constant 0 : i32
    return %arg2, %arg1 : i32, i32
  }
  func.func @transform_2(%arg0: i32, %arg1: i32, %arg2: i32) -> (i32, i32) {
    %c0_i32 = arith.constant 0 : i32
    %c0_i32_0 = arith.constant 0 : i32
    return %c0_i32, %arg1 : i32, i32
  }
  func.func @transform_3(%arg0: i32, %arg1: i32, %arg2: i32) -> (i32, i32) {
    %c0_i32 = arith.constant 0 : i32
    return %arg0, %arg1 : i32, i32
  }
}

</mosaic_0001>

<bundles_post_ra>
// kernel: lstm_model_forward.5
= control target key start
LH: loop header
LB: loop body
LE: loop exit
PB: predicated region body
PF: predicated region fallthrough
CT: control target
= control target key end

     0   :  { %s908_s1 = inlined_call_operand.vmem [shape: bf16[128,128], index: 1, kind: input, shape index: {}]   ;;  %s909_s0 = inlined_call_operand.vmem [shape: f32[256,128], index: 0, kind: input, shape index: {}]   ;;  %s910_s2 = inlined_call_operand.vmem [shape: f32[1,128], index: 2, kind: input, shape index: {}]   ;;  %s911_s3 = inlined_call_operand.vmem [shape: f32[256,128], index: 3, kind: output, shape index: {}]  }
   0x1   :  { %v627_v0 = vld [vmem:[%s908_s1 + $0x38] sm:$0xff]   ;;  %v628_v1 = vld [vmem:[%s908_s1 + $0x30] sm:$0xff]   ;;  %v629_v2 = vld [vmem:[%s908_s1 + $0x28] sm:$0xff]  }
   0x2   :  { %563 = vmatprep.subr.bf16.mxu0 %v627_v0  ;;  %611 = vmatprep.subr.bf16.mxu1 %v627_v0  ;;  %v630_v3 = vld [vmem:[%s908_s1 + $0x20] sm:$0xff]   ;;  %v84_v5 = vld [vmem:[%s909_s0 + $0x8] sm:$0xff]  ;;  %v631_v10 = vld [vmem:[%s908_s1 + $0x18] sm:$0xff]  }
   0x3   :  { %564 = vmatpush3.bf16.msra.mxu0 %v627_v0  ;;  %619 = vmatpush3.bf16.msra.mxu1 %v627_v0  ;;  %v83_v4 = vld [vmem:[%s909_s0] sm:$0xff]  ;;  %v100_v8 = vld [vmem:[%s909_s0 + $0x88] sm:$0xff]  ;;  %v632_v11 = vld [vmem:[%s908_s1 + $0x10] sm:$0xff]  }
   0x4   :  { %565 = vmatprep.subr.bf16.mxu0 %v628_v1  ;;  %612 = vmatprep.subr.bf16.mxu1 %v628_v1  ;;  %v99_v6 = vld [vmem:[%s909_s0 + $0x80] sm:$0xff]  ;;  %v115_v7 = vpack.c.bf16 %v84_v5, %v83_v4  ;;  %v633_v12 = vld [vmem:[%s908_s1 + $0x8] sm:$0xff]   ;;  %v85_v14 = vld [vmem:[%s909_s0 + $0x10] sm:$0xff] }
   0x5   :  { %v123_v9 = vpack.c.bf16 %v100_v8, %v99_v6  ;;  %v634_v13 = vld [vmem:[%s908_s1] sm:$0xff]   ;;  %v86_v15 = vld [vmem:[%s909_s0 + $0x18] sm:$0xff]  ;;  %v101_v16 = vld [vmem:[%s909_s0 + $0x90] sm:$0xff] }
   0x6   :  { %579 = vmatprep.mubr.bf16.mxu0 %v115_v7  ;;  %v102_v17 = vld [vmem:[%s909_s0 + $0x98] sm:$0xff]  ;;  %v87_v18 = vld [vmem:[%s909_s0 + $0x20] sm:$0xff]  ;;  %v88_v19 = vld [vmem:[%s909_s0 + $0x28] sm:$0xff]  ;;  %v116_v22 = vpack.c.bf16 %v86_v15, %v85_v14 }
   0x7   :  { %566 = vmatpush3.bf16.msra.mxu0 %v628_v1  ;;  %620 = vmatpush3.bf16.msra.mxu1 %v628_v1  ;;  %v103_v20 = vld [vmem:[%s909_s0 + $0xa0] sm:$0xff]  ;;  %v104_v21 = vld [vmem:[%s909_s0 + $0xa8] sm:$0xff]  ;;  %v124_v23 = vpack.c.bf16 %v102_v17, %v101_v16  ;;  %v117_v24 = vpack.c.bf16 %v88_v19, %v87_v18  ;;  %v89_v26 = vld [vmem:[%s909_s0 + $0x30] sm:$0xff] }
   0x8   :  { %567 = vmatprep.subr.bf16.mxu0 %v629_v2  ;;  %613 = vmatprep.subr.bf16.mxu1 %v629_v2  ;;  %v125_v25 = vpack.c.bf16 %v104_v21, %v103_v20  ;;  %v90_v27 = vld [vmem:[%s909_s0 + $0x38] sm:$0xff]  ;;  %v105_v28 = vld [vmem:[%s909_s0 + $0xb0] sm:$0xff]  ;;  %v91_v30 = vld [vmem:[%s909_s0 + $0x40] sm:$0xff] }
   0x9   :  { %595 = vmatprep.mubr.bf16.mxu1 %v123_v9  ;;  %v106_v29 = vld [vmem:[%s909_s0 + $0xb8] sm:$0xff]  ;;  %v92_v31 = vld [vmem:[%s909_s0 + $0x48] sm:$0xff]  ;;  %v107_v32 = vld [vmem:[%s909_s0 + $0xc0] sm:$0xff]  ;;  %v118_v34 = vpack.c.bf16 %v90_v27, %v89_v26 }
   0xa   :  { %v108_v33 = vld [vmem:[%s909_s0 + $0xc8] sm:$0xff]  ;;  %v126_v35 = vpack.c.bf16 %v106_v29, %v105_v28  ;;  %v119_v36 = vpack.c.bf16 %v92_v31, %v91_v30  ;;  %v93_v38 = vld [vmem:[%s909_s0 + $0x50] sm:$0xff]  ;;  %v94_v39 = vld [vmem:[%s909_s0 + $0x58] sm:$0xff] }
   0xb   :  { %568 = vmatpush3.bf16.msra.mxu0 %v629_v2  ;;  %621 = vmatpush3.bf16.msra.mxu1 %v629_v2  ;;  %v127_v37 = vpack.c.bf16 %v108_v33, %v107_v32  ;;  %v109_v40 = vld [vmem:[%s909_s0 + $0xd0] sm:$0xff]  ;;  %v110_v41 = vld [vmem:[%s909_s0 + $0xd8] sm:$0xff]  ;;  %v95_v42 = vld [vmem:[%s909_s0 + $0x60] sm:$0xff]  ;;  %v120_v46 = vpack.c.bf16 %v94_v39, %v93_v38 }
   0xc   :  { %569 = vmatprep.subr.bf16.mxu0 %v630_v3  ;;  %614 = vmatprep.subr.bf16.mxu1 %v630_v3  ;;  %v96_v43 = vld [vmem:[%s909_s0 + $0x68] sm:$0xff]  ;;  %v111_v44 = vld [vmem:[%s909_s0 + $0xe0] sm:$0xff]  ;;  %v128_v47 = vpack.c.bf16 %v110_v41, %v109_v40  ;;  %v97_v50 = vld [vmem:[%s909_s0 + $0x70] sm:$0xff] }
   0xd   :  { %v112_v45 = vld [vmem:[%s909_s0 + $0xe8] sm:$0xff]  ;;  %v121_v48 = vpack.c.bf16 %v96_v43, %v95_v42  ;;  %v98_v51 = vld [vmem:[%s909_s0 + $0x78] sm:$0xff]  ;;  %v113_v52 = vld [vmem:[%s909_s0 + $0xf0] sm:$0xff] }
   0xe   :  { %v129_v49 = vpack.c.bf16 %v112_v45, %v111_v44  ;;  %v114_v53 = vld [vmem:[%s909_s0 + $0xf8] sm:$0xff]  ;;  %v122_v54 = vpack.c.bf16 %v98_v51, %v97_v50  ;;  %v778_v56 = vld [vmem:[%s910_s2] ss:$0 sm:$0xff] }
   0xf   :  { %570 = vmatpush3.bf16.msra.mxu0 %v630_v3  ;;  %622 = vmatpush3.bf16.msra.mxu1 %v630_v3  ;;  %v130_v55 = vpack.c.bf16 %v114_v53, %v113_v52 }
  0x10   :  { %571 = vmatprep.subr.bf16.mxu0 %v631_v10  ;;  %615 = vmatprep.subr.bf16.mxu1 %v631_v10 }
  0x13   :  { %572 = vmatpush3.bf16.msra.mxu0 %v631_v10  ;;  %623 = vmatpush3.bf16.msra.mxu1 %v631_v10 }
  0x14   :  { %573 = vmatprep.subr.bf16.mxu0 %v632_v11  ;;  %616 = vmatprep.subr.bf16.mxu1 %v632_v11 }
  0x17   :  { %574 = vmatpush3.bf16.msra.mxu0 %v632_v11  ;;  %624 = vmatpush3.bf16.msra.mxu1 %v632_v11 }
  0x18   :  { %575 = vmatprep.subr.bf16.mxu0 %v633_v12  ;;  %617 = vmatprep.subr.bf16.mxu1 %v633_v12 }
  0x1b   :  { %576 = vmatpush3.bf16.msra.mxu0 %v633_v12  ;;  %625 = vmatpush3.bf16.msra.mxu1 %v633_v12 }
  0x1c   :  { %577 = vmatprep.subr.bf16.mxu0 %v634_v13  ;;  %618 = vmatprep.subr.bf16.mxu1 %v634_v13 }
  0x1f   :  { %578 = vmatpush3.bf16.msra.mxu0 %v634_v13  ;;  %626 = vmatpush3.bf16.msra.mxu1 %v634_v13 }
  0x22   :  { %580 = vmatmul.mubr.bf16.vlgmr.msra.gmra.mxu0 %v116_v22  ;;  %596 = vmatmul.mubr.bf16.vlgmr.msra.gmra.mxu1 %v124_v23 }
  0x23   :  { %583 = vmatprep.mubr.bf16.mxu0 %v117_v24  ;;  %599 = vmatprep.mubr.bf16.mxu1 %v125_v25 }
  0x2a   :  { %584 = vmatmul.mubr.bf16.gmra.mxu0 %v118_v34  ;;  %600 = vmatmul.mubr.bf16.gmra.mxu1 %v126_v35 }
  0x2b   :  { %587 = vmatprep.mubr.bf16.mxu0 %v119_v36  ;;  %603 = vmatprep.mubr.bf16.mxu1 %v127_v37 }
  0x32   :  { %588 = vmatmul.mubr.bf16.gmra.mxu0 %v120_v46  ;;  %604 = vmatmul.mubr.bf16.gmra.mxu1 %v128_v47 }
  0x33   :  { %591 = vmatprep.mubr.bf16.mxu0 %v121_v48  ;;  %607 = vmatprep.mubr.bf16.mxu1 %v129_v49 }
  0x3a   :  { %592 = vmatmul.mubr.bf16.gmra.mxu0 %v122_v54  ;;  %608 = vmatmul.mubr.bf16.gmra.mxu1 %v130_v55 }
  0xe2   :  { %v581_v57 = vpop.f32.mrf.mxu0  ;;  %v597_v58 = vpop.f32.mrf.mxu1 }
  0xe3   :  { %v464_v59 = vadd.f32 %v581_v57, %v778_v56  ;;  %v480_v60 = vadd.f32 %v597_v58, %v778_v56 }
  0xe4   :  { %v229_v61 = vpop.f32.mrf.mxu0  ;;  %v293_v62 = vpop.f32.mrf.mxu1 }
  0xe5   :  { %496 = vst [vmem:[%s911_s3 + $0x10] sm:$0xff] %v464_v59  ;;  %512 = vst [vmem:[%s911_s3 + $0x90] sm:$0xff] %v480_v60  ;;  %v462_v63 = vadd.f32 %v778_v56, %v229_v61  ;;  %v478_v0 = vadd.f32 %v778_v56, %v293_v62 }
  0xe6   :  { %v582_v1 = vpop.f32.mrf.mxu0  ;;  %v598_v2 = vpop.f32.mrf.mxu1 }
  0xe7   :  { %494 = vst [vmem:[%s911_s3] sm:$0xff] %v462_v63  ;;  %510 = vst [vmem:[%s911_s3 + $0x80] sm:$0xff] %v478_v0  ;;  %v465_v3 = vadd.f32 %v582_v1, %v778_v56  ;;  %v481_v4 = vadd.f32 %v598_v2, %v778_v56 }
  0xe8   :  { %v232_v5 = vpop.f32.mrf.mxu0  ;;  %v296_v6 = vpop.f32.mrf.mxu1 }
  0xe9   :  { %497 = vst [vmem:[%s911_s3 + $0x18] sm:$0xff] %v465_v3  ;;  %513 = vst [vmem:[%s911_s3 + $0x98] sm:$0xff] %v481_v4  ;;  %v463_v7 = vadd.f32 %v778_v56, %v232_v5  ;;  %v479_v8 = vadd.f32 %v778_v56, %v296_v6 }
  0xea   :  { %v585_v9 = vpop.f32.mrf.mxu0  ;;  %v601_v10 = vpop.f32.mrf.mxu1 }
  0xeb   :  { %495 = vst [vmem:[%s911_s3 + $0x8] sm:$0xff] %v463_v7  ;;  %511 = vst [vmem:[%s911_s3 + $0x88] sm:$0xff] %v479_v8  ;;  %v468_v11 = vadd.f32 %v585_v9, %v778_v56  ;;  %v484_v12 = vadd.f32 %v601_v10, %v778_v56 }
  0xec   :  { %v245_v13 = vpop.f32.mrf.mxu0  ;;  %v309_v14 = vpop.f32.mrf.mxu1 }
  0xed   :  { %500 = vst [vmem:[%s911_s3 + $0x30] sm:$0xff] %v468_v11  ;;  %516 = vst [vmem:[%s911_s3 + $0xb0] sm:$0xff] %v484_v12  ;;  %v466_v15 = vadd.f32 %v778_v56, %v245_v13  ;;  %v482_v16 = vadd.f32 %v778_v56, %v309_v14 }
  0xee   :  { %v586_v17 = vpop.f32.mrf.mxu0  ;;  %v602_v18 = vpop.f32.mrf.mxu1 }
  0xef   :  { %498 = vst [vmem:[%s911_s3 + $0x20] sm:$0xff] %v466_v15  ;;  %514 = vst [vmem:[%s911_s3 + $0xa0] sm:$0xff] %v482_v16  ;;  %v469_v19 = vadd.f32 %v586_v17, %v778_v56  ;;  %v485_v20 = vadd.f32 %v602_v18, %v778_v56 }
  0xf0   :  { %v248_v21 = vpop.f32.mrf.mxu0  ;;  %v312_v22 = vpop.f32.mrf.mxu1 }
  0xf1   :  { %501 = vst [vmem:[%s911_s3 + $0x38] sm:$0xff] %v469_v19  ;;  %517 = vst [vmem:[%s911_s3 + $0xb8] sm:$0xff] %v485_v20  ;;  %v467_v23 = vadd.f32 %v778_v56, %v248_v21  ;;  %v483_v24 = vadd.f32 %v778_v56, %v312_v22 }
  0xf2   :  { %v589_v25 = vpop.f32.mrf.mxu0  ;;  %v605_v26 = vpop.f32.mrf.mxu1 }
  0xf3   :  { %499 = vst [vmem:[%s911_s3 + $0x28] sm:$0xff] %v467_v23  ;;  %515 = vst [vmem:[%s911_s3 + $0xa8] sm:$0xff] %v483_v24  ;;  %v472_v27 = vadd.f32 %v589_v25, %v778_v56  ;;  %v488_v28 = vadd.f32 %v605_v26, %v778_v56 }
  0xf4   :  { %v261_v29 = vpop.f32.mrf.mxu0  ;;  %v325_v30 = vpop.f32.mrf.mxu1 }
  0xf5   :  { %504 = vst [vmem:[%s911_s3 + $0x50] sm:$0xff] %v472_v27  ;;  %520 = vst [vmem:[%s911_s3 + $0xd0] sm:$0xff] %v488_v28  ;;  %v470_v31 = vadd.f32 %v778_v56, %v261_v29  ;;  %v486_v32 = vadd.f32 %v778_v56, %v325_v30 }
  0xf6   :  { %v590_v33 = vpop.f32.mrf.mxu0  ;;  %v606_v34 = vpop.f32.mrf.mxu1 }
  0xf7   :  { %502 = vst [vmem:[%s911_s3 + $0x40] sm:$0xff] %v470_v31  ;;  %518 = vst [vmem:[%s911_s3 + $0xc0] sm:$0xff] %v486_v32  ;;  %v473_v35 = vadd.f32 %v590_v33, %v778_v56  ;;  %v489_v36 = vadd.f32 %v606_v34, %v778_v56 }
  0xf8   :  { %v264_v37 = vpop.f32.mrf.mxu0  ;;  %v328_v38 = vpop.f32.mrf.mxu1 }
  0xf9   :  { %505 = vst [vmem:[%s911_s3 + $0x58] sm:$0xff] %v473_v35  ;;  %521 = vst [vmem:[%s911_s3 + $0xd8] sm:$0xff] %v489_v36  ;;  %v471_v39 = vadd.f32 %v778_v56, %v264_v37  ;;  %v487_v40 = vadd.f32 %v778_v56, %v328_v38 }
  0xfa   :  { %v593_v41 = vpop.f32.mrf.mxu0  ;;  %v609_v42 = vpop.f32.mrf.mxu1 }
  0xfb   :  { %503 = vst [vmem:[%s911_s3 + $0x48] sm:$0xff] %v471_v39  ;;  %519 = vst [vmem:[%s911_s3 + $0xc8] sm:$0xff] %v487_v40  ;;  %v476_v43 = vadd.f32 %v593_v41, %v778_v56  ;;  %v492_v44 = vadd.f32 %v609_v42, %v778_v56 }
  0xfc   :  { %v277_v45 = vpop.f32.mrf.mxu0  ;;  %v341_v46 = vpop.f32.mrf.mxu1 }
  0xfd   :  { %508 = vst [vmem:[%s911_s3 + $0x70] sm:$0xff] %v476_v43  ;;  %524 = vst [vmem:[%s911_s3 + $0xf0] sm:$0xff] %v492_v44  ;;  %v474_v47 = vadd.f32 %v778_v56, %v277_v45  ;;  %v490_v48 = vadd.f32 %v778_v56, %v341_v46 }
  0xfe   :  { %v594_v49 = vpop.f32.mrf.mxu0  ;;  %v610_v50 = vpop.f32.mrf.mxu1 }
  0xff   :  { %506 = vst [vmem:[%s911_s3 + $0x60] sm:$0xff] %v474_v47  ;;  %522 = vst [vmem:[%s911_s3 + $0xe0] sm:$0xff] %v490_v48  ;;  %v477_v51 = vadd.f32 %v594_v49, %v778_v56  ;;  %v493_v52 = vadd.f32 %v610_v50, %v778_v56 }
 0x100   :  { %v280_v53 = vpop.f32.mrf.mxu0  ;;  %v344_v54 = vpop.f32.mrf.mxu1 }
 0x101   :  { %509 = vst [vmem:[%s911_s3 + $0x78] sm:$0xff] %v477_v51  ;;  %525 = vst [vmem:[%s911_s3 + $0xf8] sm:$0xff] %v493_v52  ;;  %v475_v55 = vadd.f32 %v778_v56, %v280_v53  ;;  %v491_v57 = vadd.f32 %v778_v56, %v344_v54 }
 0x103   :  { %507 = vst [vmem:[%s911_s3 + $0x68] sm:$0xff] %v475_v55  ;;  %523 = vst [vmem:[%s911_s3 + $0xe8] sm:$0xff] %v491_v57 }

// kernel: lstm_model_forward.6
= control target key start
LH: loop header
LB: loop body
LE: loop exit
PB: predicated region body
PF: predicated region fallthrough
CT: control target
= control target key end

     0   :  { %s1582_s12 = smov 0   ;;  %s1584_s13 = smov 0   ;;  %s2074_s0 = inlined_call_operand.vmem [shape: f32[256,128], index: 0, kind: input, shape index: {}]   ;;  %s2075_s1 = inlined_call_operand.vmem [shape: bf16[128,512], index: 1, kind: input, shape index: {}]   ;;  %s2076_s2 = inlined_call_operand.vmem [shape: f32[1,512], index: 2, kind: input, shape index: {}]   ;;  %s2077_s3 = inlined_call_operand.vmem [shape: f32[256,512], index: 3, kind: output, shape index: {}]  }
   0x1   :  { %s1586_s14 = smov 0   ;;  %s1588_s15 = smov 0  }
   0x2   :  { %s1590_s16 = smov 0  }
   0x3 LB: > { %s28_s17 = sadd.s32 1, %s1555_s15  ;;  %s1405_s18 = sadd.s32 4294967295, %s1559_s16   ;;  %s1559_s16 = sphi %s1590_s16, %s13_s16   ;;  %s1555_s15 = sphi %s1588_s15, %s2082_s15   ;;  %s1551_s14 = sphi %s1586_s14, %s2081_s14   ;;  %s1547_s13 = sphi %s1584_s13, %s2080_s13   ;;  %s1543_s12 = sphi %s1582_s12, %s2079_s12  }
   0x4   : > { %p30_p0 = scmp.ge.s32.totalorder %s28_s17, 2  ;;  %p76_p1 = scmp.ne.s32.totalorder %s1547_s13, %s1543_s12 }
   0x5   : > { %p77_p2 = scmp.eq.s32.totalorder %s1559_s16, 0  ;;  %p134_p4 = scmp.eq.s32.totalorder %s1405_s18, 1 }
   0x6   : > { %s2084_s17 = smov (%p30_p0, %s28_s17), 0  ;;  %s69_s20 = sadd.s32 1, %s1547_s13 }
   0x7   : > { %p78_p3 = por %p77_p2, %p76_p1  ;;  %s65_s19 = ssub.s32 %s1555_s15, %s2084_s17 }
   0x8   : > { %p67_p5 = scmp.eq.s32.totalorder %s65_s19, 0  ;;  %p1617_p6 = por %p134_p4, %p76_p1 }
   0x9   : > { %p1409_p7 = scmp.ge.s32.totalorder %s1559_s16, 2 }
   0xa   : > { %s1622_s22 = scalar_select %p67_p5, %s1547_s13, %s69_s20  }
   0xb   : > { %168 = sbr.rel (%p1409_p7) target bundleno = 28 (0x1c), region = 20 }
  0x10   : > { %171 = sbr.rel (!%p78_p3) target bundleno = 28 (0x1c), region = 24  ;;  %s173_s23 = sand.u32 (%p78_p3), 1, %s1547_s13  }
  0x11   : > { %s1438_s24 = sshll.u32 (%p78_p3), %s1555_s15, 3  ;;  %s1410_s25 = sshll.u32 (%p78_p3), %s173_s23, 7 }
  0x12   : > { %s1630_s28 = scalar_lea.vmem (%p78_p3), %s2075_s1, %s1438_s24  ;;  %s175_s29 = scalar_lea.vmem (%p78_p3), [#allocation3], %s1410_s25 }
  0x13   : > { %v240_v0 = vld [vmem:[%s1630_s28] sm:$0xff] (%p78_p3)  ;;  %v242_v1 = vld [vmem:[%s1630_s28 + $0x10] sm:$0xff] (%p78_p3) }
  0x14   : > { %v244_v2 = vld [vmem:[%s1630_s28 + $0x20] sm:$0xff] (%p78_p3)  ;;  %241 = vst [vmem:[%s175_s29] sm:$0xff] (%p78_p3), %v240_v0  ;;  %243 = vst [vmem:[%s175_s29 + $0x8] sm:$0xff] (%p78_p3), %v242_v1  ;;  %v246_v3 = vld [vmem:[%s1630_s28 + $0x30] sm:$0xff] (%p78_p3) }
  0x15   : > { %245 = vst [vmem:[%s175_s29 + $0x10] sm:$0xff] %v244_v2  ;;  %v248_v4 = vld [vmem:[%s1630_s28 + $0x40] sm:$0xff]  ;;  %v250_v5 = vld [vmem:[%s1630_s28 + $0x50] sm:$0xff]  ;;  %247 = vst [vmem:[%s175_s29 + $0x18] sm:$0xff] %v246_v3 }
  0x16   : > { %249 = vst [vmem:[%s175_s29 + $0x20] sm:$0xff] %v248_v4  ;;  %251 = vst [vmem:[%s175_s29 + $0x28] sm:$0xff] %v250_v5  ;;  %v252_v6 = vld [vmem:[%s1630_s28 + $0x60] sm:$0xff]  ;;  %v254_v7 = vld [vmem:[%s1630_s28 + $0x70] sm:$0xff] }
  0x17   : > { %v256_v8 = vld [vmem:[%s1630_s28 + $0x80] sm:$0xff]  ;;  %253 = vst [vmem:[%s175_s29 + $0x30] sm:$0xff] %v252_v6  ;;  %255 = vst [vmem:[%s175_s29 + $0x38] sm:$0xff] %v254_v7  ;;  %v258_v9 = vld [vmem:[%s1630_s28 + $0x90] sm:$0xff] }
  0x18   : > { %257 = vst [vmem:[%s175_s29 + $0x40] sm:$0xff] %v256_v8  ;;  %v260_v10 = vld [vmem:[%s1630_s28 + $0xa0] sm:$0xff]  ;;  %v262_v11 = vld [vmem:[%s1630_s28 + $0xb0] sm:$0xff]  ;;  %259 = vst [vmem:[%s175_s29 + $0x48] sm:$0xff] %v258_v9 }
  0x19   : > { %261 = vst [vmem:[%s175_s29 + $0x50] sm:$0xff] %v260_v10  ;;  %263 = vst [vmem:[%s175_s29 + $0x58] sm:$0xff] %v262_v11  ;;  %v264_v12 = vld [vmem:[%s1630_s28 + $0xc0] sm:$0xff]  ;;  %v266_v13 = vld [vmem:[%s1630_s28 + $0xd0] sm:$0xff] }
  0x1a   : > { %v268_v14 = vld [vmem:[%s1630_s28 + $0xe0] sm:$0xff]  ;;  %265 = vst [vmem:[%s175_s29 + $0x60] sm:$0xff] %v264_v12  ;;  %267 = vst [vmem:[%s175_s29 + $0x68] sm:$0xff] %v266_v13  ;;  %v270_v15 = vld [vmem:[%s1630_s28 + $0xf0] sm:$0xff] }
  0x1b   : > { %269 = vst [vmem:[%s175_s29 + $0x70] sm:$0xff] %v268_v14  ;;  %271 = vst [vmem:[%s175_s29 + $0x78] sm:$0xff] %v270_v15 }
  0x1c PF: > { %p1413_p8 = scmp.ge.s32.totalorder %s1559_s16, 1  ;;  %p284_p9 = scmp.lt.s32.totalorder %s1559_s16, 3 }
  0x1e   : > { %p285_p10 = pnand %p1413_p8, %p284_p9 }
  0x1f   : > { %s291_s30 = sand.u32 (!%p285_p10), 1, %s1543_s12   ;;  %s1416_s24 = sshll.u32 (!%p285_p10), %s1551_s14, 1 }
  0x20   : > { %288 = sbr.rel (%p285_p10) target bundleno = 346 (0x15a), region = 66  ;;  %s1414_s4 = sshll.u32 (!%p285_p10), %s291_s30, 7 }
  0x21   : > { %s1655_s5 = scalar_lea.vmem (!%p285_p10), [#allocation3], %s1414_s4  ;;  %p337_p11 = scmp.lt.s32.totalorder (!%p285_p10), %s1416_s24, 3 }
  0x22   : > { %s1415_s28 = sshll.u32 (!%p285_p10), %s291_s30, 9 }
  0x23   : > { %s1795_s29 = scalar_lea.vmem (!%p285_p10), [#allocation4], %s1415_s28 }
  0x25   : > { %v1561_v16 = vmov 0   ;;  %v1497_v17 = vld [vmem:[%s1655_s5 + $0x74] ss:$8 sps:$4 sm:$0xff]   ;;  %v1499_v18 = vld [vmem:[%s1655_s5 + $0x70] ss:$8 sps:$4 sm:$0xff]   ;;  %v476_v32 = vld [vmem:[%s2074_s0] sm:$0xff] }
  0x26   : > { %652 = vmatprep.mubr.bf16.mxu0 %v1561_v16  ;;  %732 = vmatprep.mubr.bf16.mxu1 %v1561_v16  ;;  %v1500_v19 = vld [vmem:[%s1655_s5 + $0x64] ss:$8 sps:$4 sm:$0xff]   ;;  %v1502_v20 = vld [vmem:[%s1655_s5 + $0x60] ss:$8 sps:$4 sm:$0xff]   ;;  %v1503_v21 = vld [vmem:[%s1655_s5 + $0x54] ss:$8 sps:$4 sm:$0xff]  }
  0x27   : > { %620 = vmatprep.subr.bf16.mxu0 %v1497_v17  ;;  %1440 = vmatprep.subr.bf16.mxu1 %v1497_v17  ;;  %v1505_v22 = vld [vmem:[%s1655_s5 + $0x50] ss:$8 sps:$4 sm:$0xff]   ;;  %v1506_v23 = vld [vmem:[%s1655_s5 + $0x44] ss:$8 sps:$4 sm:$0xff]   ;;  %v1508_v24 = vld [vmem:[%s1655_s5 + $0x40] ss:$8 sps:$4 sm:$0xff]  }
  0x28   : > { %621 = vmatpush1.bf16.msra.mxu0 %v1499_v18  ;;  %1448 = vmatpush1.bf16.msra.mxu1 %v1499_v18  ;;  %v1509_v25 = vld [vmem:[%s1655_s5 + $0x34] ss:$8 sps:$4 sm:$0xff]   ;;  %v1511_v26 = vld [vmem:[%s1655_s5 + $0x30] ss:$8 sps:$4 sm:$0xff]   ;;  %v1512_v27 = vld [vmem:[%s1655_s5 + $0x24] ss:$8 sps:$4 sm:$0xff]  }
  0x29   : > { %622 = vmatprep.subr.bf16.mxu0 %v1500_v19  ;;  %1441 = vmatprep.subr.bf16.mxu1 %v1500_v19  ;;  %v1514_v28 = vld [vmem:[%s1655_s5 + $0x20] ss:$8 sps:$4 sm:$0xff]   ;;  %v1515_v29 = vld [vmem:[%s1655_s5 + $0x14] ss:$8 sps:$4 sm:$0xff]   ;;  %v1517_v30 = vld [vmem:[%s1655_s5 + $0x10] ss:$8 sps:$4 sm:$0xff]  }
  0x2a   : > { %v1518_v31 = vld [vmem:[%s1655_s5 + $0x4] ss:$8 sps:$4 sm:$0xff]   ;;  %v1520_v34 = vld [vmem:[%s1655_s5] ss:$8 sps:$4 sm:$0xff]   ;;  %v478_v39 = vld [vmem:[%s2074_s0 + $0x10] sm:$0xff]  ;;  %s2086_s24 = smov (!%p337_p11, %s1416_s24), 3 }
  0x2b   : > { %v477_v33 = vld [vmem:[%s2074_s0 + $0x8] sm:$0xff]  ;;  %v492_v35 = vld [vmem:[%s2074_s0 + $0x80] sm:$0xff]  ;;  %v479_v40 = vld [vmem:[%s2074_s0 + $0x18] sm:$0xff]  ;;  %s339_s27 = scalar_lea.vmem %s2076_s2, %s2086_s24  ;;  %s1439_s12 = sshll.u32 (%p1617_p6), %s1551_s14, 4 }
  0x2c   : > { %623 = vmatpush1.bf16.msra.mxu0 %v1502_v20  ;;  %1449 = vmatpush1.bf16.msra.mxu1 %v1502_v20  ;;  %v493_v36 = vld [vmem:[%s2074_s0 + $0x88] sm:$0xff]  ;;  %v508_v37 = vpack.c.bf16 %v477_v33, %v476_v32  ;;  %v494_v41 = vld [vmem:[%s2074_s0 + $0x90] sm:$0xff]  ;;  %v495_v42 = vld [vmem:[%s2074_s0 + $0x98] sm:$0xff]  ;;  %v509_v43 = vpack.c.bf16 %v479_v40, %v478_v39  ;;  %s1932_s5 = scalar_lea.vmem (%p1617_p6), %s2077_s3, %s1439_s12 }
  0x2d   : > { %624 = vmatprep.subr.bf16.mxu0 %v1503_v21  ;;  %1442 = vmatprep.subr.bf16.mxu1 %v1503_v21  ;;  %v516_v38 = vpack.c.bf16 %v493_v36, %v492_v35  ;;  %v517_v44 = vpack.c.bf16 %v495_v42, %v494_v41  ;;  %v480_v45 = vld [vmem:[%s2074_s0 + $0x20] sm:$0xff]  ;;  %v481_v46 = vld [vmem:[%s2074_s0 + $0x28] sm:$0xff]  ;;  %v482_v51 = vld [vmem:[%s2074_s0 + $0x30] sm:$0xff] }
  0x2e   : > { %v496_v47 = vld [vmem:[%s2074_s0 + $0xa0] sm:$0xff]  ;;  %v497_v48 = vld [vmem:[%s2074_s0 + $0xa8] sm:$0xff]  ;;  %v510_v49 = vpack.c.bf16 %v481_v46, %v480_v45  ;;  %v483_v52 = vld [vmem:[%s2074_s0 + $0x38] sm:$0xff] }
  0x2f   : > { %v518_v50 = vpack.c.bf16 %v497_v48, %v496_v47  ;;  %v498_v53 = vld [vmem:[%s2074_s0 + $0xb0] sm:$0xff]  ;;  %v499_v54 = vld [vmem:[%s2074_s0 + $0xb8] sm:$0xff]  ;;  %v511_v55 = vpack.c.bf16 %v483_v52, %v482_v51  ;;  %v484_v57 = vld [vmem:[%s2074_s0 + $0x40] sm:$0xff] }
  0x30   : > { %625 = vmatpush1.bf16.msra.mxu0 %v1505_v22  ;;  %1450 = vmatpush1.bf16.msra.mxu1 %v1505_v22  ;;  %v519_v56 = vpack.c.bf16 %v499_v54, %v498_v53  ;;  %v485_v58 = vld [vmem:[%s2074_s0 + $0x48] sm:$0xff]  ;;  %v500_v59 = vld [vmem:[%s2074_s0 + $0xc0] sm:$0xff]  ;;  %v486_v63 = vld [vmem:[%s2074_s0 + $0x50] sm:$0xff] }
  0x31   : > { %626 = vmatprep.subr.bf16.mxu0 %v1506_v23  ;;  %1443 = vmatprep.subr.bf16.mxu1 %v1506_v23  ;;  %v501_v60 = vld [vmem:[%s2074_s0 + $0xc8] sm:$0xff]  ;;  %v512_v61 = vpack.c.bf16 %v485_v58, %v484_v57  ;;  %v487_v0 = vld [vmem:[%s2074_s0 + $0x58] sm:$0xff]  ;;  %v502_v1 = vld [vmem:[%s2074_s0 + $0xd0] sm:$0xff] }
  0x32   : > { %v520_v62 = vpack.c.bf16 %v501_v60, %v500_v59  ;;  %v503_v2 = vld [vmem:[%s2074_s0 + $0xd8] sm:$0xff]  ;;  %v513_v3 = vpack.c.bf16 %v487_v0, %v486_v63  ;;  %v488_v5 = vld [vmem:[%s2074_s0 + $0x60] sm:$0xff]  ;;  %v489_v6 = vld [vmem:[%s2074_s0 + $0x68] sm:$0xff] }
  0x33   : > { %v521_v4 = vpack.c.bf16 %v503_v2, %v502_v1  ;;  %v504_v7 = vld [vmem:[%s2074_s0 + $0xe0] sm:$0xff]  ;;  %v505_v8 = vld [vmem:[%s2074_s0 + $0xe8] sm:$0xff]  ;;  %v514_v9 = vpack.c.bf16 %v489_v6, %v488_v5  ;;  %v490_v11 = vld [vmem:[%s2074_s0 + $0x70] sm:$0xff] }
  0x34   : > { %627 = vmatpush1.bf16.msra.mxu0 %v1508_v24  ;;  %1451 = vmatpush1.bf16.msra.mxu1 %v1508_v24  ;;  %v522_v10 = vpack.c.bf16 %v505_v8, %v504_v7  ;;  %v491_v12 = vld [vmem:[%s2074_s0 + $0x78] sm:$0xff]  ;;  %v506_v13 = vld [vmem:[%s2074_s0 + $0xf0] sm:$0xff]  ;;  %v1008_v20 = vld [vmem:[%s339_s27] sm:$0x3] }
  0x35   : > { %628 = vmatprep.subr.bf16.mxu0 %v1509_v25  ;;  %1444 = vmatprep.subr.bf16.mxu1 %v1509_v25  ;;  %v507_v14 = vld [vmem:[%s2074_s0 + $0xf8] sm:$0xff]  ;;  %v515_v15 = vpack.c.bf16 %v491_v12, %v490_v11 }
  0x36   : > { %v523_v17 = vpack.c.bf16 %v507_v14, %v506_v13 }
  0x38   : > { %629 = vmatpush1.bf16.msra.mxu0 %v1511_v26  ;;  %1452 = vmatpush1.bf16.msra.mxu1 %v1511_v26 }
  0x39   : > { %630 = vmatprep.subr.bf16.mxu0 %v1512_v27  ;;  %1445 = vmatprep.subr.bf16.mxu1 %v1512_v27 }
  0x3c   : > { %631 = vmatpush1.bf16.msra.mxu0 %v1514_v28  ;;  %1453 = vmatpush1.bf16.msra.mxu1 %v1514_v28 }
  0x3d   : > { %632 = vmatprep.subr.bf16.mxu0 %v1515_v29  ;;  %1446 = vmatprep.subr.bf16.mxu1 %v1515_v29 }
  0x40   : > { %633 = vmatpush1.bf16.msra.mxu0 %v1517_v30  ;;  %1454 = vmatpush1.bf16.msra.mxu1 %v1517_v30 }
  0x41   : > { %634 = vmatprep.subr.bf16.mxu0 %v1518_v31  ;;  %1447 = vmatprep.subr.bf16.mxu1 %v1518_v31 }
  0x44   : > { %635 = vmatpush1.bf16.msra.mxu0 %v1520_v34  ;;  %1455 = vmatpush1.bf16.msra.mxu1 %v1520_v34 }
  0x47   : > { %653 = vmatmul.mubr.bf16.vlgmr.msra.gmra.mxu0 %v508_v37  ;;  %733 = vmatmul.mubr.bf16.vlgmr.msra.gmra.mxu1 %v516_v38 }
  0x48   : > { %662 = vmatprep.mubr.bf16.mxu0 %v1561_v16  ;;  %742 = vmatprep.mubr.bf16.mxu1 %v1561_v16 }
  0x4f   : > { %663 = vmatmul.mubr.bf16.gmra.mxu0 %v509_v43  ;;  %743 = vmatmul.mubr.bf16.gmra.mxu1 %v517_v44 }
  0x50   : > { %672 = vmatprep.mubr.bf16.mxu0 %v1561_v16  ;;  %752 = vmatprep.mubr.bf16.mxu1 %v1561_v16 }
  0x57   : > { %673 = vmatmul.mubr.bf16.gmra.mxu0 %v510_v49  ;;  %753 = vmatmul.mubr.bf16.gmra.mxu1 %v518_v50 }
  0x58   : > { %682 = vmatprep.mubr.bf16.mxu0 %v1561_v16  ;;  %762 = vmatprep.mubr.bf16.mxu1 %v1561_v16 }
  0x5f   : > { %683 = vmatmul.mubr.bf16.gmra.mxu0 %v511_v55  ;;  %763 = vmatmul.mubr.bf16.gmra.mxu1 %v519_v56 }
  0x60   : > { %692 = vmatprep.mubr.bf16.mxu0 %v1561_v16  ;;  %772 = vmatprep.mubr.bf16.mxu1 %v1561_v16 }
  0x67   : > { %693 = vmatmul.mubr.bf16.gmra.mxu0 %v512_v61  ;;  %773 = vmatmul.mubr.bf16.gmra.mxu1 %v520_v62 }
  0x68   : > { %702 = vmatprep.mubr.bf16.mxu0 %v1561_v16  ;;  %782 = vmatprep.mubr.bf16.mxu1 %v1561_v16 }
  0x6f   : > { %703 = vmatmul.mubr.bf16.gmra.mxu0 %v513_v3  ;;  %783 = vmatmul.mubr.bf16.gmra.mxu1 %v521_v4 }
  0x70   : > { %712 = vmatprep.mubr.bf16.mxu0 %v1561_v16  ;;  %792 = vmatprep.mubr.bf16.mxu1 %v1561_v16 }
  0x77   : > { %713 = vmatmul.mubr.bf16.gmra.mxu0 %v514_v9  ;;  %793 = vmatmul.mubr.bf16.gmra.mxu1 %v522_v10 }
  0x78   : > { %722 = vmatprep.mubr.bf16.mxu0 %v1561_v16  ;;  %802 = vmatprep.mubr.bf16.mxu1 %v1561_v16  ;;  %v1010_v16 = vlaneseq }
  0x7a   : > { %v1011_v18 = vshrl.u32 %v1010_v16, 7 }
  0x7c   : > { %v1012_v19 = vsub.s32 0, %v1011_v18  ;;  %v1016_v21 = vsub.s32 1, %v1011_v18 }
  0x7e   : > { %v1789_v22 = vrot.slane %v1008_v20, %v1012_v19  ;;  %v1791_v23 = vrot.slane %v1008_v20, %v1016_v21 }
  0x7f   : > { %723 = vmatmul.mubr.bf16.gmra.mxu0 %v515_v15  ;;  %803 = vmatmul.mubr.bf16.gmra.mxu1 %v523_v17 }
 0x107   : > { %v654_v24 = vpop.f32.mrf.mxu0  ;;  %v734_v25 = vpop.f32.mrf.mxu1 }
 0x108   : > { %v1020_v26 = vadd.f32 %v1789_v22, %v654_v24  ;;  %v1052_v27 = vadd.f32 %v1789_v22, %v734_v25 }
 0x109   : > { %v656_v28 = vpop.f32.mrf.mxu0  ;;  %v736_v29 = vpop.f32.mrf.mxu1 }
 0x10a   : > { %1084 = vst [vmem:[%s1795_s29] sm:$0xff] %v1020_v26  ;;  %1116 = vst [vmem:[%s1795_s29 + $0x100] sm:$0xff] %v1052_v27  ;;  %v1021_v30 = vadd.f32 %v1791_v23, %v656_v28  ;;  %v1053_v31 = vadd.f32 %v1791_v23, %v736_v29 }
 0x10b   : > { %v658_v32 = vpop.f32.mrf.mxu0  ;;  %v738_v33 = vpop.f32.mrf.mxu1 }
 0x10c   : > { %1085 = vst [vmem:[%s1795_s29 + $0x8] sm:$0xff] %v1021_v30  ;;  %1117 = vst [vmem:[%s1795_s29 + $0x108] sm:$0xff] %v1053_v31  ;;  %v1022_v34 = vadd.f32 %v1789_v22, %v658_v32  ;;  %v1054_v35 = vadd.f32 %v1789_v22, %v738_v33 }
 0x10d   : > { %v660_v36 = vpop.f32.mrf.mxu0  ;;  %v740_v37 = vpop.f32.mrf.mxu1 }
 0x10e   : > { %1086 = vst [vmem:[%s1795_s29 + $0x10] sm:$0xff] %v1022_v34  ;;  %1118 = vst [vmem:[%s1795_s29 + $0x110] sm:$0xff] %v1054_v35  ;;  %v1023_v38 = vadd.f32 %v1791_v23, %v660_v36  ;;  %v1055_v39 = vadd.f32 %v1791_v23, %v740_v37 }
 0x10f   : > { %v664_v40 = vpop.f32.mrf.mxu0  ;;  %v744_v41 = vpop.f32.mrf.mxu1 }
 0x110   : > { %1087 = vst [vmem:[%s1795_s29 + $0x18] sm:$0xff] %v1023_v38  ;;  %1119 = vst [vmem:[%s1795_s29 + $0x118] sm:$0xff] %v1055_v39  ;;  %v1024_v42 = vadd.f32 %v1789_v22, %v664_v40  ;;  %v1056_v43 = vadd.f32 %v1789_v22, %v744_v41 }
 0x111   : > { %v666_v44 = vpop.f32.mrf.mxu0  ;;  %v746_v45 = vpop.f32.mrf.mxu1 }
 0x112   : > { %1088 = vst [vmem:[%s1795_s29 + $0x20] sm:$0xff] %v1024_v42  ;;  %1120 = vst [vmem:[%s1795_s29 + $0x120] sm:$0xff] %v1056_v43  ;;  %v1025_v46 = vadd.f32 %v1791_v23, %v666_v44  ;;  %v1057_v47 = vadd.f32 %v1791_v23, %v746_v45 }
 0x113   : > { %v668_v48 = vpop.f32.mrf.mxu0  ;;  %v748_v49 = vpop.f32.mrf.mxu1 }
 0x114   : > { %1089 = vst [vmem:[%s1795_s29 + $0x28] sm:$0xff] %v1025_v46  ;;  %1121 = vst [vmem:[%s1795_s29 + $0x128] sm:$0xff] %v1057_v47  ;;  %v1026_v50 = vadd.f32 %v1789_v22, %v668_v48  ;;  %v1058_v51 = vadd.f32 %v1789_v22, %v748_v49 }
 0x115   : > { %v670_v52 = vpop.f32.mrf.mxu0  ;;  %v750_v53 = vpop.f32.mrf.mxu1 }
 0x116   : > { %1090 = vst [vmem:[%s1795_s29 + $0x30] sm:$0xff] %v1026_v50  ;;  %1122 = vst [vmem:[%s1795_s29 + $0x130] sm:$0xff] %v1058_v51  ;;  %v1027_v54 = vadd.f32 %v1791_v23, %v670_v52  ;;  %v1059_v55 = vadd.f32 %v1791_v23, %v750_v53 }
 0x117   : > { %v674_v56 = vpop.f32.mrf.mxu0  ;;  %v754_v57 = vpop.f32.mrf.mxu1 }
 0x118   : > { %1091 = vst [vmem:[%s1795_s29 + $0x38] sm:$0xff] %v1027_v54  ;;  %1123 = vst [vmem:[%s1795_s29 + $0x138] sm:$0xff] %v1059_v55  ;;  %v1028_v58 = vadd.f32 %v1789_v22, %v674_v56  ;;  %v1060_v59 = vadd.f32 %v1789_v22, %v754_v57 }
 0x119   : > { %v676_v60 = vpop.f32.mrf.mxu0  ;;  %v756_v61 = vpop.f32.mrf.mxu1 }
 0x11a   : > { %1092 = vst [vmem:[%s1795_s29 + $0x40] sm:$0xff] %v1028_v58  ;;  %1124 = vst [vmem:[%s1795_s29 + $0x140] sm:$0xff] %v1060_v59  ;;  %v1029_v62 = vadd.f32 %v1791_v23, %v676_v60  ;;  %v1061_v63 = vadd.f32 %v1791_v23, %v756_v61 }
 0x11b   : > { %v678_v0 = vpop.f32.mrf.mxu0  ;;  %v758_v1 = vpop.f32.mrf.mxu1 }
 0x11c   : > { %1093 = vst [vmem:[%s1795_s29 + $0x48] sm:$0xff] %v1029_v62  ;;  %1125 = vst [vmem:[%s1795_s29 + $0x148] sm:$0xff] %v1061_v63  ;;  %v1030_v2 = vadd.f32 %v1789_v22, %v678_v0  ;;  %v1062_v3 = vadd.f32 %v1789_v22, %v758_v1 }
 0x11d   : > { %v680_v4 = vpop.f32.mrf.mxu0  ;;  %v760_v5 = vpop.f32.mrf.mxu1 }
 0x11e   : > { %1094 = vst [vmem:[%s1795_s29 + $0x50] sm:$0xff] %v1030_v2  ;;  %1126 = vst [vmem:[%s1795_s29 + $0x150] sm:$0xff] %v1062_v3  ;;  %v1031_v6 = vadd.f32 %v1791_v23, %v680_v4  ;;  %v1063_v7 = vadd.f32 %v1791_v23, %v760_v5 }
 0x11f   : > { %v684_v8 = vpop.f32.mrf.mxu0  ;;  %v764_v9 = vpop.f32.mrf.mxu1 }
 0x120   : > { %1095 = vst [vmem:[%s1795_s29 + $0x58] sm:$0xff] %v1031_v6  ;;  %1127 = vst [vmem:[%s1795_s29 + $0x158] sm:$0xff] %v1063_v7  ;;  %v1032_v10 = vadd.f32 %v1789_v22, %v684_v8  ;;  %v1064_v11 = vadd.f32 %v1789_v22, %v764_v9 }
 0x121   : > { %v686_v12 = vpop.f32.mrf.mxu0  ;;  %v766_v13 = vpop.f32.mrf.mxu1 }
 0x122   : > { %1096 = vst [vmem:[%s1795_s29 + $0x60] sm:$0xff] %v1032_v10  ;;  %1128 = vst [vmem:[%s1795_s29 + $0x160] sm:$0xff] %v1064_v11  ;;  %v1033_v14 = vadd.f32 %v1791_v23, %v686_v12  ;;  %v1065_v15 = vadd.f32 %v1791_v23, %v766_v13 }
 0x123   : > { %v688_v17 = vpop.f32.mrf.mxu0  ;;  %v768_v16 = vpop.f32.mrf.mxu1 }
 0x124   : > { %1097 = vst [vmem:[%s1795_s29 + $0x68] sm:$0xff] %v1033_v14  ;;  %1129 = vst [vmem:[%s1795_s29 + $0x168] sm:$0xff] %v1065_v15  ;;  %v1034_v18 = vadd.f32 %v1789_v22, %v688_v17  ;;  %v1066_v19 = vadd.f32 %v1789_v22, %v768_v16 }
 0x125   : > { %v690_v20 = vpop.f32.mrf.mxu0  ;;  %v770_v21 = vpop.f32.mrf.mxu1 }
 0x126   : > { %1098 = vst [vmem:[%s1795_s29 + $0x70] sm:$0xff] %v1034_v18  ;;  %1130 = vst [vmem:[%s1795_s29 + $0x170] sm:$0xff] %v1066_v19  ;;  %v1035_v24 = vadd.f32 %v1791_v23, %v690_v20  ;;  %v1067_v25 = vadd.f32 %v1791_v23, %v770_v21 }
 0x127   : > { %v694_v26 = vpop.f32.mrf.mxu0  ;;  %v774_v27 = vpop.f32.mrf.mxu1 }
 0x128   : > { %1099 = vst [vmem:[%s1795_s29 + $0x78] sm:$0xff] %v1035_v24  ;;  %1131 = vst [vmem:[%s1795_s29 + $0x178] sm:$0xff] %v1067_v25  ;;  %v1036_v28 = vadd.f32 %v1789_v22, %v694_v26  ;;  %v1068_v29 = vadd.f32 %v1789_v22, %v774_v27 }
 0x129   : > { %v696_v30 = vpop.f32.mrf.mxu0  ;;  %v776_v31 = vpop.f32.mrf.mxu1 }
 0x12a   : > { %1100 = vst [vmem:[%s1795_s29 + $0x80] sm:$0xff] %v1036_v28  ;;  %1132 = vst [vmem:[%s1795_s29 + $0x180] sm:$0xff] %v1068_v29  ;;  %v1037_v32 = vadd.f32 %v1791_v23, %v696_v30  ;;  %v1069_v33 = vadd.f32 %v1791_v23, %v776_v31  ;;  %v1175_v28 = vld [vmem:[%s1795_s29 + $0x8] sm:$0xff] (%p1617_p6)  ;;  %v1177_v29 = vld [vmem:[%s1795_s29 + $0x10] sm:$0xff] (%p1617_p6) }
 0x12b   : > { %v698_v34 = vpop.f32.mrf.mxu0  ;;  %v778_v35 = vpop.f32.mrf.mxu1  ;;  %v1181_v30 = vld [vmem:[%s1795_s29 + $0x20] sm:$0xff] (%p1617_p6)  ;;  %v1183_v31 = vld [vmem:[%s1795_s29 + $0x28] sm:$0xff] (%p1617_p6)  ;;  %1176 = vst [vmem:[%s1932_s5 + $0x8] sm:$0xff] (%p1617_p6), %v1175_v28  ;;  %1178 = vst [vmem:[%s1932_s5 + $0x20] sm:$0xff] (%p1617_p6), %v1177_v29 }
 0x12c   : > { %1101 = vst [vmem:[%s1795_s29 + $0x88] sm:$0xff] %v1037_v32  ;;  %1133 = vst [vmem:[%s1795_s29 + $0x188] sm:$0xff] %v1069_v33  ;;  %v1038_v36 = vadd.f32 %v1789_v22, %v698_v34  ;;  %v1070_v37 = vadd.f32 %v1789_v22, %v778_v35  ;;  %v1185_v32 = vld [vmem:[%s1795_s29 + $0x30] sm:$0xff] (%p1617_p6)  ;;  %v1187_v33 = vld [vmem:[%s1795_s29 + $0x38] sm:$0xff] (%p1617_p6) }
 0x12d   : > { %v700_v38 = vpop.f32.mrf.mxu0  ;;  %v780_v39 = vpop.f32.mrf.mxu1  ;;  %1182 = vst [vmem:[%s1932_s5 + $0x40] sm:$0xff] (%p1617_p6), %v1181_v30  ;;  %1184 = vst [vmem:[%s1932_s5 + $0x48] sm:$0xff] (%p1617_p6), %v1183_v31  ;;  %v1189_v34 = vld [vmem:[%s1795_s29 + $0x40] sm:$0xff] (%p1617_p6)  ;;  %v1191_v35 = vld [vmem:[%s1795_s29 + $0x48] sm:$0xff] (%p1617_p6) }
 0x12e   : > { %1102 = vst [vmem:[%s1795_s29 + $0x90] sm:$0xff] %v1038_v36  ;;  %1134 = vst [vmem:[%s1795_s29 + $0x190] sm:$0xff] %v1070_v37  ;;  %v1039_v40 = vadd.f32 %v1791_v23, %v700_v38  ;;  %v1071_v41 = vadd.f32 %v1791_v23, %v780_v39  ;;  %v1193_v36 = vld [vmem:[%s1795_s29 + $0x50] sm:$0xff] (%p1617_p6)  ;;  %v1195_v37 = vld [vmem:[%s1795_s29 + $0x58] sm:$0xff] (%p1617_p6) }
 0x12f   : > { %v704_v42 = vpop.f32.mrf.mxu0  ;;  %v784_v43 = vpop.f32.mrf.mxu1  ;;  %1186 = vst [vmem:[%s1932_s5 + $0x60] sm:$0xff] (%p1617_p6), %v1185_v32  ;;  %1188 = vst [vmem:[%s1932_s5 + $0x68] sm:$0xff] (%p1617_p6), %v1187_v33  ;;  %v1197_v38 = vld [vmem:[%s1795_s29 + $0x60] sm:$0xff] (%p1617_p6)  ;;  %v1199_v39 = vld [vmem:[%s1795_s29 + $0x68] sm:$0xff] (%p1617_p6) }
 0x130   : > { %1103 = vst [vmem:[%s1795_s29 + $0x98] sm:$0xff] %v1039_v40  ;;  %1135 = vst [vmem:[%s1795_s29 + $0x198] sm:$0xff] %v1071_v41  ;;  %v1040_v44 = vadd.f32 %v1789_v22, %v704_v42  ;;  %v1072_v45 = vadd.f32 %v1789_v22, %v784_v43  ;;  %v1201_v40 = vld [vmem:[%s1795_s29 + $0x70] sm:$0xff] (%p1617_p6)  ;;  %v1203_v41 = vld [vmem:[%s1795_s29 + $0x78] sm:$0xff] (%p1617_p6) }
 0x131   : > { %v706_v46 = vpop.f32.mrf.mxu0  ;;  %v786_v47 = vpop.f32.mrf.mxu1  ;;  %1190 = vst [vmem:[%s1932_s5 + $0x80] sm:$0xff] (%p1617_p6), %v1189_v34  ;;  %1192 = vst [vmem:[%s1932_s5 + $0x88] sm:$0xff] (%p1617_p6), %v1191_v35  ;;  %v1205_v42 = vld [vmem:[%s1795_s29 + $0x80] sm:$0xff] (%p1617_p6) }
 0x132   : > { %1104 = vst [vmem:[%s1795_s29 + $0xa0] sm:$0xff] %v1040_v44  ;;  %1136 = vst [vmem:[%s1795_s29 + $0x1a0] sm:$0xff] %v1072_v45  ;;  %v1041_v48 = vadd.f32 %v1791_v23, %v706_v46  ;;  %v1073_v49 = vadd.f32 %v1791_v23, %v786_v47 }
 0x133   : > { %v708_v50 = vpop.f32.mrf.mxu0  ;;  %v788_v51 = vpop.f32.mrf.mxu1  ;;  %1194 = vst [vmem:[%s1932_s5 + $0xa0] sm:$0xff] (%p1617_p6), %v1193_v36  ;;  %1196 = vst [vmem:[%s1932_s5 + $0xa8] sm:$0xff] (%p1617_p6), %v1195_v37  ;;  %v1207_v43 = vld [vmem:[%s1795_s29 + $0x88] sm:$0xff] (%p1617_p6) }
 0x134   : > { %1105 = vst [vmem:[%s1795_s29 + $0xa8] sm:$0xff] %v1041_v48  ;;  %1137 = vst [vmem:[%s1795_s29 + $0x1a8] sm:$0xff] %v1073_v49  ;;  %v1042_v52 = vadd.f32 %v1789_v22, %v708_v50  ;;  %v1074_v53 = vadd.f32 %v1789_v22, %v788_v51 }
 0x135   : > { %v710_v54 = vpop.f32.mrf.mxu0  ;;  %v790_v55 = vpop.f32.mrf.mxu1  ;;  %1198 = vst [vmem:[%s1932_s5 + $0xc0] sm:$0xff] (%p1617_p6), %v1197_v38  ;;  %1200 = vst [vmem:[%s1932_s5 + $0xc8] sm:$0xff] (%p1617_p6), %v1199_v39  ;;  %v1209_v44 = vld [vmem:[%s1795_s29 + $0x90] sm:$0xff] (%p1617_p6) }
 0x136   : > { %1106 = vst [vmem:[%s1795_s29 + $0xb0] sm:$0xff] %v1042_v52  ;;  %1138 = vst [vmem:[%s1795_s29 + $0x1b0] sm:$0xff] %v1074_v53  ;;  %v1043_v56 = vadd.f32 %v1791_v23, %v710_v54  ;;  %v1075_v57 = vadd.f32 %v1791_v23, %v790_v55 }
 0x137   : > { %v714_v58 = vpop.f32.mrf.mxu0  ;;  %v794_v59 = vpop.f32.mrf.mxu1  ;;  %1202 = vst [vmem:[%s1932_s5 + $0xe0] sm:$0xff] (%p1617_p6), %v1201_v40  ;;  %1204 = vst [vmem:[%s1932_s5 + $0xe8] sm:$0xff] (%p1617_p6), %v1203_v41  ;;  %v1211_v45 = vld [vmem:[%s1795_s29 + $0x98] sm:$0xff] (%p1617_p6) }
 0x138   : > { %1107 = vst [vmem:[%s1795_s29 + $0xb8] sm:$0xff] %v1043_v56  ;;  %1139 = vst [vmem:[%s1795_s29 + $0x1b8] sm:$0xff] %v1075_v57  ;;  %v1044_v60 = vadd.f32 %v1789_v22, %v714_v58  ;;  %v1076_v61 = vadd.f32 %v1789_v22, %v794_v59  ;;  %v1237_v58 = vld [vmem:[%s1795_s29 + $0x100] sm:$0xff] (%p1617_p6)  ;;  %v1239_v59 = vld [vmem:[%s1795_s29 + $0x108] sm:$0xff] (%p1617_p6) }
 0x139   : > { %v716_v62 = vpop.f32.mrf.mxu0  ;;  %v796_v63 = vpop.f32.mrf.mxu1  ;;  %1206 = vst [vmem:[%s1932_s5 + $0x100] sm:$0xff] (%p1617_p6), %v1205_v42  ;;  %1208 = vst [vmem:[%s1932_s5 + $0x108] sm:$0xff] (%p1617_p6), %v1207_v43  ;;  %v1213_v46 = vld [vmem:[%s1795_s29 + $0xa0] sm:$0xff] (%p1617_p6) }
 0x13a   : > { %1108 = vst [vmem:[%s1795_s29 + $0xc0] sm:$0xff] %v1044_v60  ;;  %1140 = vst [vmem:[%s1795_s29 + $0x1c0] sm:$0xff] %v1076_v61  ;;  %v1045_v0 = vadd.f32 %v1791_v23, %v716_v62  ;;  %v1077_v1 = vadd.f32 %v1791_v23, %v796_v63  ;;  %v1241_v60 = vld [vmem:[%s1795_s29 + $0x110] sm:$0xff] (%p1617_p6)  ;;  %v1243_v61 = vld [vmem:[%s1795_s29 + $0x118] sm:$0xff] (%p1617_p6) }
 0x13b   : > { %v718_v2 = vpop.f32.mrf.mxu0  ;;  %v798_v3 = vpop.f32.mrf.mxu1  ;;  %1210 = vst [vmem:[%s1932_s5 + $0x120] sm:$0xff] (%p1617_p6), %v1209_v44  ;;  %1212 = vst [vmem:[%s1932_s5 + $0x128] sm:$0xff] (%p1617_p6), %v1211_v45  ;;  %v1215_v47 = vld [vmem:[%s1795_s29 + $0xa8] sm:$0xff] (%p1617_p6)  ;;  %v1245_v62 = vld [vmem:[%s1795_s29 + $0x120] sm:$0xff] (%p1617_p6) }
 0x13c   : > { %1109 = vst [vmem:[%s1795_s29 + $0xc8] sm:$0xff] %v1045_v0  ;;  %1141 = vst [vmem:[%s1795_s29 + $0x1c8] sm:$0xff] %v1077_v1  ;;  %v1046_v4 = vadd.f32 %v1789_v22, %v718_v2  ;;  %v1078_v5 = vadd.f32 %v1789_v22, %v798_v3  ;;  %v1247_v63 = vld [vmem:[%s1795_s29 + $0x128] sm:$0xff] (%p1617_p6)  ;;  %v1249_v0 = vld [vmem:[%s1795_s29 + $0x130] sm:$0xff] (%p1617_p6) }
 0x13d   : > { %v720_v6 = vpop.f32.mrf.mxu0  ;;  %v800_v7 = vpop.f32.mrf.mxu1  ;;  %1214 = vst [vmem:[%s1932_s5 + $0x140] sm:$0xff] (%p1617_p6), %v1213_v46  ;;  %v1217_v48 = vld [vmem:[%s1795_s29 + $0xb0] sm:$0xff] (%p1617_p6)  ;;  %1216 = vst [vmem:[%s1932_s5 + $0x148] sm:$0xff] (%p1617_p6), %v1215_v47  ;;  %v1251_v1 = vld [vmem:[%s1795_s29 + $0x138] sm:$0xff] (%p1617_p6) }
 0x13e   : > { %1110 = vst [vmem:[%s1795_s29 + $0xd0] sm:$0xff] %v1046_v4  ;;  %1142 = vst [vmem:[%s1795_s29 + $0x1d0] sm:$0xff] %v1078_v5  ;;  %v1047_v8 = vadd.f32 %v1791_v23, %v720_v6  ;;  %v1079_v9 = vadd.f32 %v1791_v23, %v800_v7  ;;  %v1253_v2 = vld [vmem:[%s1795_s29 + $0x140] sm:$0xff] (%p1617_p6)  ;;  %v1255_v3 = vld [vmem:[%s1795_s29 + $0x148] sm:$0xff] (%p1617_p6) }
 0x13f   : > { %v724_v10 = vpop.f32.mrf.mxu0  ;;  %v804_v11 = vpop.f32.mrf.mxu1  ;;  %v1219_v49 = vld [vmem:[%s1795_s29 + $0xb8] sm:$0xff] (%p1617_p6)  ;;  %1218 = vst [vmem:[%s1932_s5 + $0x160] sm:$0xff] (%p1617_p6), %v1217_v48  ;;  %1238 = vst [vmem:[%s1932_s5 + $0x200] sm:$0xff] (%p1617_p6), %v1237_v58  ;;  %v1257_v4 = vld [vmem:[%s1795_s29 + $0x150] sm:$0xff] (%p1617_p6) }
 0x140   : > { %1111 = vst [vmem:[%s1795_s29 + $0xd8] sm:$0xff] %v1047_v8  ;;  %1143 = vst [vmem:[%s1795_s29 + $0x1d8] sm:$0xff] %v1079_v9  ;;  %v1048_v12 = vadd.f32 %v1789_v22, %v724_v10  ;;  %v1080_v13 = vadd.f32 %v1789_v22, %v804_v11  ;;  %v1259_v5 = vld [vmem:[%s1795_s29 + $0x158] sm:$0xff] (%p1617_p6)  ;;  %v1261_v6 = vld [vmem:[%s1795_s29 + $0x160] sm:$0xff] (%p1617_p6) }
 0x141   : > { %v726_v14 = vpop.f32.mrf.mxu0  ;;  %v806_v15 = vpop.f32.mrf.mxu1  ;;  %1220 = vst [vmem:[%s1932_s5 + $0x168] sm:$0xff] (%p1617_p6), %v1219_v49  ;;  %v1221_v50 = vld [vmem:[%s1795_s29 + $0xc0] sm:$0xff] (%p1617_p6)  ;;  %1240 = vst [vmem:[%s1932_s5 + $0x208] sm:$0xff] (%p1617_p6), %v1239_v59  ;;  %v1263_v7 = vld [vmem:[%s1795_s29 + $0x168] sm:$0xff] (%p1617_p6) }
 0x142   : > { %1112 = vst [vmem:[%s1795_s29 + $0xe0] sm:$0xff] %v1048_v12  ;;  %1144 = vst [vmem:[%s1795_s29 + $0x1e0] sm:$0xff] %v1080_v13  ;;  %v1049_v17 = vadd.f32 %v1791_v23, %v726_v14  ;;  %v1081_v16 = vadd.f32 %v1791_v23, %v806_v15  ;;  %v1265_v8 = vld [vmem:[%s1795_s29 + $0x170] sm:$0xff] (%p1617_p6)  ;;  %v1267_v9 = vld [vmem:[%s1795_s29 + $0x178] sm:$0xff] (%p1617_p6) }
 0x143   : > { %v728_v18 = vpop.f32.mrf.mxu0  ;;  %v808_v19 = vpop.f32.mrf.mxu1  ;;  %v1223_v51 = vld [vmem:[%s1795_s29 + $0xc8] sm:$0xff] (%p1617_p6)  ;;  %1222 = vst [vmem:[%s1932_s5 + $0x180] sm:$0xff] (%p1617_p6), %v1221_v50  ;;  %1242 = vst [vmem:[%s1932_s5 + $0x220] sm:$0xff] (%p1617_p6), %v1241_v60  ;;  %v1269_v10 = vld [vmem:[%s1795_s29 + $0x180] sm:$0xff] (%p1617_p6) }
 0x144   : > { %1113 = vst [vmem:[%s1795_s29 + $0xe8] sm:$0xff] %v1049_v17  ;;  %1145 = vst [vmem:[%s1795_s29 + $0x1e8] sm:$0xff] %v1081_v16  ;;  %v1050_v20 = vadd.f32 %v1789_v22, %v728_v18  ;;  %v1082_v21 = vadd.f32 %v1789_v22, %v808_v19  ;;  %1154 = sbr.rel (!%p1617_p6) target bundleno = 346 (0x15a), region = 82  ;;  %v1173_v22 = vld [vmem:[%s1795_s29] sm:$0xff] (%p1617_p6)  ;;  %v1271_v11 = vld [vmem:[%s1795_s29 + $0x188] sm:$0xff] (%p1617_p6) }
 0x145   : > { %v730_v24 = vpop.f32.mrf.mxu0  ;;  %v810_v25 = vpop.f32.mrf.mxu1  ;;  %1174 = vst [vmem:[%s1932_s5] sm:$0xff] (%p1617_p6), %v1173_v22  ;;  %v1225_v52 = vld [vmem:[%s1795_s29 + $0xd0] sm:$0xff] (%p1617_p6)  ;;  %1224 = vst [vmem:[%s1932_s5 + $0x188] sm:$0xff] (%p1617_p6), %v1223_v51  ;;  %v1275_v13 = vld [vmem:[%s1795_s29 + $0x198] sm:$0xff] (%p1617_p6) }
 0x146   : > { %1114 = vst [vmem:[%s1795_s29 + $0xf0] sm:$0xff] %v1050_v20  ;;  %1146 = vst [vmem:[%s1795_s29 + $0x1f0] sm:$0xff] %v1082_v21  ;;  %v1051_v26 = vadd.f32 %v1791_v23, %v730_v24  ;;  %v1083_v27 = vadd.f32 %v1791_v23, %v810_v25  ;;  %v1179_v23 = vld [vmem:[%s1795_s29 + $0x18] sm:$0xff] (%p1617_p6)  ;;  %v1273_v12 = vld [vmem:[%s1795_s29 + $0x190] sm:$0xff] (%p1617_p6) }
 0x147   : > { %1180 = vst [vmem:[%s1932_s5 + $0x28] sm:$0xff] (%p1617_p6), %v1179_v23  ;;  %1226 = vst [vmem:[%s1932_s5 + $0x1a0] sm:$0xff] (%p1617_p6), %v1225_v52  ;;  %v1227_v53 = vld [vmem:[%s1795_s29 + $0xd8] sm:$0xff] (%p1617_p6)  ;;  %v1277_v14 = vld [vmem:[%s1795_s29 + $0x1a0] sm:$0xff] (%p1617_p6) }
 0x148   : > { %1115 = vst [vmem:[%s1795_s29 + $0xf8] sm:$0xff] %v1051_v26  ;;  %1147 = vst [vmem:[%s1795_s29 + $0x1f8] sm:$0xff] %v1083_v27  ;;  %v1279_v15 = vld [vmem:[%s1795_s29 + $0x1a8] sm:$0xff] (%p1617_p6)  ;;  %v1281_v17 = vld [vmem:[%s1795_s29 + $0x1b0] sm:$0xff] (%p1617_p6) }
 0x149   : > { %v1229_v54 = vld [vmem:[%s1795_s29 + $0xe0] sm:$0xff]  ;;  %1228 = vst [vmem:[%s1932_s5 + $0x1a8] sm:$0xff] %v1227_v53  ;;  %1244 = vst [vmem:[%s1932_s5 + $0x228] sm:$0xff] %v1243_v61  ;;  %v1283_v16 = vld [vmem:[%s1795_s29 + $0x1b8] sm:$0xff] }
 0x14a   : > { %1230 = vst [vmem:[%s1932_s5 + $0x1c0] sm:$0xff] %v1229_v54  ;;  %1246 = vst [vmem:[%s1932_s5 + $0x240] sm:$0xff] %v1245_v62  ;;  %v1285_v18 = vld [vmem:[%s1795_s29 + $0x1c0] sm:$0xff]  ;;  %v1287_v19 = vld [vmem:[%s1795_s29 + $0x1c8] sm:$0xff] }
 0x14b   : > { %v1231_v55 = vld [vmem:[%s1795_s29 + $0xe8] sm:$0xff]  ;;  %1248 = vst [vmem:[%s1932_s5 + $0x248] sm:$0xff] %v1247_v63  ;;  %1250 = vst [vmem:[%s1932_s5 + $0x260] sm:$0xff] %v1249_v0  ;;  %v1289_v20 = vld [vmem:[%s1795_s29 + $0x1d0] sm:$0xff] }
 0x14c   : > { %1232 = vst [vmem:[%s1932_s5 + $0x1c8] sm:$0xff] %v1231_v55  ;;  %1252 = vst [vmem:[%s1932_s5 + $0x268] sm:$0xff] %v1251_v1  ;;  %v1291_v21 = vld [vmem:[%s1795_s29 + $0x1d8] sm:$0xff]  ;;  %v1293_v24 = vld [vmem:[%s1795_s29 + $0x1e0] sm:$0xff] }
 0x14d   : > { %v1233_v56 = vld [vmem:[%s1795_s29 + $0xf0] sm:$0xff]  ;;  %1254 = vst [vmem:[%s1932_s5 + $0x280] sm:$0xff] %v1253_v2  ;;  %1256 = vst [vmem:[%s1932_s5 + $0x288] sm:$0xff] %v1255_v3  ;;  %v1295_v25 = vld [vmem:[%s1795_s29 + $0x1e8] sm:$0xff] }
 0x14e   : > { %1234 = vst [vmem:[%s1932_s5 + $0x1e0] sm:$0xff] %v1233_v56  ;;  %1258 = vst [vmem:[%s1932_s5 + $0x2a0] sm:$0xff] %v1257_v4  ;;  %v1297_v26 = vld [vmem:[%s1795_s29 + $0x1f0] sm:$0xff] }
 0x14f   : > { %v1235_v57 = vld [vmem:[%s1795_s29 + $0xf8] sm:$0xff]  ;;  %1260 = vst [vmem:[%s1932_s5 + $0x2a8] sm:$0xff] %v1259_v5  ;;  %1262 = vst [vmem:[%s1932_s5 + $0x2c0] sm:$0xff] %v1261_v6 }
 0x150   : > { %1236 = vst [vmem:[%s1932_s5 + $0x1e8] sm:$0xff] %v1235_v57  ;;  %1264 = vst [vmem:[%s1932_s5 + $0x2c8] sm:$0xff] %v1263_v7  ;;  %v1299_v27 = vld [vmem:[%s1795_s29 + $0x1f8] sm:$0xff] }
 0x151   : > { %1266 = vst [vmem:[%s1932_s5 + $0x2e0] sm:$0xff] %v1265_v8  ;;  %1268 = vst [vmem:[%s1932_s5 + $0x2e8] sm:$0xff] %v1267_v9 }
 0x152   : > { %1270 = vst [vmem:[%s1932_s5 + $0x300] sm:$0xff] %v1269_v10  ;;  %1272 = vst [vmem:[%s1932_s5 + $0x308] sm:$0xff] %v1271_v11 }
 0x153   : > { %1274 = vst [vmem:[%s1932_s5 + $0x320] sm:$0xff] %v1273_v12  ;;  %1276 = vst [vmem:[%s1932_s5 + $0x328] sm:$0xff] %v1275_v13 }
 0x154   : > { %1278 = vst [vmem:[%s1932_s5 + $0x340] sm:$0xff] %v1277_v14  ;;  %1280 = vst [vmem:[%s1932_s5 + $0x348] sm:$0xff] %v1279_v15 }
 0x155   : > { %1282 = vst [vmem:[%s1932_s5 + $0x360] sm:$0xff] %v1281_v17  ;;  %1284 = vst [vmem:[%s1932_s5 + $0x368] sm:$0xff] %v1283_v16 }
 0x156   : > { %1286 = vst [vmem:[%s1932_s5 + $0x380] sm:$0xff] %v1285_v18  ;;  %1288 = vst [vmem:[%s1932_s5 + $0x388] sm:$0xff] %v1287_v19 }
 0x157   : > { %1290 = vst [vmem:[%s1932_s5 + $0x3a0] sm:$0xff] %v1289_v20  ;;  %1292 = vst [vmem:[%s1932_s5 + $0x3a8] sm:$0xff] %v1291_v21 }
 0x158   : > { %1294 = vst [vmem:[%s1932_s5 + $0x3c0] sm:$0xff] %v1293_v24  ;;  %1296 = vst [vmem:[%s1932_s5 + $0x3c8] sm:$0xff] %v1295_v25 }
 0x159   : > { %1298 = vst [vmem:[%s1932_s5 + $0x3e0] sm:$0xff] %v1297_v26  ;;  %1300 = vst [vmem:[%s1932_s5 + $0x3e8] sm:$0xff] %v1299_v27 }
 0x15a PF: > { %s13_s16 = sadd.s32 1, %s1559_s16   ;;  %s2079_s12 = smov %s1547_s13 }
 0x15b   : > { %p10_p12 = scmp.ge.s32.totalorder %s13_s16, 4   ;;  %s2080_s13 = smov %s1622_s22 }
 0x15c   : > { %s2081_s14 = smov %s1555_s15  ;;  %s2082_s15 = smov %s2084_s17 }
 0x15d   :  { %12 = sbr.rel (!%p10_p12) target bundleno = 3 (0x3), region = 142 }

// kernel: lstm_model_forward.7
= control target key start
LH: loop header
LB: loop body
LE: loop exit
PB: predicated region body
PF: predicated region fallthrough
CT: control target
= control target key end

     0   :  { %s1793_s9 = smov 0   ;;  %s1795_s10 = smov 0   ;;  %s2390_s0 = inlined_call_operand.vmem [shape: f32[32,8,512], index: 0, kind: input, shape index: {}]   ;;  %s2391_s1 = inlined_call_operand.vmem [shape: bf16[128,512], index: 1, kind: input, shape index: {}]   ;;  %s2392_s2 = inlined_call_operand.vmem [shape: f32[32,8,128], index: 2, kind: output, shape index: {}]  }
   0x1   :  { %s1797_s11 = smov 0  }
   0x2 LB: > { %s21_s12 = sadd.s32 1, %s1770_s10  ;;  %p1417_p0 = scmp.ge.s32.totalorder %s1774_s11, 1  ;;  %s1774_s11 = sphi %s1797_s11, %s12_s11   ;;  %s1770_s10 = sphi %s1795_s10, %s2394_s10   ;;  %s1766_s9 = sphi %s1793_s9, %s2393_s9  }
   0x3   : > { %p22_p1 = scmp.ge.s32.totalorder %s21_s12, 4  ;;  %p134_p2 = scmp.lt.s32.totalorder %s1774_s11, 5 }
   0x5   : > { %s2396_s12 = smov (%p22_p1, %s21_s12), 0  ;;  %p135_p3 = pnand %p1417_p0, %p134_p2 }
   0x6   : > { %s1418_s13 = sshll.u32 (!%p135_p3), %s1766_s9, 3  ;;  %p1423_p5 = scmp.ne.s32.totalorder (!%p135_p3), %s1766_s9, 0 }
   0x7   : > { %138 = sbr.rel (%p135_p3) target bundleno = 2060 (0x80c), region = 28  ;;  %p165_p4 = scmp.lt.s32.totalorder (!%p135_p3), %s1418_s13, 31 }
   0xc   : > { %s2398_s13 = smov (!%p165_p4, %s1418_s13), 31  ;;  %188 = sbr.rel (%p1423_p5) target bundleno = 19 (0x13), region = 32 }
   0xd   : > { %s1517_s14 = sshll.u32 %s2398_s13, 5  ;;  %s1422_s15 = sshll.u32 %s2398_s13, 3 }
   0xe   : > { %s1814_s18 = scalar_lea.vmem %s2390_s0, %s1517_s14  ;;  %s1819_s21 = scalar_lea.vmem %s2392_s2, %s1422_s15 }
  0x11   : > { %v1776_v0 = vmov 0.0  }
  0x12   : > { %189 = vst [vmem:[#allocation2] sm:$0xff] %v1776_v0  ;;  %190 = vst [vmem:[#allocation3] sm:$0xff] %v1776_v0 }
  0x13 PF: > { %v1824_v1 = vld [vmem:[%s2391_s1 + $0xe4] ss:$16 sps:$4 sm:$0xff]   ;;  %v1829_v2 = vld [vmem:[%s2391_s1 + $0xe0] ss:$16 sps:$4 sm:$0xff]   ;;  %v1777_v3 = vmov 0   ;;  %v226_v38 = vld [vmem:[%s1814_s18 + $0x8] sm:$0xff] }
  0x14   : > { %422 = vmatprep.mubr.bf16.mxu0 %v1777_v3  ;;  %463 = vmatprep.mubr.bf16.mxu1 %v1777_v3  ;;  %v1837_v4 = vld [vmem:[%s2391_s1 + $0xc4] ss:$16 sps:$4 sm:$0xff]   ;;  %v1843_v5 = vld [vmem:[%s2391_s1 + $0xc0] ss:$16 sps:$4 sm:$0xff]   ;;  %v1854_v7 = vld [vmem:[%s2391_s1 + $0xec] ss:$16 sps:$4 sm:$0xff]  }
  0x15   : > { %390 = vmatprep.subr.bf16.mxu0 %v1824_v1  ;;  %v1849_v6 = vld [vmem:[%s2391_s1 + $0xa4] ss:$16 sps:$4 sm:$0xff]   ;;  %v1859_v8 = vld [vmem:[%s2391_s1 + $0xe8] ss:$16 sps:$4 sm:$0xff]   ;;  %v1865_v9 = vld [vmem:[%s2391_s1 + $0xa0] ss:$16 sps:$4 sm:$0xff]   ;;  %431 = vmatprep.subr.bf16.mxu1 %v1854_v7 }
  0x16   : > { %391 = vmatpush1.bf16.msra.mxu0 %v1829_v2  ;;  %v1872_v10 = vld [vmem:[%s2391_s1 + $0x84] ss:$16 sps:$4 sm:$0xff]   ;;  %432 = vmatpush1.bf16.msra.mxu1 %v1859_v8  ;;  %v1878_v11 = vld [vmem:[%s2391_s1 + $0xcc] ss:$16 sps:$4 sm:$0xff]   ;;  %v1883_v12 = vld [vmem:[%s2391_s1 + $0xc8] ss:$16 sps:$4 sm:$0xff]  }
  0x17   : > { %392 = vmatprep.subr.bf16.mxu0 %v1837_v4  ;;  %433 = vmatprep.subr.bf16.mxu1 %v1878_v11  ;;  %v1890_v13 = vld [vmem:[%s2391_s1 + $0x80] ss:$16 sps:$4 sm:$0xff]   ;;  %v1895_v14 = vld [vmem:[%s2391_s1 + $0x64] ss:$16 sps:$4 sm:$0xff]   ;;  %v1900_v15 = vld [vmem:[%s2391_s1 + $0xac] ss:$16 sps:$4 sm:$0xff]  }
  0x18   : > { %v1907_v16 = vld [vmem:[%s2391_s1 + $0xa8] ss:$16 sps:$4 sm:$0xff]   ;;  %v1913_v17 = vld [vmem:[%s2391_s1 + $0x8c] ss:$16 sps:$4 sm:$0xff]   ;;  %v1919_v18 = vld [vmem:[%s2391_s1 + $0x60] ss:$16 sps:$4 sm:$0xff]  }
  0x19   : > { %v1925_v19 = vld [vmem:[%s2391_s1 + $0x44] ss:$16 sps:$4 sm:$0xff]   ;;  %v1931_v20 = vld [vmem:[%s2391_s1 + $0x88] ss:$16 sps:$4 sm:$0xff]   ;;  %v1937_v21 = vld [vmem:[%s2391_s1 + $0x6c] ss:$16 sps:$4 sm:$0xff]  }
  0x1a   : > { %393 = vmatpush1.bf16.msra.mxu0 %v1843_v5  ;;  %434 = vmatpush1.bf16.msra.mxu1 %v1883_v12  ;;  %v1942_v22 = vld [vmem:[%s2391_s1 + $0x40] ss:$16 sps:$4 sm:$0xff]   ;;  %v1948_v23 = vld [vmem:[%s2391_s1 + $0x24] ss:$16 sps:$4 sm:$0xff]   ;;  %v1955_v24 = vld [vmem:[%s2391_s1 + $0x68] ss:$16 sps:$4 sm:$0xff]  }
  0x1b   : > { %394 = vmatprep.subr.bf16.mxu0 %v1849_v6  ;;  %435 = vmatprep.subr.bf16.mxu1 %v1900_v15  ;;  %v1961_v25 = vld [vmem:[%s2391_s1 + $0x4c] ss:$16 sps:$4 sm:$0xff]   ;;  %v1967_v26 = vld [vmem:[%s2391_s1 + $0x20] ss:$16 sps:$4 sm:$0xff]   ;;  %v1973_v27 = vld [vmem:[%s2391_s1 + $0x4] ss:$16 sps:$4 sm:$0xff]  }
  0x1c   : > { %v1979_v28 = vld [vmem:[%s2391_s1 + $0x48] ss:$16 sps:$4 sm:$0xff]   ;;  %v1985_v29 = vld [vmem:[%s2391_s1 + $0x2c] ss:$16 sps:$4 sm:$0xff]   ;;  %v1991_v30 = vld [vmem:[%s2391_s1] ss:$16 sps:$4 sm:$0xff]  }
  0x1d   : > { %v223_v31 = vld [vmem:[#allocation2] sm:$0xff]  ;;  %v1998_v32 = vld [vmem:[%s2391_s1 + $0x28] ss:$16 sps:$4 sm:$0xff]   ;;  %v2004_v33 = vld [vmem:[%s2391_s1 + $0xc] ss:$16 sps:$4 sm:$0xff]  }
  0x1e   : > { %395 = vmatpush1.bf16.msra.mxu0 %v1865_v9  ;;  %436 = vmatpush1.bf16.msra.mxu1 %v1907_v16  ;;  %v229_v34 = vpack.c.bf16 %v223_v31, %v223_v31  ;;  %v2011_v35 = vld [vmem:[%s2391_s1 + $0x8] ss:$16 sps:$4 sm:$0xff]   ;;  %v225_v36 = vld [vmem:[%s1814_s18] sm:$0xff]  ;;  %v227_v51 = vld [vmem:[%s1814_s18 + $0x10] sm:$0xff] }
  0x1f   : > { %396 = vmatprep.subr.bf16.mxu0 %v1872_v10  ;;  %437 = vmatprep.subr.bf16.mxu1 %v1913_v17  ;;  %v228_v48 = vld [vmem:[%s1814_s18 + $0x18] sm:$0xff]  ;;  %v224_v62 = vld [vmem:[#allocation3] sm:$0xff] }
  0x22   : > { %397 = vmatpush1.bf16.msra.mxu0 %v1890_v13  ;;  %438 = vmatpush1.bf16.msra.mxu1 %v1931_v20 }
  0x23   : > { %398 = vmatprep.subr.bf16.mxu0 %v1895_v14  ;;  %439 = vmatprep.subr.bf16.mxu1 %v1937_v21 }
  0x26   : > { %399 = vmatpush1.bf16.msra.mxu0 %v1919_v18  ;;  %440 = vmatpush1.bf16.msra.mxu1 %v1955_v24 }
  0x27   : > { %400 = vmatprep.subr.bf16.mxu0 %v1925_v19  ;;  %441 = vmatprep.subr.bf16.mxu1 %v1961_v25 }
  0x2a   : > { %401 = vmatpush1.bf16.msra.mxu0 %v1942_v22  ;;  %442 = vmatpush1.bf16.msra.mxu1 %v1979_v28 }
  0x2b   : > { %402 = vmatprep.subr.bf16.mxu0 %v1948_v23  ;;  %443 = vmatprep.subr.bf16.mxu1 %v1985_v29 }
  0x2e   : > { %403 = vmatpush1.bf16.msra.mxu0 %v1967_v26  ;;  %444 = vmatpush1.bf16.msra.mxu1 %v1998_v32 }
  0x2f   : > { %404 = vmatprep.subr.bf16.mxu0 %v1973_v27  ;;  %445 = vmatprep.subr.bf16.mxu1 %v2004_v33 }
  0x32   : > { %405 = vmatpush1.bf16.msra.mxu0 %v1991_v30  ;;  %446 = vmatpush1.bf16.msra.mxu1 %v2011_v35 }
  0x33   : > { %507 = vmatprep.subr.bf16.mxu0 %v1824_v1  ;;  %548 = vmatprep.subr.bf16.mxu1 %v1854_v7 }
  0x35   : > { %423 = vmatmul.mubr.bf16.vlgmr.msra.gmra.mxu0 %v229_v34  ;;  %464 = vmatmul.mubr.bf16.vlgmr.msra.gmra.mxu1 %v229_v34 }
  0x36   : > { %508 = vmatpush1.bf16.msra.mxu0 %v1829_v2  ;;  %539 = vmatprep.mubr.bf16.mxu0 %v1777_v3 }
  0x37   : > { %509 = vmatprep.subr.bf16.mxu0 %v1837_v4  ;;  %549 = vmatpush1.bf16.msra.mxu1 %v1859_v8 }
  0x38   : > { %550 = vmatprep.subr.bf16.mxu1 %v1878_v11  ;;  %580 = vmatprep.mubr.bf16.mxu1 %v1777_v3 }
  0x3a   : > { %510 = vmatpush1.bf16.msra.mxu0 %v1843_v5 }
  0x3b   : > { %511 = vmatprep.subr.bf16.mxu0 %v1849_v6  ;;  %551 = vmatpush1.bf16.msra.mxu1 %v1883_v12 }
  0x3c   : > { %552 = vmatprep.subr.bf16.mxu1 %v1900_v15 }
  0x3e   : > { %512 = vmatpush1.bf16.msra.mxu0 %v1865_v9 }
  0x3f   : > { %513 = vmatprep.subr.bf16.mxu0 %v1872_v10  ;;  %553 = vmatpush1.bf16.msra.mxu1 %v1907_v16 }
  0x40   : > { %554 = vmatprep.subr.bf16.mxu1 %v1913_v17 }
  0x42   : > { %514 = vmatpush1.bf16.msra.mxu0 %v1890_v13 }
  0x43   : > { %515 = vmatprep.subr.bf16.mxu0 %v1895_v14  ;;  %555 = vmatpush1.bf16.msra.mxu1 %v1931_v20 }
  0x44   : > { %556 = vmatprep.subr.bf16.mxu1 %v1937_v21 }
  0x46   : > { %516 = vmatpush1.bf16.msra.mxu0 %v1919_v18 }
  0x47   : > { %517 = vmatprep.subr.bf16.mxu0 %v1925_v19  ;;  %557 = vmatpush1.bf16.msra.mxu1 %v1955_v24 }
  0x48   : > { %558 = vmatprep.subr.bf16.mxu1 %v1961_v25 }
  0x4a   : > { %518 = vmatpush1.bf16.msra.mxu0 %v1942_v22 }
  0x4b   : > { %519 = vmatprep.subr.bf16.mxu0 %v1948_v23  ;;  %559 = vmatpush1.bf16.msra.mxu1 %v1979_v28 }
  0x4c   : > { %560 = vmatprep.subr.bf16.mxu1 %v1985_v29 }
  0x4e   : > { %520 = vmatpush1.bf16.msra.mxu0 %v1967_v26 }
  0x4f   : > { %521 = vmatprep.subr.bf16.mxu0 %v1973_v27  ;;  %561 = vmatpush1.bf16.msra.mxu1 %v1998_v32 }
  0x50   : > { %562 = vmatprep.subr.bf16.mxu1 %v2004_v33 }
  0x52   : > { %522 = vmatpush1.bf16.msra.mxu0 %v1991_v30 }
  0x53   : > { %625 = vmatprep.subr.bf16.mxu0 %v1824_v1  ;;  %563 = vmatpush1.bf16.msra.mxu1 %v2011_v35 }
  0x54   : > { %666 = vmatprep.subr.bf16.mxu1 %v1854_v7 }
  0xf5   : > { %v424_v37 = vpop.f32.mrf.mxu0  ;;  %v465_v45 = vpop.f32.mrf.mxu1 }
  0xf6   : > { %v472_v39 = vadd.f32 %v424_v37, %v225_v36  ;;  %v474_v53 = vadd.f32 %v465_v45, %v227_v51 }
  0xf7   : > { %v426_v40 = vpop.f32.mrf.mxu0  ;;  %v467_v47 = vpop.f32.mrf.mxu1 }
  0xf8   : > { %v1456_v41 = vmul.f32 -1.442695, %v472_v39  ;;  %v473_v42 = vadd.f32 %v426_v40, %v226_v38  ;;  %v475_v52 = vadd.f32 %v467_v47, %v228_v48 }
  0xf9   : > { %v428_v43 = vpop.f32.mrf.mxu0  ;;  %v469_v49 = vpop.f32.mrf.mxu1 }
  0xfa   : > { %1592 = vpow2.f32 %v1456_v41  ;;  %v1457_v44 = vmul.f32 -1.442695, %v473_v42  ;;  %v1458_v54 = vmul.f32 -1.442695, %v475_v52  ;;  %v1459_v41 = vld [vmem:[%s1814_s18 + $0x20] sm:$0xff] }
  0xfb   : > { %v429_v46 = vpop.f32.mrf.mxu0  ;;  %v470_v50 = vpop.f32.mrf.mxu1 }
  0xfc   : > { %1594 = vpow2.f32 %v1457_v44  ;;  %v1460_v44 = vld [vmem:[%s1814_s18 + $0x28] sm:$0xff] }
  0xfd   : > { %1596 = vtanh.f32 %v474_v53 }
  0xfe   : > { %1598 = vpow2.f32 %v1458_v54 }
 0x107   : > { %v1593_v55 = vpop.eup %1592 }
 0x108   : > { %v479_v56 = vadd.f32 1.0, %v1593_v55  ;;  %v1462_v55 = vld [vmem:[%s1814_s18 + $0x38] sm:$0xff] }
 0x109   : > { %v1595_v57 = vpop.eup %1594 }
 0x10a   : > { %1600 = vrcp.f32 %v479_v56  ;;  %v485_v58 = vadd.f32 1.0, %v1595_v57  ;;  %v1597_v59 = vpop.eup %1596  ;;  %v1461_v57 = vld [vmem:[%s1814_s18 + $0x30] sm:$0xff] }
 0x10b   : > { %v1599_v60 = vpop.eup %1598 }
 0x10c   : > { %1602 = vrcp.f32 %v485_v58  ;;  %v492_v0 = vadd.f32 1.0, %v1599_v60 }
 0x10e   : > { %1604 = vrcp.f32 %v492_v0 }
 0x117   : > { %v1601_v61 = vpop.eup %1600 }
 0x118   : > { %v496_v34 = vmul.f32 %v1601_v61, %v1597_v59 }
 0x119   : > { %v1603_v63 = vpop.eup %1602 }
 0x11a   : > { %v495_v31 = vmul.f32 %v1603_v63, %v224_v62 }
 0x11b   : > { %v1605_v37 = vpop.eup %1604 }
 0x11c   : > { %v2055_v36 = vadd.f32 %v496_v34, %v495_v31 }
 0x11e   : > { %1606 = vtanh.f32 %v2055_v36 }
 0x12b   : > { %v1607_v38 = vpop.eup %1606 }
 0x12c   : > { %v499_v39 = vmul.f32 %v1607_v38, %v1605_v37 }
 0x12e   : > { %500 = vst [vmem:[%s1819_s21] sm:$0xff] %v499_v39  ;;  %v506_v40 = vpack.c.bf16 %v499_v39, %v499_v39 }
 0x130   : > { %540 = vmatmul.mubr.bf16.vlgmr.msra.gmra.mxu0 %v506_v40  ;;  %581 = vmatmul.mubr.bf16.vlgmr.msra.gmra.mxu1 %v506_v40 }
 0x131   : > { %626 = vmatpush1.bf16.msra.mxu0 %v1829_v2  ;;  %667 = vmatpush1.bf16.msra.mxu1 %v1859_v8 }
 0x132   : > { %627 = vmatprep.subr.bf16.mxu0 %v1837_v4  ;;  %668 = vmatprep.subr.bf16.mxu1 %v1878_v11 }
 0x133   : > { %657 = vmatprep.mubr.bf16.mxu0 %v1777_v3  ;;  %698 = vmatprep.mubr.bf16.mxu1 %v1777_v3 }
 0x135   : > { %628 = vmatpush1.bf16.msra.mxu0 %v1843_v5  ;;  %669 = vmatpush1.bf16.msra.mxu1 %v1883_v12 }
 0x136   : > { %629 = vmatprep.subr.bf16.mxu0 %v1849_v6  ;;  %670 = vmatprep.subr.bf16.mxu1 %v1900_v15 }
 0x139   : > { %630 = vmatpush1.bf16.msra.mxu0 %v1865_v9  ;;  %671 = vmatpush1.bf16.msra.mxu1 %v1907_v16 }
 0x13a   : > { %631 = vmatprep.subr.bf16.mxu0 %v1872_v10  ;;  %672 = vmatprep.subr.bf16.mxu1 %v1913_v17 }
 0x13d   : > { %632 = vmatpush1.bf16.msra.mxu0 %v1890_v13  ;;  %673 = vmatpush1.bf16.msra.mxu1 %v1931_v20 }
 0x13e   : > { %633 = vmatprep.subr.bf16.mxu0 %v1895_v14  ;;  %674 = vmatprep.subr.bf16.mxu1 %v1937_v21 }
 0x141   : > { %634 = vmatpush1.bf16.msra.mxu0 %v1919_v18  ;;  %675 = vmatpush1.bf16.msra.mxu1 %v1955_v24 }
 0x142   : > { %635 = vmatprep.subr.bf16.mxu0 %v1925_v19  ;;  %676 = vmatprep.subr.bf16.mxu1 %v1961_v25 }
 0x145   : > { %636 = vmatpush1.bf16.msra.mxu0 %v1942_v22  ;;  %677 = vmatpush1.bf16.msra.mxu1 %v1979_v28 }
 0x146   : > { %637 = vmatprep.subr.bf16.mxu0 %v1948_v23  ;;  %678 = vmatprep.subr.bf16.mxu1 %v1985_v29 }
 0x149   : > { %638 = vmatpush1.bf16.msra.mxu0 %v1967_v26  ;;  %679 = vmatpush1.bf16.msra.mxu1 %v1998_v32 }
 0x14a   : > { %639 = vmatprep.subr.bf16.mxu0 %v1973_v27  ;;  %680 = vmatprep.subr.bf16.mxu1 %v2004_v33 }
 0x14d   : > { %640 = vmatpush1.bf16.msra.mxu0 %v1991_v30  ;;  %681 = vmatpush1.bf16.msra.mxu1 %v2011_v35 }
 0x14e   : > { %743 = vmatprep.subr.bf16.mxu0 %v1824_v1  ;;  %784 = vmatprep.subr.bf16.mxu1 %v1854_v7 }
 0x1f0   : > { %v541_v42 = vpop.f32.mrf.mxu0  ;;  %v582_v43 = vpop.f32.mrf.mxu1 }
 0x1f1   : > { %v589_v45 = vadd.f32 %v1459_v41, %v541_v42  ;;  %v591_v60 = vadd.f32 %v1461_v57, %v582_v43 }
 0x1f2   : > { %v543_v46 = vpop.f32.mrf.mxu0  ;;  %v584_v47 = vpop.f32.mrf.mxu1 }
 0x1f3   : > { %v1463_v48 = vmul.f32 -1.442695, %v589_v45  ;;  %v590_v49 = vadd.f32 %v1460_v44, %v543_v46  ;;  %v592_v56 = vadd.f32 %v1462_v55, %v584_v47 }
 0x1f4   : > { %v545_v50 = vpop.f32.mrf.mxu0  ;;  %v586_v51 = vpop.f32.mrf.mxu1 }
 0x1f5   : > { %1608 = vpow2.f32 %v1463_v48  ;;  %v1464_v52 = vmul.f32 -1.442695, %v590_v49  ;;  %v1465_v58 = vmul.f32 -1.442695, %v592_v56  ;;  %v1468_v48 = vld [vmem:[%s1814_s18 + $0x48] sm:$0xff] }
 0x1f6   : > { %v546_v53 = vpop.f32.mrf.mxu0  ;;  %v587_v54 = vpop.f32.mrf.mxu1 }
 0x1f7   : > { %1610 = vpow2.f32 %v1464_v52 }
 0x1f8   : > { %1612 = vpow2.f32 %v1465_v58 }
 0x202   : > { %v1609_v59 = vpop.eup %1608 }
 0x203   : > { %v596_v61 = vadd.f32 1.0, %v1609_v59  ;;  %v1470_v59 = vld [vmem:[%s1814_s18 + $0x58] sm:$0xff] }
 0x204   : > { %v1611_v62 = vpop.eup %1610 }
 0x205   : > { %1614 = vrcp.f32 %v596_v61  ;;  %v602_v63 = vadd.f32 1.0, %v1611_v62  ;;  %v1613_v0 = vpop.eup %1612  ;;  %v1469_v61 = vld [vmem:[%s1814_s18 + $0x50] sm:$0xff] }
 0x206   : > { %1616 = vtanh.f32 %v591_v60  ;;  %v609_v38 = vadd.f32 1.0, %v1613_v0 }
 0x207   : > { %1618 = vrcp.f32 %v602_v63 }
 0x208   : > { %1620 = vrcp.f32 %v609_v38 }
 0x212   : > { %v1615_v31 = vpop.eup %1614 }
 0x213   : > { %v1617_v34 = vpop.eup %1616 }
 0x214   : > { %v1619_v37 = vpop.eup %1618  ;;  %v613_v39 = vmul.f32 %v1617_v34, %v1615_v31 }
 0x215   : > { %v612_v40 = vmul.f32 %v1619_v37, %v2055_v36  ;;  %v1621_v42 = vpop.eup %1620  ;;  %v1467_v36 = vld [vmem:[%s1814_s18 + $0x40] sm:$0xff] }
 0x217   : > { %v2098_v41 = vadd.f32 %v613_v39, %v612_v40 }
 0x219   : > { %1622 = vtanh.f32 %v2098_v41 }
 0x226   : > { %v1623_v43 = vpop.eup %1622 }
 0x227   : > { %v616_v44 = vmul.f32 %v1623_v43, %v1621_v42 }
 0x229   : > { %1466 = vst [vmem:[%s1819_s21 + $0x8] sm:$0xff] %v616_v44  ;;  %v624_v45 = vpack.c.bf16 %v616_v44, %v616_v44 }
 0x22b   : > { %658 = vmatmul.mubr.bf16.vlgmr.msra.gmra.mxu0 %v624_v45  ;;  %699 = vmatmul.mubr.bf16.vlgmr.msra.gmra.mxu1 %v624_v45 }
 0x22c   : > { %744 = vmatpush1.bf16.msra.mxu0 %v1829_v2  ;;  %785 = vmatpush1.bf16.msra.mxu1 %v1859_v8 }
 0x22d   : > { %745 = vmatprep.subr.bf16.mxu0 %v1837_v4  ;;  %786 = vmatprep.subr.bf16.mxu1 %v1878_v11 }
 0x22e   : > { %775 = vmatprep.mubr.bf16.mxu0 %v1777_v3  ;;  %816 = vmatprep.mubr.bf16.mxu1 %v1777_v3 }
 0x230   : > { %746 = vmatpush1.bf16.msra.mxu0 %v1843_v5  ;;  %787 = vmatpush1.bf16.msra.mxu1 %v1883_v12 }
 0x231   : > { %747 = vmatprep.subr.bf16.mxu0 %v1849_v6  ;;  %788 = vmatprep.subr.bf16.mxu1 %v1900_v15 }
 0x234   : > { %748 = vmatpush1.bf16.msra.mxu0 %v1865_v9  ;;  %789 = vmatpush1.bf16.msra.mxu1 %v1907_v16 }
 0x235   : > { %749 = vmatprep.subr.bf16.mxu0 %v1872_v10  ;;  %790 = vmatprep.subr.bf16.mxu1 %v1913_v17 }
 0x238   : > { %750 = vmatpush1.bf16.msra.mxu0 %v1890_v13  ;;  %791 = vmatpush1.bf16.msra.mxu1 %v1931_v20 }
 0x239   : > { %751 = vmatprep.subr.bf16.mxu0 %v1895_v14  ;;  %792 = vmatprep.subr.bf16.mxu1 %v1937_v21 }
 0x23c   : > { %752 = vmatpush1.bf16.msra.mxu0 %v1919_v18  ;;  %793 = vmatpush1.bf16.msra.mxu1 %v1955_v24 }
 0x23d   : > { %753 = vmatprep.subr.bf16.mxu0 %v1925_v19  ;;  %794 = vmatprep.subr.bf16.mxu1 %v1961_v25 }
 0x240   : > { %754 = vmatpush1.bf16.msra.mxu0 %v1942_v22  ;;  %795 = vmatpush1.bf16.msra.mxu1 %v1979_v28 }
 0x241   : > { %755 = vmatprep.subr.bf16.mxu0 %v1948_v23  ;;  %796 = vmatprep.subr.bf16.mxu1 %v1985_v29 }
 0x244   : > { %756 = vmatpush1.bf16.msra.mxu0 %v1967_v26  ;;  %797 = vmatpush1.bf16.msra.mxu1 %v1998_v32 }
 0x245   : > { %757 = vmatprep.subr.bf16.mxu0 %v1973_v27  ;;  %798 = vmatprep.subr.bf16.mxu1 %v2004_v33 }
 0x248   : > { %758 = vmatpush1.bf16.msra.mxu0 %v1991_v30  ;;  %799 = vmatpush1.bf16.msra.mxu1 %v2011_v35 }
 0x249   : > { %861 = vmatprep.subr.bf16.mxu0 %v1824_v1  ;;  %902 = vmatprep.subr.bf16.mxu1 %v1854_v7 }
 0x2eb   : > { %v659_v46 = vpop.f32.mrf.mxu0  ;;  %v700_v47 = vpop.f32.mrf.mxu1 }
 0x2ec   : > { %v707_v49 = vadd.f32 %v1467_v36, %v659_v46  ;;  %v709_v0 = vadd.f32 %v1469_v61, %v700_v47 }
 0x2ed   : > { %v661_v50 = vpop.f32.mrf.mxu0  ;;  %v702_v51 = vpop.f32.mrf.mxu1 }
 0x2ee   : > { %v1471_v52 = vmul.f32 -1.442695, %v707_v49  ;;  %v708_v53 = vadd.f32 %v1468_v48, %v661_v50  ;;  %v710_v60 = vadd.f32 %v1470_v59, %v702_v51 }
 0x2ef   : > { %v663_v54 = vpop.f32.mrf.mxu0  ;;  %v704_v55 = vpop.f32.mrf.mxu1 }
 0x2f0   : > { %1624 = vpow2.f32 %v1471_v52  ;;  %v1472_v56 = vmul.f32 -1.442695, %v708_v53  ;;  %v1473_v62 = vmul.f32 -1.442695, %v710_v60  ;;  %v1476_v52 = vld [vmem:[%s1814_s18 + $0x68] sm:$0xff] }
 0x2f1   : > { %v664_v57 = vpop.f32.mrf.mxu0  ;;  %v705_v58 = vpop.f32.mrf.mxu1 }
 0x2f2   : > { %1626 = vpow2.f32 %v1472_v56 }
 0x2f3   : > { %1628 = vpow2.f32 %v1473_v62 }
 0x2fd   : > { %v1625_v63 = vpop.eup %1624 }
 0x2fe   : > { %v714_v31 = vadd.f32 1.0, %v1625_v63  ;;  %v1478_v63 = vld [vmem:[%s1814_s18 + $0x78] sm:$0xff] }
 0x2ff   : > { %v1627_v34 = vpop.eup %1626 }
 0x300   : > { %1630 = vrcp.f32 %v714_v31  ;;  %v720_v37 = vadd.f32 1.0, %v1627_v34  ;;  %v1629_v38 = vpop.eup %1628  ;;  %v1477_v31 = vld [vmem:[%s1814_s18 + $0x70] sm:$0xff] }
 0x301   : > { %1632 = vtanh.f32 %v709_v0  ;;  %v727_v43 = vadd.f32 1.0, %v1629_v38 }
 0x302   : > { %1634 = vrcp.f32 %v720_v37 }
 0x303   : > { %1636 = vrcp.f32 %v727_v43 }
 0x30d   : > { %v1631_v39 = vpop.eup %1630 }
 0x30e   : > { %v1633_v40 = vpop.eup %1632 }
 0x30f   : > { %v1635_v42 = vpop.eup %1634  ;;  %v731_v44 = vmul.f32 %v1633_v40, %v1631_v39 }
 0x310   : > { %v730_v45 = vmul.f32 %v1635_v42, %v2098_v41  ;;  %v1637_v46 = vpop.eup %1636  ;;  %v1475_v41 = vld [vmem:[%s1814_s18 + $0x60] sm:$0xff] }
 0x312   : > { %v2141_v36 = vadd.f32 %v731_v44, %v730_v45 }
 0x314   : > { %1638 = vtanh.f32 %v2141_v36 }
 0x321   : > { %v1639_v47 = vpop.eup %1638 }
 0x322   : > { %v734_v48 = vmul.f32 %v1639_v47, %v1637_v46 }
 0x324   : > { %1474 = vst [vmem:[%s1819_s21 + $0x10] sm:$0xff] %v734_v48  ;;  %v742_v49 = vpack.c.bf16 %v734_v48, %v734_v48 }
 0x326   : > { %776 = vmatmul.mubr.bf16.vlgmr.msra.gmra.mxu0 %v742_v49  ;;  %817 = vmatmul.mubr.bf16.vlgmr.msra.gmra.mxu1 %v742_v49 }
 0x327   : > { %862 = vmatpush1.bf16.msra.mxu0 %v1829_v2  ;;  %903 = vmatpush1.bf16.msra.mxu1 %v1859_v8 }
 0x328   : > { %863 = vmatprep.subr.bf16.mxu0 %v1837_v4  ;;  %904 = vmatprep.subr.bf16.mxu1 %v1878_v11 }
 0x329   : > { %893 = vmatprep.mubr.bf16.mxu0 %v1777_v3  ;;  %934 = vmatprep.mubr.bf16.mxu1 %v1777_v3 }
 0x32b   : > { %864 = vmatpush1.bf16.msra.mxu0 %v1843_v5  ;;  %905 = vmatpush1.bf16.msra.mxu1 %v1883_v12 }
 0x32c   : > { %865 = vmatprep.subr.bf16.mxu0 %v1849_v6  ;;  %906 = vmatprep.subr.bf16.mxu1 %v1900_v15 }
 0x32f   : > { %866 = vmatpush1.bf16.msra.mxu0 %v1865_v9  ;;  %907 = vmatpush1.bf16.msra.mxu1 %v1907_v16 }
 0x330   : > { %867 = vmatprep.subr.bf16.mxu0 %v1872_v10  ;;  %908 = vmatprep.subr.bf16.mxu1 %v1913_v17 }
 0x333   : > { %868 = vmatpush1.bf16.msra.mxu0 %v1890_v13  ;;  %909 = vmatpush1.bf16.msra.mxu1 %v1931_v20 }
 0x334   : > { %869 = vmatprep.subr.bf16.mxu0 %v1895_v14  ;;  %910 = vmatprep.subr.bf16.mxu1 %v1937_v21 }
 0x337   : > { %870 = vmatpush1.bf16.msra.mxu0 %v1919_v18  ;;  %911 = vmatpush1.bf16.msra.mxu1 %v1955_v24 }
 0x338   : > { %871 = vmatprep.subr.bf16.mxu0 %v1925_v19  ;;  %912 = vmatprep.subr.bf16.mxu1 %v1961_v25 }
 0x33b   : > { %872 = vmatpush1.bf16.msra.mxu0 %v1942_v22  ;;  %913 = vmatpush1.bf16.msra.mxu1 %v1979_v28 }
 0x33c   : > { %873 = vmatprep.subr.bf16.mxu0 %v1948_v23  ;;  %914 = vmatprep.subr.bf16.mxu1 %v1985_v29 }
 0x33f   : > { %874 = vmatpush1.bf16.msra.mxu0 %v1967_v26  ;;  %915 = vmatpush1.bf16.msra.mxu1 %v1998_v32 }
 0x340   : > { %875 = vmatprep.subr.bf16.mxu0 %v1973_v27  ;;  %916 = vmatprep.subr.bf16.mxu1 %v2004_v33 }
 0x343   : > { %876 = vmatpush1.bf16.msra.mxu0 %v1991_v30  ;;  %917 = vmatpush1.bf16.msra.mxu1 %v2011_v35 }
 0x344   : > { %979 = vmatprep.subr.bf16.mxu0 %v1824_v1  ;;  %1020 = vmatprep.subr.bf16.mxu1 %v1854_v7 }
 0x3e6   : > { %v777_v50 = vpop.f32.mrf.mxu0  ;;  %v818_v51 = vpop.f32.mrf.mxu1 }
 0x3e7   : > { %v825_v53 = vadd.f32 %v1475_v41, %v777_v50  ;;  %v827_v38 = vadd.f32 %v1477_v31, %v818_v51 }
 0x3e8   : > { %v779_v54 = vpop.f32.mrf.mxu0  ;;  %v820_v55 = vpop.f32.mrf.mxu1 }
 0x3e9   : > { %v1479_v56 = vmul.f32 -1.442695, %v825_v53  ;;  %v826_v57 = vadd.f32 %v1476_v52, %v779_v54  ;;  %v828_v0 = vadd.f32 %v1478_v63, %v820_v55 }
 0x3ea   : > { %v781_v58 = vpop.f32.mrf.mxu0  ;;  %v822_v59 = vpop.f32.mrf.mxu1 }
 0x3eb   : > { %1640 = vpow2.f32 %v1479_v56  ;;  %v1480_v60 = vmul.f32 -1.442695, %v826_v57  ;;  %v1481_v34 = vmul.f32 -1.442695, %v828_v0  ;;  %v1484_v56 = vld [vmem:[%s1814_s18 + $0x88] sm:$0xff] }
 0x3ec   : > { %v782_v61 = vpop.f32.mrf.mxu0  ;;  %v823_v62 = vpop.f32.mrf.mxu1 }
 0x3ed   : > { %1642 = vpow2.f32 %v1480_v60 }
 0x3ee   : > { %1644 = vpow2.f32 %v1481_v34 }
 0x3f8   : > { %v1641_v37 = vpop.eup %1640 }
 0x3f9   : > { %v832_v39 = vadd.f32 1.0, %v1641_v37  ;;  %v1485_v37 = vld [vmem:[%s1814_s18 + $0x90] sm:$0xff] }
 0x3fa   : > { %v1643_v40 = vpop.eup %1642 }
 0x3fb   : > { %1646 = vrcp.f32 %v832_v39  ;;  %v838_v42 = vadd.f32 1.0, %v1643_v40  ;;  %v1645_v43 = vpop.eup %1644 }
 0x3fc   : > { %1648 = vtanh.f32 %v827_v38  ;;  %v845_v47 = vadd.f32 1.0, %v1645_v43 }
 0x3fd   : > { %1650 = vrcp.f32 %v838_v42 }
 0x3fe   : > { %1652 = vrcp.f32 %v845_v47 }
 0x408   : > { %v1647_v44 = vpop.eup %1646 }
 0x409   : > { %v1649_v45 = vpop.eup %1648 }
 0x40a   : > { %v1651_v46 = vpop.eup %1650  ;;  %v849_v48 = vmul.f32 %v1649_v45, %v1647_v44 }
 0x40b   : > { %v848_v49 = vmul.f32 %v1651_v46, %v2141_v36  ;;  %v1653_v50 = vpop.eup %1652  ;;  %v1483_v36 = vld [vmem:[%s1814_s18 + $0x80] sm:$0xff] }
 0x40d   : > { %v2184_v41 = vadd.f32 %v849_v48, %v848_v49 }
 0x40f   : > { %1654 = vtanh.f32 %v2184_v41 }
 0x41c   : > { %v1655_v51 = vpop.eup %1654 }
 0x41d   : > { %v852_v52 = vmul.f32 %v1655_v51, %v1653_v50 }
 0x41f   : > { %1482 = vst [vmem:[%s1819_s21 + $0x18] sm:$0xff] %v852_v52  ;;  %v860_v53 = vpack.c.bf16 %v852_v52, %v852_v52 }
 0x421   : > { %894 = vmatmul.mubr.bf16.vlgmr.msra.gmra.mxu0 %v860_v53  ;;  %935 = vmatmul.mubr.bf16.vlgmr.msra.gmra.mxu1 %v860_v53 }
 0x422   : > { %980 = vmatpush1.bf16.msra.mxu0 %v1829_v2  ;;  %1021 = vmatpush1.bf16.msra.mxu1 %v1859_v8 }
 0x423   : > { %981 = vmatprep.subr.bf16.mxu0 %v1837_v4  ;;  %1022 = vmatprep.subr.bf16.mxu1 %v1878_v11 }
 0x424   : > { %1011 = vmatprep.mubr.bf16.mxu0 %v1777_v3  ;;  %1052 = vmatprep.mubr.bf16.mxu1 %v1777_v3 }
 0x426   : > { %982 = vmatpush1.bf16.msra.mxu0 %v1843_v5  ;;  %1023 = vmatpush1.bf16.msra.mxu1 %v1883_v12 }
 0x427   : > { %983 = vmatprep.subr.bf16.mxu0 %v1849_v6  ;;  %1024 = vmatprep.subr.bf16.mxu1 %v1900_v15 }
 0x42a   : > { %984 = vmatpush1.bf16.msra.mxu0 %v1865_v9  ;;  %1025 = vmatpush1.bf16.msra.mxu1 %v1907_v16 }
 0x42b   : > { %985 = vmatprep.subr.bf16.mxu0 %v1872_v10  ;;  %1026 = vmatprep.subr.bf16.mxu1 %v1913_v17 }
 0x42e   : > { %986 = vmatpush1.bf16.msra.mxu0 %v1890_v13  ;;  %1027 = vmatpush1.bf16.msra.mxu1 %v1931_v20 }
 0x42f   : > { %987 = vmatprep.subr.bf16.mxu0 %v1895_v14  ;;  %1028 = vmatprep.subr.bf16.mxu1 %v1937_v21 }
 0x432   : > { %988 = vmatpush1.bf16.msra.mxu0 %v1919_v18  ;;  %1029 = vmatpush1.bf16.msra.mxu1 %v1955_v24 }
 0x433   : > { %989 = vmatprep.subr.bf16.mxu0 %v1925_v19  ;;  %1030 = vmatprep.subr.bf16.mxu1 %v1961_v25 }
 0x436   : > { %990 = vmatpush1.bf16.msra.mxu0 %v1942_v22  ;;  %1031 = vmatpush1.bf16.msra.mxu1 %v1979_v28 }
 0x437   : > { %991 = vmatprep.subr.bf16.mxu0 %v1948_v23  ;;  %1032 = vmatprep.subr.bf16.mxu1 %v1985_v29 }
 0x43a   : > { %992 = vmatpush1.bf16.msra.mxu0 %v1967_v26  ;;  %1033 = vmatpush1.bf16.msra.mxu1 %v1998_v32 }
 0x43b   : > { %993 = vmatprep.subr.bf16.mxu0 %v1973_v27  ;;  %1034 = vmatprep.subr.bf16.mxu1 %v2004_v33 }
 0x43e   : > { %994 = vmatpush1.bf16.msra.mxu0 %v1991_v30  ;;  %1035 = vmatpush1.bf16.msra.mxu1 %v2011_v35 }
 0x43f   : > { %1097 = vmatprep.subr.bf16.mxu0 %v1824_v1  ;;  %1138 = vmatprep.subr.bf16.mxu1 %v1854_v7  ;;  %v1486_v1 = vld [vmem:[%s1814_s18 + $0x98] sm:$0xff] }
 0x4e1   : > { %v895_v54 = vpop.f32.mrf.mxu0  ;;  %v936_v55 = vpop.f32.mrf.mxu1 }
 0x4e2   : > { %v943_v57 = vadd.f32 %v1483_v36, %v895_v54  ;;  %v945_v40 = vadd.f32 %v1485_v37, %v936_v55  ;;  %v1729_v37 = vld [vmem:[%s2391_s1 + $0xac] ss:$16 sps:$4 sm:$0xff]  }
 0x4e3   : > { %v897_v58 = vpop.f32.mrf.mxu0  ;;  %v938_v59 = vpop.f32.mrf.mxu1 }
 0x4e4   : > { %v1487_v60 = vmul.f32 -1.442695, %v943_v57  ;;  %v944_v61 = vadd.f32 %v1484_v56, %v897_v58  ;;  %v946_v7 = vadd.f32 %v1486_v1, %v938_v59  ;;  %v1727_v1 = vld [vmem:[%s2391_s1 + $0xc8] ss:$16 sps:$4 sm:$0xff]  }
 0x4e5   : > { %v899_v62 = vpop.f32.mrf.mxu0  ;;  %v940_v63 = vpop.f32.mrf.mxu1 }
 0x4e6   : > { %1656 = vpow2.f32 %v1487_v60  ;;  %v1488_v0 = vmul.f32 -1.442695, %v944_v61  ;;  %v1489_v38 = vmul.f32 -1.442695, %v946_v7  ;;  %v1722_v62 = vld [vmem:[%s2391_s1 + $0xe0] ss:$16 sps:$4 sm:$0xff]  }
 0x4e7   : > { %v900_v31 = vpop.f32.mrf.mxu0  ;;  %v941_v34 = vpop.f32.mrf.mxu1  ;;  %v1723_v63 = vld [vmem:[%s2391_s1 + $0xe8] ss:$16 sps:$4 sm:$0xff]   ;;  %v1728_v7 = vld [vmem:[%s2391_s1 + $0xa4] ss:$16 sps:$4 sm:$0xff]  }
 0x4e8   : > { %1658 = vpow2.f32 %v1488_v0  ;;  %v1724_v0 = vld [vmem:[%s2391_s1 + $0xc4] ss:$16 sps:$4 sm:$0xff]   ;;  %v1725_v31 = vld [vmem:[%s2391_s1 + $0xcc] ss:$16 sps:$4 sm:$0xff]   ;;  %v1726_v34 = vld [vmem:[%s2391_s1 + $0xc0] ss:$16 sps:$4 sm:$0xff]  }
 0x4e9   : > { %1660 = vpow2.f32 %v1489_v38  ;;  %v1731_v38 = vld [vmem:[%s2391_s1 + $0xa8] ss:$16 sps:$4 sm:$0xff]  }
 0x4f3   : > { %v1657_v39 = vpop.eup %1656 }
 0x4f4   : > { %v950_v42 = vadd.f32 1.0, %v1657_v39  ;;  %v1732_v39 = vld [vmem:[%s2391_s1 + $0x84] ss:$16 sps:$4 sm:$0xff]  }
 0x4f5   : > { %v1659_v43 = vpop.eup %1658 }
 0x4f6   : > { %1662 = vrcp.f32 %v950_v42  ;;  %v956_v44 = vadd.f32 1.0, %v1659_v43  ;;  %v1661_v45 = vpop.eup %1660  ;;  %v1734_v42 = vld [vmem:[%s2391_s1 + $0x80] ss:$16 sps:$4 sm:$0xff]   ;;  %v1735_v43 = vld [vmem:[%s2391_s1 + $0x88] ss:$16 sps:$4 sm:$0xff]  }
 0x4f7   : > { %1664 = vtanh.f32 %v945_v40  ;;  %v963_v49 = vadd.f32 1.0, %v1661_v45  ;;  %v1733_v40 = vld [vmem:[%s2391_s1 + $0x8c] ss:$16 sps:$4 sm:$0xff]  }
 0x4f8   : > { %1666 = vrcp.f32 %v956_v44  ;;  %v1736_v44 = vld [vmem:[%s2391_s1 + $0x64] ss:$16 sps:$4 sm:$0xff]   ;;  %v1737_v45 = vld [vmem:[%s2391_s1 + $0x6c] ss:$16 sps:$4 sm:$0xff]  }
 0x4f9   : > { %1668 = vrcp.f32 %v963_v49  ;;  %v1741_v49 = vld [vmem:[%s2391_s1 + $0x4c] ss:$16 sps:$4 sm:$0xff]  }
 0x503   : > { %v1663_v46 = vpop.eup %1662 }
 0x504   : > { %v1665_v47 = vpop.eup %1664 }
 0x505   : > { %v1667_v48 = vpop.eup %1666  ;;  %v967_v50 = vmul.f32 %v1665_v47, %v1663_v46  ;;  %v1738_v46 = vld [vmem:[%s2391_s1 + $0x60] ss:$16 sps:$4 sm:$0xff]   ;;  %v1739_v47 = vld [vmem:[%s2391_s1 + $0x68] ss:$16 sps:$4 sm:$0xff]  }
 0x506   : > { %v966_v51 = vmul.f32 %v1667_v48, %v2184_v41  ;;  %v1669_v53 = vpop.eup %1668  ;;  %v1740_v48 = vld [vmem:[%s2391_s1 + $0x44] ss:$16 sps:$4 sm:$0xff]  }
 0x508   : > { %v2227_v52 = vadd.f32 %v967_v50, %v966_v51  ;;  %v1742_v50 = vld [vmem:[%s2391_s1 + $0x40] ss:$16 sps:$4 sm:$0xff]   ;;  %v1743_v51 = vld [vmem:[%s2391_s1 + $0x48] ss:$16 sps:$4 sm:$0xff]  }
 0x50a   : > { %1670 = vtanh.f32 %v2227_v52 }
 0x517   : > { %v1671_v36 = vpop.eup %1670 }
 0x518   : > { %v970_v54 = vmul.f32 %v1671_v36, %v1669_v53  ;;  %v1745_v53 = vld [vmem:[%s2391_s1 + $0x2c] ss:$16 sps:$4 sm:$0xff]   ;;  %v1746_v36 = vld [vmem:[%s2391_s1 + $0x20] ss:$16 sps:$4 sm:$0xff]  }
 0x51a   : > { %1490 = vst [vmem:[%s1819_s21 + $0x20] sm:$0xff] %v970_v54  ;;  %v978_v55 = vpack.c.bf16 %v970_v54, %v970_v54  ;;  %v1747_v54 = vld [vmem:[%s2391_s1 + $0x28] ss:$16 sps:$4 sm:$0xff]  }
 0x51c   : > { %1012 = vmatmul.mubr.bf16.vlgmr.msra.gmra.mxu0 %v978_v55  ;;  %1053 = vmatmul.mubr.bf16.vlgmr.msra.gmra.mxu1 %v978_v55  ;;  %v1748_v55 = vld [vmem:[%s2391_s1 + $0x4] ss:$16 sps:$4 sm:$0xff]  }
 0x51d   : > { %1098 = vmatpush1.bf16.msra.mxu0 %v1829_v2  ;;  %1139 = vmatpush1.bf16.msra.mxu1 %v1859_v8  ;;  %v1720_v2 = vld [vmem:[%s2391_s1 + $0xe4] ss:$16 sps:$4 sm:$0xff]  }
 0x51e   : > { %1099 = vmatprep.subr.bf16.mxu0 %v1837_v4  ;;  %1140 = vmatprep.subr.bf16.mxu1 %v1878_v11  ;;  %v1721_v4 = vld [vmem:[%s2391_s1 + $0xec] ss:$16 sps:$4 sm:$0xff]  }
 0x51f   : > { %1129 = vmatprep.mubr.bf16.mxu0 %v1777_v3  ;;  %1170 = vmatprep.mubr.bf16.mxu1 %v1777_v3 }
 0x521   : > { %1100 = vmatpush1.bf16.msra.mxu0 %v1843_v5  ;;  %1141 = vmatpush1.bf16.msra.mxu1 %v1883_v12  ;;  %v1491_v5 = vld [vmem:[%s1814_s18 + $0xa0] sm:$0xff] }
 0x522   : > { %1101 = vmatprep.subr.bf16.mxu0 %v1849_v6  ;;  %1142 = vmatprep.subr.bf16.mxu1 %v1900_v15 }
 0x525   : > { %1102 = vmatpush1.bf16.msra.mxu0 %v1865_v9  ;;  %1143 = vmatpush1.bf16.msra.mxu1 %v1907_v16  ;;  %v1492_v9 = vld [vmem:[%s1814_s18 + $0xa8] sm:$0xff] }
 0x526   : > { %1103 = vmatprep.subr.bf16.mxu0 %v1872_v10  ;;  %1144 = vmatprep.subr.bf16.mxu1 %v1913_v17 }
 0x529   : > { %1104 = vmatpush1.bf16.msra.mxu0 %v1890_v13  ;;  %1145 = vmatpush1.bf16.msra.mxu1 %v1931_v20  ;;  %v1494_v20 = vld [vmem:[%s1814_s18 + $0xb8] sm:$0xff] }
 0x52a   : > { %1105 = vmatprep.subr.bf16.mxu0 %v1895_v14  ;;  %1146 = vmatprep.subr.bf16.mxu1 %v1937_v21 }
 0x52d   : > { %1106 = vmatpush1.bf16.msra.mxu0 %v1919_v18  ;;  %1147 = vmatpush1.bf16.msra.mxu1 %v1955_v24 }
 0x52e   : > { %1107 = vmatprep.subr.bf16.mxu0 %v1925_v19  ;;  %1148 = vmatprep.subr.bf16.mxu1 %v1961_v25 }
 0x531   : > { %1108 = vmatpush1.bf16.msra.mxu0 %v1942_v22  ;;  %1149 = vmatpush1.bf16.msra.mxu1 %v1979_v28  ;;  %v1493_v22 = vld [vmem:[%s1814_s18 + $0xb0] sm:$0xff] }
 0x532   : > { %1109 = vmatprep.subr.bf16.mxu0 %v1948_v23  ;;  %1150 = vmatprep.subr.bf16.mxu1 %v1985_v29 }
 0x535   : > { %1110 = vmatpush1.bf16.msra.mxu0 %v1967_v26  ;;  %1151 = vmatpush1.bf16.msra.mxu1 %v1998_v32 }
 0x536   : > { %1111 = vmatprep.subr.bf16.mxu0 %v1973_v27  ;;  %1152 = vmatprep.subr.bf16.mxu1 %v2004_v33 }
 0x539   : > { %1112 = vmatpush1.bf16.msra.mxu0 %v1991_v30  ;;  %1153 = vmatpush1.bf16.msra.mxu1 %v2011_v35 }
 0x53a   : > { %1215 = vmatprep.subr.bf16.mxu0 %v1720_v2  ;;  %1256 = vmatprep.subr.bf16.mxu1 %v1721_v4  ;;  %v1749_v2 = vld [vmem:[%s2391_s1 + $0xc] ss:$16 sps:$4 sm:$0xff]   ;;  %v1750_v4 = vld [vmem:[%s2391_s1] ss:$16 sps:$4 sm:$0xff]  }
 0x5dc   : > { %v1013_v6 = vpop.f32.mrf.mxu0  ;;  %v1054_v8 = vpop.f32.mrf.mxu1 }
 0x5dd   : > { %v1061_v10 = vadd.f32 %v1491_v5, %v1013_v6  ;;  %v1063_v25 = vadd.f32 %v1493_v22, %v1054_v8  ;;  %v1751_v5 = vld [vmem:[%s2391_s1 + $0x8] ss:$16 sps:$4 sm:$0xff]   ;;  %v1499_v6 = vld [vmem:[%s1814_s18 + $0xc0] sm:$0xff] }
 0x5de   : > { %v1015_v11 = vpop.f32.mrf.mxu0  ;;  %v1056_v12 = vpop.f32.mrf.mxu1 }
 0x5df   : > { %v1495_v13 = vmul.f32 -1.442695, %v1061_v10  ;;  %v1062_v14 = vadd.f32 %v1492_v9, %v1015_v11  ;;  %v1064_v21 = vadd.f32 %v1494_v20, %v1056_v12  ;;  %v1500_v10 = vld [vmem:[%s1814_s18 + $0xc8] sm:$0xff] }
 0x5e0   : > { %v1017_v15 = vpop.f32.mrf.mxu0  ;;  %v1058_v16 = vpop.f32.mrf.mxu1 }
 0x5e1   : > { %1672 = vpow2.f32 %v1495_v13  ;;  %v1496_v17 = vmul.f32 -1.442695, %v1062_v14  ;;  %v1497_v23 = vmul.f32 -1.442695, %v1064_v21  ;;  %v1502_v21 = vld [vmem:[%s1814_s18 + $0xd8] sm:$0xff] }
 0x5e2   : > { %v1018_v18 = vpop.f32.mrf.mxu0  ;;  %v1059_v19 = vpop.f32.mrf.mxu1 }
 0x5e3   : > { %1674 = vpow2.f32 %v1496_v17 }
 0x5e4   : > { %1676 = vpow2.f32 %v1497_v23  ;;  %v1501_v23 = vld [vmem:[%s1814_s18 + $0xd0] sm:$0xff] }
 0x5ee   : > { %v1673_v24 = vpop.eup %1672 }
 0x5ef   : > { %v1068_v26 = vadd.f32 1.0, %v1673_v24 }
 0x5f0   : > { %v1675_v27 = vpop.eup %1674 }
 0x5f1   : > { %1678 = vrcp.f32 %v1068_v26  ;;  %v1074_v28 = vadd.f32 1.0, %v1675_v27  ;;  %v1677_v29 = vpop.eup %1676 }
 0x5f2   : > { %1680 = vtanh.f32 %v1063_v25  ;;  %v1081_v35 = vadd.f32 1.0, %v1677_v29 }
 0x5f3   : > { %1682 = vrcp.f32 %v1074_v28 }
 0x5f4   : > { %1684 = vrcp.f32 %v1081_v35 }
 0x5fe   : > { %v1679_v30 = vpop.eup %1678 }
 0x5ff   : > { %v1681_v32 = vpop.eup %1680 }
 0x600   : > { %v1683_v33 = vpop.eup %1682  ;;  %v1085_v41 = vmul.f32 %v1681_v32, %v1679_v30 }
 0x601   : > { %v1084_v56 = vmul.f32 %v1683_v33, %v2227_v52  ;;  %v1685_v58 = vpop.eup %1684  ;;  %v1744_v52 = vld [vmem:[%s2391_s1 + $0x24] ss:$16 sps:$4 sm:$0xff]  }
 0x603   : > { %v2274_v57 = vadd.f32 %v1085_v41, %v1084_v56 }
 0x605   : > { %1686 = vtanh.f32 %v2274_v57 }
 0x612   : > { %v1687_v59 = vpop.eup %1686 }
 0x613   : > { %v1088_v60 = vmul.f32 %v1687_v59, %v1685_v58 }
 0x615   : > { %1498 = vst [vmem:[%s1819_s21 + $0x28] sm:$0xff] %v1088_v60  ;;  %v1096_v61 = vpack.c.bf16 %v1088_v60, %v1088_v60 }
 0x617   : > { %1130 = vmatmul.mubr.bf16.vlgmr.msra.gmra.mxu0 %v1096_v61  ;;  %1171 = vmatmul.mubr.bf16.vlgmr.msra.gmra.mxu1 %v1096_v61 }
 0x618   : > { %1216 = vmatpush1.bf16.msra.mxu0 %v1722_v62  ;;  %1257 = vmatpush1.bf16.msra.mxu1 %v1723_v63 }
 0x619   : > { %1217 = vmatprep.subr.bf16.mxu0 %v1724_v0  ;;  %1258 = vmatprep.subr.bf16.mxu1 %v1725_v31  ;;  %v1507_v0 = vld [vmem:[%s1814_s18 + $0xe0] sm:$0xff] }
 0x61a   : > { %1247 = vmatprep.mubr.bf16.mxu0 %v1777_v3  ;;  %1288 = vmatprep.mubr.bf16.mxu1 %v1777_v3  ;;  %v1730_v3 = vld [vmem:[%s2391_s1 + $0xa0] ss:$16 sps:$4 sm:$0xff]  }
 0x61c   : > { %1218 = vmatpush1.bf16.msra.mxu0 %v1726_v34  ;;  %1259 = vmatpush1.bf16.msra.mxu1 %v1727_v1  ;;  %v1508_v1 = vld [vmem:[%s1814_s18 + $0xe8] sm:$0xff] }
 0x61d   : > { %1219 = vmatprep.subr.bf16.mxu0 %v1728_v7  ;;  %1260 = vmatprep.subr.bf16.mxu1 %v1729_v37 }
 0x620   : > { %1220 = vmatpush1.bf16.msra.mxu0 %v1730_v3  ;;  %1261 = vmatpush1.bf16.msra.mxu1 %v1731_v38 }
 0x621   : > { %1221 = vmatprep.subr.bf16.mxu0 %v1732_v39  ;;  %1262 = vmatprep.subr.bf16.mxu1 %v1733_v40 }
 0x624   : > { %1222 = vmatpush1.bf16.msra.mxu0 %v1734_v42  ;;  %1263 = vmatpush1.bf16.msra.mxu1 %v1735_v43 }
 0x625   : > { %1223 = vmatprep.subr.bf16.mxu0 %v1736_v44  ;;  %1264 = vmatprep.subr.bf16.mxu1 %v1737_v45  ;;  %v1510_v45 = vld [vmem:[%s1814_s18 + $0xf8] sm:$0xff] }
 0x628   : > { %1224 = vmatpush1.bf16.msra.mxu0 %v1738_v46  ;;  %1265 = vmatpush1.bf16.msra.mxu1 %v1739_v47  ;;  %v1509_v47 = vld [vmem:[%s1814_s18 + $0xf0] sm:$0xff] }
 0x629   : > { %1225 = vmatprep.subr.bf16.mxu0 %v1740_v48  ;;  %1266 = vmatprep.subr.bf16.mxu1 %v1741_v49 }
 0x62c   : > { %1226 = vmatpush1.bf16.msra.mxu0 %v1742_v50  ;;  %1267 = vmatpush1.bf16.msra.mxu1 %v1743_v51 }
 0x62d   : > { %1227 = vmatprep.subr.bf16.mxu0 %v1744_v52  ;;  %1268 = vmatprep.subr.bf16.mxu1 %v1745_v53 }
 0x630   : > { %1228 = vmatpush1.bf16.msra.mxu0 %v1746_v36  ;;  %1269 = vmatpush1.bf16.msra.mxu1 %v1747_v54 }
 0x631   : > { %1229 = vmatprep.subr.bf16.mxu0 %v1748_v55  ;;  %1270 = vmatprep.subr.bf16.mxu1 %v1749_v2 }
 0x634   : > { %1230 = vmatpush1.bf16.msra.mxu0 %v1750_v4  ;;  %1271 = vmatpush1.bf16.msra.mxu1 %v1751_v5 }
 0x6d7   : > { %v1131_v8 = vpop.f32.mrf.mxu0  ;;  %v1172_v9 = vpop.f32.mrf.mxu1 }
 0x6d8   : > { %v1179_v11 = vadd.f32 %v1499_v6, %v1131_v8  ;;  %v1181_v26 = vadd.f32 %v1501_v23, %v1172_v9 }
 0x6d9   : > { %v1133_v12 = vpop.f32.mrf.mxu0  ;;  %v1174_v13 = vpop.f32.mrf.mxu1 }
 0x6da   : > { %v1503_v14 = vmul.f32 -1.442695, %v1179_v11  ;;  %v1180_v15 = vadd.f32 %v1500_v10, %v1133_v12  ;;  %v1182_v22 = vadd.f32 %v1502_v21, %v1174_v13 }
 0x6db   : > { %v1135_v16 = vpop.f32.mrf.mxu0  ;;  %v1176_v17 = vpop.f32.mrf.mxu1 }
 0x6dc   : > { %1688 = vpow2.f32 %v1503_v14  ;;  %v1504_v18 = vmul.f32 -1.442695, %v1180_v15  ;;  %v1505_v24 = vmul.f32 -1.442695, %v1182_v22 }
 0x6dd   : > { %v1136_v19 = vpop.f32.mrf.mxu0  ;;  %v1177_v20 = vpop.f32.mrf.mxu1 }
 0x6de   : > { %1690 = vpow2.f32 %v1504_v18 }
 0x6df   : > { %1692 = vpow2.f32 %v1505_v24 }
 0x6e9   : > { %v1689_v25 = vpop.eup %1688 }
 0x6ea   : > { %v1186_v27 = vadd.f32 1.0, %v1689_v25 }
 0x6eb   : > { %v1691_v28 = vpop.eup %1690 }
 0x6ec   : > { %1694 = vrcp.f32 %v1186_v27  ;;  %v1192_v29 = vadd.f32 1.0, %v1691_v28  ;;  %v1693_v30 = vpop.eup %1692 }
 0x6ed   : > { %1696 = vtanh.f32 %v1181_v26  ;;  %v1199_v41 = vadd.f32 1.0, %v1693_v30 }
 0x6ee   : > { %1698 = vrcp.f32 %v1192_v29 }
 0x6ef   : > { %1700 = vrcp.f32 %v1199_v41 }
 0x6f9   : > { %v1695_v32 = vpop.eup %1694 }
 0x6fa   : > { %v1697_v33 = vpop.eup %1696 }
 0x6fb   : > { %v1699_v35 = vpop.eup %1698  ;;  %v1203_v56 = vmul.f32 %v1697_v33, %v1695_v32 }
 0x6fc   : > { %v1202_v58 = vmul.f32 %v1699_v35, %v2274_v57  ;;  %v1701_v60 = vpop.eup %1700 }
 0x6fe   : > { %v1204_v59 = vadd.f32 %v1203_v56, %v1202_v58 }
 0x700   : > { %1702 = vtanh.f32 %v1204_v59 }
 0x70d   : > { %v1703_v61 = vpop.eup %1702 }
 0x70e   : > { %v1206_v62 = vmul.f32 %v1703_v61, %v1701_v60 }
 0x710   : > { %1506 = vst [vmem:[%s1819_s21 + $0x30] sm:$0xff] %v1206_v62  ;;  %v1214_v63 = vpack.c.bf16 %v1206_v62, %v1206_v62 }
 0x712   : > { %1248 = vmatmul.mubr.bf16.vlgmr.msra.gmra.mxu0 %v1214_v63  ;;  %1289 = vmatmul.mubr.bf16.vlgmr.msra.gmra.mxu1 %v1214_v63 }
 0x7d2   : > { %v1249_v31 = vpop.f32.mrf.mxu0  ;;  %v1290_v34 = vpop.f32.mrf.mxu1 }
 0x7d3   : > { %v1297_v7 = vadd.f32 %v1507_v0, %v1249_v31  ;;  %v1299_v50 = vadd.f32 %v1509_v47, %v1290_v34 }
 0x7d4   : > { %v1251_v37 = vpop.f32.mrf.mxu0  ;;  %v1292_v3 = vpop.f32.mrf.mxu1 }
 0x7d5   : > { %v1511_v57 = vmul.f32 -1.442695, %v1297_v7  ;;  %v1298_v38 = vadd.f32 %v1508_v1, %v1251_v37  ;;  %v1300_v46 = vadd.f32 %v1510_v45, %v1292_v3 }
 0x7d6   : > { %v1253_v39 = vpop.f32.mrf.mxu0  ;;  %v1294_v40 = vpop.f32.mrf.mxu1 }
 0x7d7   : > { %1704 = vpow2.f32 %v1511_v57  ;;  %v1512_v42 = vmul.f32 -1.442695, %v1298_v38  ;;  %v1513_v48 = vmul.f32 -1.442695, %v1300_v46 }
 0x7d8   : > { %v1254_v43 = vpop.f32.mrf.mxu0  ;;  %v1295_v44 = vpop.f32.mrf.mxu1 }
 0x7d9   : > { %1706 = vpow2.f32 %v1512_v42 }
 0x7da   : > { %1708 = vpow2.f32 %v1513_v48 }
 0x7e4   : > { %v1705_v49 = vpop.eup %1704 }
 0x7e5   : > { %v1304_v51 = vadd.f32 1.0, %v1705_v49 }
 0x7e6   : > { %v1707_v52 = vpop.eup %1706 }
 0x7e7   : > { %1710 = vrcp.f32 %v1304_v51  ;;  %v1310_v53 = vadd.f32 1.0, %v1707_v52  ;;  %v1709_v36 = vpop.eup %1708 }
 0x7e8   : > { %1712 = vtanh.f32 %v1299_v50  ;;  %v1317_v4 = vadd.f32 1.0, %v1709_v36 }
 0x7e9   : > { %1714 = vrcp.f32 %v1310_v53 }
 0x7ea   : > { %1716 = vrcp.f32 %v1317_v4 }
 0x7f4   : > { %v1711_v54 = vpop.eup %1710 }
 0x7f5   : > { %v1713_v55 = vpop.eup %1712 }
 0x7f6   : > { %v1715_v2 = vpop.eup %1714  ;;  %v1321_v5 = vmul.f32 %v1713_v55, %v1711_v54 }
 0x7f7   : > { %v1320_v6 = vmul.f32 %v1715_v2, %v1204_v59  ;;  %v1717_v9 = vpop.eup %1716 }
 0x7f9   : > { %v1322_v8 = vadd.f32 %v1321_v5, %v1320_v6 }
 0x7fb   : > { %1718 = vtanh.f32 %v1322_v8  ;;  %1328 = vst [vmem:[#allocation3] sm:$0xff] %v1322_v8 }
 0x808   : > { %v1719_v10 = vpop.eup %1718 }
 0x809   : > { %v1324_v11 = vmul.f32 %v1719_v10, %v1717_v9 }
 0x80b   : > { %1514 = vst [vmem:[%s1819_s21 + $0x38] sm:$0xff] %v1324_v11  ;;  %1327 = vst [vmem:[#allocation2] sm:$0xff] %v1324_v11 }
 0x80c PF: > { %s12_s11 = sadd.s32 1, %s1774_s11   ;;  %s2393_s9 = smov %s1770_s10 }
 0x80d   : > { %p9_p6 = scmp.ge.s32.totalorder %s12_s11, 6   ;;  %s2394_s10 = smov %s2396_s12 }
 0x80f   :  { %11 = sbr.rel (!%p9_p6) target bundleno = 2 (0x2), region = 76 }

// kernel: lstm_model_forward.8
= control target key start
LH: loop header
LB: loop body
LE: loop exit
PB: predicated region body
PF: predicated region fallthrough
CT: control target
= control target key end

     0   :  { %v880_v1 = vmov 0   ;;  %s1324_s1 = inlined_call_operand.vmem [shape: bf16[128,256], index: 1, kind: input, shape index: {}]   ;;  %s1325_s0 = inlined_call_operand.vmem [shape: f32[256,128], index: 0, kind: input, shape index: {}]   ;;  %s1326_s2 = inlined_call_operand.vmem [shape: f32[1,256], index: 2, kind: input, shape index: {}]   ;;  %s1327_s3 = inlined_call_operand.vmem [shape: f32[256,256], index: 3, kind: output, shape index: {}]  }
   0x1   :  { %v856_v0 = vld [vmem:[%s1324_s1 + $0x74] ss:$8 sps:$4 sm:$0xff]   ;;  %323 = vmatprep.mubr.bf16.mxu0 %v880_v1  ;;  %403 = vmatprep.mubr.bf16.mxu1 %v880_v1  ;;  %v858_v2 = vld [vmem:[%s1324_s1 + $0x70] ss:$8 sps:$4 sm:$0xff]   ;;  %v859_v3 = vld [vmem:[%s1324_s1 + $0x64] ss:$8 sps:$4 sm:$0xff]  }
   0x2   :  { %291 = vmatprep.subr.bf16.mxu0 %v856_v0  ;;  %839 = vmatprep.subr.bf16.mxu1 %v856_v0  ;;  %v861_v4 = vld [vmem:[%s1324_s1 + $0x60] ss:$8 sps:$4 sm:$0xff]   ;;  %v862_v5 = vld [vmem:[%s1324_s1 + $0x54] ss:$8 sps:$4 sm:$0xff]   ;;  %v864_v6 = vld [vmem:[%s1324_s1 + $0x50] ss:$8 sps:$4 sm:$0xff]  }
   0x3   :  { %292 = vmatpush1.bf16.msra.mxu0 %v858_v2  ;;  %847 = vmatpush1.bf16.msra.mxu1 %v858_v2  ;;  %v865_v7 = vld [vmem:[%s1324_s1 + $0x44] ss:$8 sps:$4 sm:$0xff]   ;;  %v867_v8 = vld [vmem:[%s1324_s1 + $0x40] ss:$8 sps:$4 sm:$0xff]   ;;  %v868_v9 = vld [vmem:[%s1324_s1 + $0x34] ss:$8 sps:$4 sm:$0xff]   ;;  %v681_v2 = vlaneseq }
   0x4   :  { %293 = vmatprep.subr.bf16.mxu0 %v859_v3  ;;  %840 = vmatprep.subr.bf16.mxu1 %v859_v3  ;;  %v870_v10 = vld [vmem:[%s1324_s1 + $0x30] ss:$8 sps:$4 sm:$0xff]   ;;  %v871_v11 = vld [vmem:[%s1324_s1 + $0x24] ss:$8 sps:$4 sm:$0xff]   ;;  %v873_v12 = vld [vmem:[%s1324_s1 + $0x20] ss:$8 sps:$4 sm:$0xff]  }
   0x5   :  { %v874_v13 = vld [vmem:[%s1324_s1 + $0x14] ss:$8 sps:$4 sm:$0xff]   ;;  %v876_v14 = vld [vmem:[%s1324_s1 + $0x10] ss:$8 sps:$4 sm:$0xff]   ;;  %v877_v15 = vld [vmem:[%s1324_s1 + $0x4] ss:$8 sps:$4 sm:$0xff]  }
   0x6   :  { %v879_v16 = vld [vmem:[%s1324_s1] ss:$8 sps:$4 sm:$0xff]   ;;  %v149_v23 = vld [vmem:[%s1325_s0 + $0x10] sm:$0xff]  ;;  %v150_v24 = vld [vmem:[%s1325_s0 + $0x18] sm:$0xff]  ;;  %v682_v3 = vshrl.u32 %v681_v2, 7 }
   0x7   :  { %294 = vmatpush1.bf16.msra.mxu0 %v861_v4  ;;  %848 = vmatpush1.bf16.msra.mxu1 %v861_v4  ;;  %v147_v17 = vld [vmem:[%s1325_s0] sm:$0xff]  ;;  %v148_v18 = vld [vmem:[%s1325_s0 + $0x8] sm:$0xff]  ;;  %v165_v25 = vld [vmem:[%s1325_s0 + $0x90] sm:$0xff]  ;;  %v180_v27 = vpack.c.bf16 %v150_v24, %v149_v23 }
   0x8   :  { %295 = vmatprep.subr.bf16.mxu0 %v862_v5  ;;  %841 = vmatprep.subr.bf16.mxu1 %v862_v5  ;;  %v163_v19 = vld [vmem:[%s1325_s0 + $0x80] sm:$0xff]  ;;  %v164_v20 = vld [vmem:[%s1325_s0 + $0x88] sm:$0xff]  ;;  %v179_v21 = vpack.c.bf16 %v148_v18, %v147_v17  ;;  %v166_v26 = vld [vmem:[%s1325_s0 + $0x98] sm:$0xff]  ;;  %v683_v4 = vsub.s32 0, %v682_v3  ;;  %v687_v5 = vsub.s32 1, %v682_v3 }
   0x9   :  { %v187_v22 = vpack.c.bf16 %v164_v20, %v163_v19  ;;  %v188_v28 = vpack.c.bf16 %v166_v26, %v165_v25  ;;  %v151_v29 = vld [vmem:[%s1325_s0 + $0x20] sm:$0xff]  ;;  %v152_v30 = vld [vmem:[%s1325_s0 + $0x28] sm:$0xff]  ;;  %v153_v35 = vld [vmem:[%s1325_s0 + $0x30] sm:$0xff] }
   0xa   :  { %v167_v31 = vld [vmem:[%s1325_s0 + $0xa0] sm:$0xff]  ;;  %v168_v32 = vld [vmem:[%s1325_s0 + $0xa8] sm:$0xff]  ;;  %v181_v33 = vpack.c.bf16 %v152_v30, %v151_v29  ;;  %v154_v36 = vld [vmem:[%s1325_s0 + $0x38] sm:$0xff] }
   0xb   :  { %296 = vmatpush1.bf16.msra.mxu0 %v864_v6  ;;  %849 = vmatpush1.bf16.msra.mxu1 %v864_v6  ;;  %v189_v34 = vpack.c.bf16 %v168_v32, %v167_v31  ;;  %v169_v37 = vld [vmem:[%s1325_s0 + $0xb0] sm:$0xff]  ;;  %v170_v38 = vld [vmem:[%s1325_s0 + $0xb8] sm:$0xff]  ;;  %v182_v39 = vpack.c.bf16 %v154_v36, %v153_v35  ;;  %v155_v41 = vld [vmem:[%s1325_s0 + $0x40] sm:$0xff] }
   0xc   :  { %297 = vmatprep.subr.bf16.mxu0 %v865_v7  ;;  %842 = vmatprep.subr.bf16.mxu1 %v865_v7  ;;  %v190_v40 = vpack.c.bf16 %v170_v38, %v169_v37  ;;  %v156_v42 = vld [vmem:[%s1325_s0 + $0x48] sm:$0xff]  ;;  %v171_v43 = vld [vmem:[%s1325_s0 + $0xc0] sm:$0xff]  ;;  %v157_v47 = vld [vmem:[%s1325_s0 + $0x50] sm:$0xff] }
   0xd   :  { %v172_v44 = vld [vmem:[%s1325_s0 + $0xc8] sm:$0xff]  ;;  %v183_v45 = vpack.c.bf16 %v156_v42, %v155_v41  ;;  %v158_v48 = vld [vmem:[%s1325_s0 + $0x58] sm:$0xff]  ;;  %v173_v49 = vld [vmem:[%s1325_s0 + $0xd0] sm:$0xff] }
   0xe   :  { %v191_v46 = vpack.c.bf16 %v172_v44, %v171_v43  ;;  %v174_v50 = vld [vmem:[%s1325_s0 + $0xd8] sm:$0xff]  ;;  %v184_v51 = vpack.c.bf16 %v158_v48, %v157_v47  ;;  %v159_v53 = vld [vmem:[%s1325_s0 + $0x60] sm:$0xff]  ;;  %v160_v54 = vld [vmem:[%s1325_s0 + $0x68] sm:$0xff] }
   0xf   :  { %298 = vmatpush1.bf16.msra.mxu0 %v867_v8  ;;  %850 = vmatpush1.bf16.msra.mxu1 %v867_v8  ;;  %v192_v52 = vpack.c.bf16 %v174_v50, %v173_v49  ;;  %v175_v55 = vld [vmem:[%s1325_s0 + $0xe0] sm:$0xff]  ;;  %v176_v56 = vld [vmem:[%s1325_s0 + $0xe8] sm:$0xff]  ;;  %v185_v57 = vpack.c.bf16 %v160_v54, %v159_v53  ;;  %v161_v59 = vld [vmem:[%s1325_s0 + $0x70] sm:$0xff] }
  0x10   :  { %299 = vmatprep.subr.bf16.mxu0 %v868_v9  ;;  %843 = vmatprep.subr.bf16.mxu1 %v868_v9  ;;  %v193_v58 = vpack.c.bf16 %v176_v56, %v175_v55  ;;  %v162_v60 = vld [vmem:[%s1325_s0 + $0x78] sm:$0xff]  ;;  %v177_v61 = vld [vmem:[%s1325_s0 + $0xf0] sm:$0xff] }
  0x11   :  { %v178_v62 = vld [vmem:[%s1325_s0 + $0xf8] sm:$0xff]  ;;  %v186_v63 = vpack.c.bf16 %v162_v60, %v161_v59 }
  0x12   :  { %v194_v0 = vpack.c.bf16 %v178_v62, %v177_v61 }
  0x13   :  { %300 = vmatpush1.bf16.msra.mxu0 %v870_v10  ;;  %851 = vmatpush1.bf16.msra.mxu1 %v870_v10 }
  0x14   :  { %301 = vmatprep.subr.bf16.mxu0 %v871_v11  ;;  %844 = vmatprep.subr.bf16.mxu1 %v871_v11 }
  0x17   :  { %302 = vmatpush1.bf16.msra.mxu0 %v873_v12  ;;  %852 = vmatpush1.bf16.msra.mxu1 %v873_v12 }
  0x18   :  { %303 = vmatprep.subr.bf16.mxu0 %v874_v13  ;;  %845 = vmatprep.subr.bf16.mxu1 %v874_v13 }
  0x1b   :  { %304 = vmatpush1.bf16.msra.mxu0 %v876_v14  ;;  %853 = vmatpush1.bf16.msra.mxu1 %v876_v14 }
  0x1c   :  { %305 = vmatprep.subr.bf16.mxu0 %v877_v15  ;;  %846 = vmatprep.subr.bf16.mxu1 %v877_v15 }
  0x1f   :  { %306 = vmatpush1.bf16.msra.mxu0 %v879_v16  ;;  %854 = vmatpush1.bf16.msra.mxu1 %v879_v16 }
  0x22   :  { %324 = vmatmul.mubr.bf16.vlgmr.msra.gmra.mxu0 %v179_v21  ;;  %404 = vmatmul.mubr.bf16.vlgmr.msra.gmra.mxu1 %v187_v22 }
  0x23   :  { %333 = vmatprep.mubr.bf16.mxu0 %v880_v1  ;;  %413 = vmatprep.mubr.bf16.mxu1 %v880_v1 }
  0x2a   :  { %334 = vmatmul.mubr.bf16.gmra.mxu0 %v180_v27  ;;  %414 = vmatmul.mubr.bf16.gmra.mxu1 %v188_v28 }
  0x2b   :  { %343 = vmatprep.mubr.bf16.mxu0 %v880_v1  ;;  %423 = vmatprep.mubr.bf16.mxu1 %v880_v1 }
  0x32   :  { %344 = vmatmul.mubr.bf16.gmra.mxu0 %v181_v33  ;;  %424 = vmatmul.mubr.bf16.gmra.mxu1 %v189_v34 }
  0x33   :  { %353 = vmatprep.mubr.bf16.mxu0 %v880_v1  ;;  %433 = vmatprep.mubr.bf16.mxu1 %v880_v1 }
  0x3a   :  { %354 = vmatmul.mubr.bf16.gmra.mxu0 %v182_v39  ;;  %434 = vmatmul.mubr.bf16.gmra.mxu1 %v190_v40 }
  0x3b   :  { %363 = vmatprep.mubr.bf16.mxu0 %v880_v1  ;;  %443 = vmatprep.mubr.bf16.mxu1 %v880_v1 }
  0x42   :  { %364 = vmatmul.mubr.bf16.gmra.mxu0 %v183_v45  ;;  %444 = vmatmul.mubr.bf16.gmra.mxu1 %v191_v46 }
  0x43   :  { %373 = vmatprep.mubr.bf16.mxu0 %v880_v1  ;;  %453 = vmatprep.mubr.bf16.mxu1 %v880_v1 }
  0x4a   :  { %374 = vmatmul.mubr.bf16.gmra.mxu0 %v184_v51  ;;  %454 = vmatmul.mubr.bf16.gmra.mxu1 %v192_v52 }
  0x4b   :  { %383 = vmatprep.mubr.bf16.mxu0 %v880_v1  ;;  %463 = vmatprep.mubr.bf16.mxu1 %v880_v1 }
  0x52   :  { %384 = vmatmul.mubr.bf16.gmra.mxu0 %v185_v57  ;;  %464 = vmatmul.mubr.bf16.gmra.mxu1 %v193_v58 }
  0x53   :  { %393 = vmatprep.mubr.bf16.mxu0 %v880_v1  ;;  %473 = vmatprep.mubr.bf16.mxu1 %v880_v1  ;;  %v679_v1 = vld [vmem:[%s1326_s2] sm:$0x3] }
  0x54   :  { %v1064_v6 = vrot.slane %v679_v1, %v683_v4  ;;  %v1066_v7 = vrot.slane %v679_v1, %v687_v5 }
  0x5a   :  { %394 = vmatmul.mubr.bf16.gmra.mxu0 %v186_v63  ;;  %474 = vmatmul.mubr.bf16.gmra.mxu1 %v194_v0 }
  0xe2   :  { %v325_v8 = vpop.f32.mrf.mxu0  ;;  %v405_v9 = vpop.f32.mrf.mxu1 }
  0xe3   :  { %v691_v10 = vadd.f32 %v1064_v6, %v325_v8  ;;  %v723_v11 = vadd.f32 %v1064_v6, %v405_v9 }
  0xe4   :  { %v327_v12 = vpop.f32.mrf.mxu0  ;;  %v407_v13 = vpop.f32.mrf.mxu1 }
  0xe5   :  { %755 = vst [vmem:[%s1327_s3] sm:$0xff] %v691_v10  ;;  %787 = vst [vmem:[%s1327_s3 + $0x100] sm:$0xff] %v723_v11  ;;  %v692_v14 = vadd.f32 %v1066_v7, %v327_v12  ;;  %v724_v15 = vadd.f32 %v1066_v7, %v407_v13 }
  0xe6   :  { %v329_v16 = vpop.f32.mrf.mxu0  ;;  %v409_v17 = vpop.f32.mrf.mxu1 }
  0xe7   :  { %756 = vst [vmem:[%s1327_s3 + $0x8] sm:$0xff] %v692_v14  ;;  %788 = vst [vmem:[%s1327_s3 + $0x108] sm:$0xff] %v724_v15  ;;  %v693_v18 = vadd.f32 %v1064_v6, %v329_v16  ;;  %v725_v19 = vadd.f32 %v1064_v6, %v409_v17 }
  0xe8   :  { %v331_v20 = vpop.f32.mrf.mxu0  ;;  %v411_v21 = vpop.f32.mrf.mxu1 }
  0xe9   :  { %757 = vst [vmem:[%s1327_s3 + $0x10] sm:$0xff] %v693_v18  ;;  %789 = vst [vmem:[%s1327_s3 + $0x110] sm:$0xff] %v725_v19  ;;  %v694_v22 = vadd.f32 %v1066_v7, %v331_v20  ;;  %v726_v23 = vadd.f32 %v1066_v7, %v411_v21 }
  0xea   :  { %v335_v24 = vpop.f32.mrf.mxu0  ;;  %v415_v25 = vpop.f32.mrf.mxu1 }
  0xeb   :  { %758 = vst [vmem:[%s1327_s3 + $0x18] sm:$0xff] %v694_v22  ;;  %790 = vst [vmem:[%s1327_s3 + $0x118] sm:$0xff] %v726_v23  ;;  %v695_v26 = vadd.f32 %v1064_v6, %v335_v24  ;;  %v727_v27 = vadd.f32 %v1064_v6, %v415_v25 }
  0xec   :  { %v337_v28 = vpop.f32.mrf.mxu0  ;;  %v417_v29 = vpop.f32.mrf.mxu1 }
  0xed   :  { %759 = vst [vmem:[%s1327_s3 + $0x20] sm:$0xff] %v695_v26  ;;  %791 = vst [vmem:[%s1327_s3 + $0x120] sm:$0xff] %v727_v27  ;;  %v696_v30 = vadd.f32 %v1066_v7, %v337_v28  ;;  %v728_v31 = vadd.f32 %v1066_v7, %v417_v29 }
  0xee   :  { %v339_v32 = vpop.f32.mrf.mxu0  ;;  %v419_v33 = vpop.f32.mrf.mxu1 }
  0xef   :  { %760 = vst [vmem:[%s1327_s3 + $0x28] sm:$0xff] %v696_v30  ;;  %792 = vst [vmem:[%s1327_s3 + $0x128] sm:$0xff] %v728_v31  ;;  %v697_v34 = vadd.f32 %v1064_v6, %v339_v32  ;;  %v729_v35 = vadd.f32 %v1064_v6, %v419_v33 }
  0xf0   :  { %v341_v36 = vpop.f32.mrf.mxu0  ;;  %v421_v37 = vpop.f32.mrf.mxu1 }
  0xf1   :  { %761 = vst [vmem:[%s1327_s3 + $0x30] sm:$0xff] %v697_v34  ;;  %793 = vst [vmem:[%s1327_s3 + $0x130] sm:$0xff] %v729_v35  ;;  %v698_v38 = vadd.f32 %v1066_v7, %v341_v36  ;;  %v730_v39 = vadd.f32 %v1066_v7, %v421_v37 }
  0xf2   :  { %v345_v40 = vpop.f32.mrf.mxu0  ;;  %v425_v41 = vpop.f32.mrf.mxu1 }
  0xf3   :  { %762 = vst [vmem:[%s1327_s3 + $0x38] sm:$0xff] %v698_v38  ;;  %794 = vst [vmem:[%s1327_s3 + $0x138] sm:$0xff] %v730_v39  ;;  %v699_v42 = vadd.f32 %v1064_v6, %v345_v40  ;;  %v731_v43 = vadd.f32 %v1064_v6, %v425_v41 }
  0xf4   :  { %v347_v44 = vpop.f32.mrf.mxu0  ;;  %v427_v45 = vpop.f32.mrf.mxu1 }
  0xf5   :  { %763 = vst [vmem:[%s1327_s3 + $0x40] sm:$0xff] %v699_v42  ;;  %795 = vst [vmem:[%s1327_s3 + $0x140] sm:$0xff] %v731_v43  ;;  %v700_v46 = vadd.f32 %v1066_v7, %v347_v44  ;;  %v732_v47 = vadd.f32 %v1066_v7, %v427_v45 }
  0xf6   :  { %v349_v48 = vpop.f32.mrf.mxu0  ;;  %v429_v49 = vpop.f32.mrf.mxu1 }
  0xf7   :  { %764 = vst [vmem:[%s1327_s3 + $0x48] sm:$0xff] %v700_v46  ;;  %796 = vst [vmem:[%s1327_s3 + $0x148] sm:$0xff] %v732_v47  ;;  %v701_v50 = vadd.f32 %v1064_v6, %v349_v48  ;;  %v733_v51 = vadd.f32 %v1064_v6, %v429_v49 }
  0xf8   :  { %v351_v52 = vpop.f32.mrf.mxu0  ;;  %v431_v53 = vpop.f32.mrf.mxu1 }
  0xf9   :  { %765 = vst [vmem:[%s1327_s3 + $0x50] sm:$0xff] %v701_v50  ;;  %797 = vst [vmem:[%s1327_s3 + $0x150] sm:$0xff] %v733_v51  ;;  %v702_v54 = vadd.f32 %v1066_v7, %v351_v52  ;;  %v734_v55 = vadd.f32 %v1066_v7, %v431_v53 }
  0xfa   :  { %v355_v56 = vpop.f32.mrf.mxu0  ;;  %v435_v57 = vpop.f32.mrf.mxu1 }
  0xfb   :  { %766 = vst [vmem:[%s1327_s3 + $0x58] sm:$0xff] %v702_v54  ;;  %798 = vst [vmem:[%s1327_s3 + $0x158] sm:$0xff] %v734_v55  ;;  %v703_v58 = vadd.f32 %v1064_v6, %v355_v56  ;;  %v735_v59 = vadd.f32 %v1064_v6, %v435_v57 }
  0xfc   :  { %v357_v60 = vpop.f32.mrf.mxu0  ;;  %v437_v61 = vpop.f32.mrf.mxu1 }
  0xfd   :  { %767 = vst [vmem:[%s1327_s3 + $0x60] sm:$0xff] %v703_v58  ;;  %799 = vst [vmem:[%s1327_s3 + $0x160] sm:$0xff] %v735_v59  ;;  %v704_v62 = vadd.f32 %v1066_v7, %v357_v60  ;;  %v736_v63 = vadd.f32 %v1066_v7, %v437_v61 }
  0xfe   :  { %v359_v0 = vpop.f32.mrf.mxu0  ;;  %v439_v2 = vpop.f32.mrf.mxu1 }
  0xff   :  { %768 = vst [vmem:[%s1327_s3 + $0x68] sm:$0xff] %v704_v62  ;;  %800 = vst [vmem:[%s1327_s3 + $0x168] sm:$0xff] %v736_v63  ;;  %v705_v3 = vadd.f32 %v1064_v6, %v359_v0  ;;  %v737_v4 = vadd.f32 %v1064_v6, %v439_v2 }
 0x100   :  { %v361_v1 = vpop.f32.mrf.mxu0  ;;  %v441_v5 = vpop.f32.mrf.mxu1 }
 0x101   :  { %769 = vst [vmem:[%s1327_s3 + $0x70] sm:$0xff] %v705_v3  ;;  %801 = vst [vmem:[%s1327_s3 + $0x170] sm:$0xff] %v737_v4  ;;  %v706_v8 = vadd.f32 %v1066_v7, %v361_v1  ;;  %v738_v9 = vadd.f32 %v1066_v7, %v441_v5 }
 0x102   :  { %v365_v10 = vpop.f32.mrf.mxu0  ;;  %v445_v11 = vpop.f32.mrf.mxu1 }
 0x103   :  { %770 = vst [vmem:[%s1327_s3 + $0x78] sm:$0xff] %v706_v8  ;;  %802 = vst [vmem:[%s1327_s3 + $0x178] sm:$0xff] %v738_v9  ;;  %v707_v12 = vadd.f32 %v1064_v6, %v365_v10  ;;  %v739_v13 = vadd.f32 %v1064_v6, %v445_v11 }
 0x104   :  { %v367_v14 = vpop.f32.mrf.mxu0  ;;  %v447_v15 = vpop.f32.mrf.mxu1 }
 0x105   :  { %771 = vst [vmem:[%s1327_s3 + $0x80] sm:$0xff] %v707_v12  ;;  %803 = vst [vmem:[%s1327_s3 + $0x180] sm:$0xff] %v739_v13  ;;  %v708_v16 = vadd.f32 %v1066_v7, %v367_v14  ;;  %v740_v17 = vadd.f32 %v1066_v7, %v447_v15 }
 0x106   :  { %v369_v18 = vpop.f32.mrf.mxu0  ;;  %v449_v19 = vpop.f32.mrf.mxu1 }
 0x107   :  { %772 = vst [vmem:[%s1327_s3 + $0x88] sm:$0xff] %v708_v16  ;;  %804 = vst [vmem:[%s1327_s3 + $0x188] sm:$0xff] %v740_v17  ;;  %v709_v20 = vadd.f32 %v1064_v6, %v369_v18  ;;  %v741_v21 = vadd.f32 %v1064_v6, %v449_v19 }
 0x108   :  { %v371_v22 = vpop.f32.mrf.mxu0  ;;  %v451_v23 = vpop.f32.mrf.mxu1 }
 0x109   :  { %773 = vst [vmem:[%s1327_s3 + $0x90] sm:$0xff] %v709_v20  ;;  %805 = vst [vmem:[%s1327_s3 + $0x190] sm:$0xff] %v741_v21  ;;  %v710_v24 = vadd.f32 %v1066_v7, %v371_v22  ;;  %v742_v25 = vadd.f32 %v1066_v7, %v451_v23 }
 0x10a   :  { %v375_v26 = vpop.f32.mrf.mxu0  ;;  %v455_v27 = vpop.f32.mrf.mxu1 }
 0x10b   :  { %774 = vst [vmem:[%s1327_s3 + $0x98] sm:$0xff] %v710_v24  ;;  %806 = vst [vmem:[%s1327_s3 + $0x198] sm:$0xff] %v742_v25  ;;  %v711_v28 = vadd.f32 %v1064_v6, %v375_v26  ;;  %v743_v29 = vadd.f32 %v1064_v6, %v455_v27 }
 0x10c   :  { %v377_v30 = vpop.f32.mrf.mxu0  ;;  %v457_v31 = vpop.f32.mrf.mxu1 }
 0x10d   :  { %775 = vst [vmem:[%s1327_s3 + $0xa0] sm:$0xff] %v711_v28  ;;  %807 = vst [vmem:[%s1327_s3 + $0x1a0] sm:$0xff] %v743_v29  ;;  %v712_v32 = vadd.f32 %v1066_v7, %v377_v30  ;;  %v744_v33 = vadd.f32 %v1066_v7, %v457_v31 }
 0x10e   :  { %v379_v34 = vpop.f32.mrf.mxu0  ;;  %v459_v35 = vpop.f32.mrf.mxu1 }
 0x10f   :  { %776 = vst [vmem:[%s1327_s3 + $0xa8] sm:$0xff] %v712_v32  ;;  %808 = vst [vmem:[%s1327_s3 + $0x1a8] sm:$0xff] %v744_v33  ;;  %v713_v36 = vadd.f32 %v1064_v6, %v379_v34  ;;  %v745_v37 = vadd.f32 %v1064_v6, %v459_v35 }
 0x110   :  { %v381_v38 = vpop.f32.mrf.mxu0  ;;  %v461_v39 = vpop.f32.mrf.mxu1 }
 0x111   :  { %777 = vst [vmem:[%s1327_s3 + $0xb0] sm:$0xff] %v713_v36  ;;  %809 = vst [vmem:[%s1327_s3 + $0x1b0] sm:$0xff] %v745_v37  ;;  %v714_v40 = vadd.f32 %v1066_v7, %v381_v38  ;;  %v746_v41 = vadd.f32 %v1066_v7, %v461_v39 }
 0x112   :  { %v385_v42 = vpop.f32.mrf.mxu0  ;;  %v465_v43 = vpop.f32.mrf.mxu1 }
 0x113   :  { %778 = vst [vmem:[%s1327_s3 + $0xb8] sm:$0xff] %v714_v40  ;;  %810 = vst [vmem:[%s1327_s3 + $0x1b8] sm:$0xff] %v746_v41  ;;  %v715_v44 = vadd.f32 %v1064_v6, %v385_v42  ;;  %v747_v45 = vadd.f32 %v1064_v6, %v465_v43 }
 0x114   :  { %v387_v46 = vpop.f32.mrf.mxu0  ;;  %v467_v47 = vpop.f32.mrf.mxu1 }
 0x115   :  { %779 = vst [vmem:[%s1327_s3 + $0xc0] sm:$0xff] %v715_v44  ;;  %811 = vst [vmem:[%s1327_s3 + $0x1c0] sm:$0xff] %v747_v45  ;;  %v716_v48 = vadd.f32 %v1066_v7, %v387_v46  ;;  %v748_v49 = vadd.f32 %v1066_v7, %v467_v47 }
 0x116   :  { %v389_v50 = vpop.f32.mrf.mxu0  ;;  %v469_v51 = vpop.f32.mrf.mxu1 }
 0x117   :  { %780 = vst [vmem:[%s1327_s3 + $0xc8] sm:$0xff] %v716_v48  ;;  %812 = vst [vmem:[%s1327_s3 + $0x1c8] sm:$0xff] %v748_v49  ;;  %v717_v52 = vadd.f32 %v1064_v6, %v389_v50  ;;  %v749_v53 = vadd.f32 %v1064_v6, %v469_v51 }
 0x118   :  { %v391_v54 = vpop.f32.mrf.mxu0  ;;  %v471_v55 = vpop.f32.mrf.mxu1 }
 0x119   :  { %781 = vst [vmem:[%s1327_s3 + $0xd0] sm:$0xff] %v717_v52  ;;  %813 = vst [vmem:[%s1327_s3 + $0x1d0] sm:$0xff] %v749_v53  ;;  %v718_v56 = vadd.f32 %v1066_v7, %v391_v54  ;;  %v750_v57 = vadd.f32 %v1066_v7, %v471_v55 }
 0x11a   :  { %v395_v58 = vpop.f32.mrf.mxu0  ;;  %v475_v59 = vpop.f32.mrf.mxu1 }
 0x11b   :  { %782 = vst [vmem:[%s1327_s3 + $0xd8] sm:$0xff] %v718_v56  ;;  %814 = vst [vmem:[%s1327_s3 + $0x1d8] sm:$0xff] %v750_v57  ;;  %v719_v60 = vadd.f32 %v1064_v6, %v395_v58  ;;  %v751_v61 = vadd.f32 %v1064_v6, %v475_v59 }
 0x11c   :  { %v397_v62 = vpop.f32.mrf.mxu0  ;;  %v477_v63 = vpop.f32.mrf.mxu1 }
 0x11d   :  { %783 = vst [vmem:[%s1327_s3 + $0xe0] sm:$0xff] %v719_v60  ;;  %815 = vst [vmem:[%s1327_s3 + $0x1e0] sm:$0xff] %v751_v61  ;;  %v720_v0 = vadd.f32 %v1066_v7, %v397_v62  ;;  %v752_v2 = vadd.f32 %v1066_v7, %v477_v63 }
 0x11e   :  { %v399_v3 = vpop.f32.mrf.mxu0  ;;  %v479_v4 = vpop.f32.mrf.mxu1 }
 0x11f   :  { %784 = vst [vmem:[%s1327_s3 + $0xe8] sm:$0xff] %v720_v0  ;;  %816 = vst [vmem:[%s1327_s3 + $0x1e8] sm:$0xff] %v752_v2  ;;  %v721_v1 = vadd.f32 %v1064_v6, %v399_v3  ;;  %v753_v5 = vadd.f32 %v1064_v6, %v479_v4 }
 0x120   :  { %v401_v8 = vpop.f32.mrf.mxu0  ;;  %v481_v9 = vpop.f32.mrf.mxu1 }
 0x121   :  { %785 = vst [vmem:[%s1327_s3 + $0xf0] sm:$0xff] %v721_v1  ;;  %817 = vst [vmem:[%s1327_s3 + $0x1f0] sm:$0xff] %v753_v5  ;;  %v722_v10 = vadd.f32 %v1066_v7, %v401_v8  ;;  %v754_v11 = vadd.f32 %v1066_v7, %v481_v9 }
 0x123   :  { %786 = vst [vmem:[%s1327_s3 + $0xf8] sm:$0xff] %v722_v10  ;;  %818 = vst [vmem:[%s1327_s3 + $0x1f8] sm:$0xff] %v754_v11 }

// kernel: lstm_model_forward.9
= control target key start
LH: loop header
LB: loop body
LE: loop exit
PB: predicated region body
PF: predicated region fallthrough
CT: control target
= control target key end

     0   :  { %s1196_s1 = inlined_call_operand.vmem [shape: bf16[256,128], index: 1, kind: input, shape index: {}]   ;;  %s1197_s0 = inlined_call_operand.vmem [shape: f32[256,256], index: 0, kind: input, shape index: {}]   ;;  %s1198_s2 = inlined_call_operand.vmem [shape: f32[1,128], index: 2, kind: input, shape index: {}]   ;;  %s1199_s3 = inlined_call_operand.vmem [shape: f32[256,128], index: 3, kind: output, shape index: {}]  }
   0x1   :  { %v787_v0 = vld [vmem:[%s1196_s1 + $0x78] sm:$0xff]   ;;  %v789_v2 = vld [vmem:[%s1196_s1 + $0x70] sm:$0xff]   ;;  %v791_v4 = vld [vmem:[%s1196_s1 + $0x68] sm:$0xff]  }
   0x2   :  { %v788_v1 = vld [vmem:[%s1196_s1 + $0x38] sm:$0xff]   ;;  %659 = vmatprep.subr.bf16.mxu0 %v787_v0  ;;  %771 = vmatprep.subr.bf16.mxu1 %v787_v0  ;;  %v790_v3 = vld [vmem:[%s1196_s1 + $0x30] sm:$0xff]   ;;  %v792_v5 = vld [vmem:[%s1196_s1 + $0x28] sm:$0xff]  }
   0x3   :  { %660 = vmatpush3.bf16.msra.mxu0 %v788_v1  ;;  %779 = vmatpush3.bf16.msra.mxu1 %v788_v1  ;;  %v793_v6 = vld [vmem:[%s1196_s1 + $0x60] sm:$0xff]   ;;  %v795_v8 = vld [vmem:[%s1196_s1 + $0x58] sm:$0xff]   ;;  %v797_v10 = vld [vmem:[%s1196_s1 + $0x50] sm:$0xff]  }
   0x4   :  { %661 = vmatprep.subr.bf16.mxu0 %v789_v2  ;;  %772 = vmatprep.subr.bf16.mxu1 %v789_v2  ;;  %v794_v7 = vld [vmem:[%s1196_s1 + $0x20] sm:$0xff]   ;;  %v796_v9 = vld [vmem:[%s1196_s1 + $0x18] sm:$0xff]   ;;  %v84_v11 = vld [vmem:[%s1197_s0 + $0x8] sm:$0xff] }
   0x5   :  { %v86_v12 = vld [vmem:[%s1197_s0 + $0x18] sm:$0xff]  ;;  %v116_v13 = vld [vmem:[%s1197_s0 + $0x108] sm:$0xff]  ;;  %v798_v17 = vld [vmem:[%s1196_s1 + $0x10] sm:$0xff]  }
   0x6   :  { %v148_v14 = vpack.c.bf16 %v86_v12, %v84_v11  ;;  %v118_v15 = vld [vmem:[%s1197_s0 + $0x118] sm:$0xff]  ;;  %v799_v18 = vld [vmem:[%s1196_s1 + $0x48] sm:$0xff]   ;;  %v801_v20 = vld [vmem:[%s1196_s1 + $0x40] sm:$0xff]  }
   0x7   :  { %662 = vmatpush3.bf16.msra.mxu0 %v790_v3  ;;  %780 = vmatpush3.bf16.msra.mxu1 %v790_v3  ;;  %v164_v16 = vpack.c.bf16 %v118_v15, %v116_v13  ;;  %v800_v19 = vld [vmem:[%s1196_s1 + $0x8] sm:$0xff]   ;;  %v802_v21 = vld [vmem:[%s1196_s1] sm:$0xff]   ;;  %v85_v23 = vld [vmem:[%s1197_s0 + $0x10] sm:$0xff] }
   0x8   :  { %663 = vmatprep.subr.bf16.mxu0 %v791_v4  ;;  %773 = vmatprep.subr.bf16.mxu1 %v791_v4  ;;  %v83_v22 = vld [vmem:[%s1197_s0] sm:$0xff]  ;;  %v117_v25 = vld [vmem:[%s1197_s0 + $0x110] sm:$0xff]  ;;  %v88_v26 = vld [vmem:[%s1197_s0 + $0x28] sm:$0xff] }
   0x9   :  { %339 = vmatprep.mubr.bf16.mxu0 %v148_v14  ;;  %403 = vmatprep.mubr.bf16.mxu1 %v164_v16  ;;  %v115_v24 = vld [vmem:[%s1197_s0 + $0x100] sm:$0xff]  ;;  %v90_v27 = vld [vmem:[%s1197_s0 + $0x38] sm:$0xff]  ;;  %v120_v28 = vld [vmem:[%s1197_s0 + $0x128] sm:$0xff]  ;;  %v147_v30 = vpack.c.bf16 %v85_v23, %v83_v22 }
   0xa   :  { %v122_v29 = vld [vmem:[%s1197_s0 + $0x138] sm:$0xff]  ;;  %v163_v31 = vpack.c.bf16 %v117_v25, %v115_v24  ;;  %v150_v32 = vpack.c.bf16 %v90_v27, %v88_v26  ;;  %v87_v34 = vld [vmem:[%s1197_s0 + $0x20] sm:$0xff]  ;;  %v89_v35 = vld [vmem:[%s1197_s0 + $0x30] sm:$0xff] }
   0xb   :  { %664 = vmatpush3.bf16.msra.mxu0 %v792_v5  ;;  %781 = vmatpush3.bf16.msra.mxu1 %v792_v5  ;;  %v166_v33 = vpack.c.bf16 %v122_v29, %v120_v28  ;;  %v119_v36 = vld [vmem:[%s1197_s0 + $0x120] sm:$0xff]  ;;  %v121_v37 = vld [vmem:[%s1197_s0 + $0x130] sm:$0xff]  ;;  %v92_v38 = vld [vmem:[%s1197_s0 + $0x48] sm:$0xff]  ;;  %v149_v42 = vpack.c.bf16 %v89_v35, %v87_v34 }
   0xc   :  { %665 = vmatprep.subr.bf16.mxu0 %v793_v6  ;;  %774 = vmatprep.subr.bf16.mxu1 %v793_v6  ;;  %v94_v39 = vld [vmem:[%s1197_s0 + $0x58] sm:$0xff]  ;;  %v124_v40 = vld [vmem:[%s1197_s0 + $0x148] sm:$0xff]  ;;  %v165_v43 = vpack.c.bf16 %v121_v37, %v119_v36  ;;  %v91_v46 = vld [vmem:[%s1197_s0 + $0x40] sm:$0xff] }
   0xd   :  { %v126_v41 = vld [vmem:[%s1197_s0 + $0x158] sm:$0xff]  ;;  %v152_v44 = vpack.c.bf16 %v94_v39, %v92_v38  ;;  %v93_v47 = vld [vmem:[%s1197_s0 + $0x50] sm:$0xff]  ;;  %v123_v48 = vld [vmem:[%s1197_s0 + $0x140] sm:$0xff] }
   0xe   :  { %v168_v45 = vpack.c.bf16 %v126_v41, %v124_v40  ;;  %v125_v49 = vld [vmem:[%s1197_s0 + $0x150] sm:$0xff]  ;;  %v96_v50 = vld [vmem:[%s1197_s0 + $0x68] sm:$0xff]  ;;  %v98_v51 = vld [vmem:[%s1197_s0 + $0x78] sm:$0xff]  ;;  %v151_v54 = vpack.c.bf16 %v93_v47, %v91_v46 }
   0xf   :  { %666 = vmatpush3.bf16.msra.mxu0 %v794_v7  ;;  %782 = vmatpush3.bf16.msra.mxu1 %v794_v7  ;;  %v128_v52 = vld [vmem:[%s1197_s0 + $0x168] sm:$0xff]  ;;  %v130_v53 = vld [vmem:[%s1197_s0 + $0x178] sm:$0xff]  ;;  %v167_v55 = vpack.c.bf16 %v125_v49, %v123_v48  ;;  %v154_v56 = vpack.c.bf16 %v98_v51, %v96_v50  ;;  %v95_v58 = vld [vmem:[%s1197_s0 + $0x60] sm:$0xff] }
  0x10   :  { %667 = vmatprep.subr.bf16.mxu0 %v795_v8  ;;  %775 = vmatprep.subr.bf16.mxu1 %v795_v8  ;;  %v170_v57 = vpack.c.bf16 %v130_v53, %v128_v52  ;;  %v97_v59 = vld [vmem:[%s1197_s0 + $0x70] sm:$0xff]  ;;  %v127_v60 = vld [vmem:[%s1197_s0 + $0x160] sm:$0xff]  ;;  %v100_v62 = vld [vmem:[%s1197_s0 + $0x88] sm:$0xff] }
  0x11   :  { %v129_v61 = vld [vmem:[%s1197_s0 + $0x170] sm:$0xff]  ;;  %v102_v63 = vld [vmem:[%s1197_s0 + $0x98] sm:$0xff]  ;;  %v132_v0 = vld [vmem:[%s1197_s0 + $0x188] sm:$0xff]  ;;  %v153_v2 = vpack.c.bf16 %v97_v59, %v95_v58 }
  0x12   :  { %v134_v1 = vld [vmem:[%s1197_s0 + $0x198] sm:$0xff]  ;;  %v169_v3 = vpack.c.bf16 %v129_v61, %v127_v60  ;;  %v156_v4 = vpack.c.bf16 %v102_v63, %v100_v62  ;;  %v99_v6 = vld [vmem:[%s1197_s0 + $0x80] sm:$0xff]  ;;  %v101_v7 = vld [vmem:[%s1197_s0 + $0x90] sm:$0xff] }
  0x13   :  { %668 = vmatpush3.bf16.msra.mxu0 %v796_v9  ;;  %783 = vmatpush3.bf16.msra.mxu1 %v796_v9  ;;  %v172_v5 = vpack.c.bf16 %v134_v1, %v132_v0  ;;  %v131_v8 = vld [vmem:[%s1197_s0 + $0x180] sm:$0xff]  ;;  %v133_v9 = vld [vmem:[%s1197_s0 + $0x190] sm:$0xff]  ;;  %v106_v11 = vld [vmem:[%s1197_s0 + $0xb8] sm:$0xff]  ;;  %v155_v14 = vpack.c.bf16 %v101_v7, %v99_v6 }
  0x14   :  { %669 = vmatprep.subr.bf16.mxu0 %v797_v10  ;;  %776 = vmatprep.subr.bf16.mxu1 %v797_v10  ;;  %v104_v10 = vld [vmem:[%s1197_s0 + $0xa8] sm:$0xff]  ;;  %v138_v13 = vld [vmem:[%s1197_s0 + $0x1b8] sm:$0xff]  ;;  %v171_v15 = vpack.c.bf16 %v133_v9, %v131_v8  ;;  %v1066_v51 = vld [vmem:[%s1198_s2] ss:$0 sm:$0xff] }
  0x15   :  { %v136_v12 = vld [vmem:[%s1197_s0 + $0x1a8] sm:$0xff]  ;;  %v158_v16 = vpack.c.bf16 %v106_v11, %v104_v10  ;;  %v110_v23 = vld [vmem:[%s1197_s0 + $0xd8] sm:$0xff] }
  0x16   :  { %v108_v22 = vld [vmem:[%s1197_s0 + $0xc8] sm:$0xff]  ;;  %v142_v25 = vld [vmem:[%s1197_s0 + $0x1d8] sm:$0xff] }
  0x17   :  { %670 = vmatpush3.bf16.msra.mxu0 %v798_v17  ;;  %784 = vmatpush3.bf16.msra.mxu1 %v798_v17  ;;  %v174_v17 = vpack.c.bf16 %v138_v13, %v136_v12  ;;  %v140_v24 = vld [vmem:[%s1197_s0 + $0x1c8] sm:$0xff]  ;;  %v160_v28 = vpack.c.bf16 %v110_v23, %v108_v22  ;;  %v114_v35 = vld [vmem:[%s1197_s0 + $0xf8] sm:$0xff] }
  0x18   :  { %671 = vmatprep.subr.bf16.mxu0 %v799_v18  ;;  %777 = vmatprep.subr.bf16.mxu1 %v799_v18  ;;  %v103_v18 = vld [vmem:[%s1197_s0 + $0xa0] sm:$0xff]  ;;  %v176_v29 = vpack.c.bf16 %v142_v25, %v140_v24  ;;  %v112_v34 = vld [vmem:[%s1197_s0 + $0xe8] sm:$0xff]  ;;  %v146_v37 = vld [vmem:[%s1197_s0 + $0x1f8] sm:$0xff] }
  0x19   :  { %v144_v36 = vld [vmem:[%s1197_s0 + $0x1e8] sm:$0xff]  ;;  %v162_v40 = vpack.c.bf16 %v114_v35, %v112_v34 }
  0x1a   :  { %v178_v41 = vpack.c.bf16 %v146_v37, %v144_v36 }
  0x1b   :  { %672 = vmatpush3.bf16.msra.mxu0 %v800_v19  ;;  %785 = vmatpush3.bf16.msra.mxu1 %v800_v19  ;;  %v105_v19 = vld [vmem:[%s1197_s0 + $0xb0] sm:$0xff] }
  0x1c   :  { %673 = vmatprep.subr.bf16.mxu0 %v801_v20  ;;  %778 = vmatprep.subr.bf16.mxu1 %v801_v20  ;;  %v135_v20 = vld [vmem:[%s1197_s0 + $0x1a0] sm:$0xff]  ;;  %v157_v26 = vpack.c.bf16 %v105_v19, %v103_v18 }
  0x1f   :  { %674 = vmatpush3.bf16.msra.mxu0 %v802_v21  ;;  %786 = vmatpush3.bf16.msra.mxu1 %v802_v21  ;;  %v137_v21 = vld [vmem:[%s1197_s0 + $0x1b0] sm:$0xff] }
  0x20   :  { %v173_v27 = vpack.c.bf16 %v137_v21, %v135_v20 }
  0x22   :  { %340 = vmatmul.mubr.bf16.vlgmr.msra.gmra.mxu0 %v147_v30  ;;  %404 = vmatmul.mubr.bf16.vlgmr.msra.gmra.mxu1 %v163_v31  ;;  %v107_v30 = vld [vmem:[%s1197_s0 + $0xc0] sm:$0xff]  ;;  %v109_v31 = vld [vmem:[%s1197_s0 + $0xd0] sm:$0xff] }
  0x23   :  { %347 = vmatprep.mubr.bf16.mxu0 %v150_v32  ;;  %411 = vmatprep.mubr.bf16.mxu1 %v166_v33  ;;  %v139_v32 = vld [vmem:[%s1197_s0 + $0x1c0] sm:$0xff]  ;;  %v141_v33 = vld [vmem:[%s1197_s0 + $0x1d0] sm:$0xff]  ;;  %v159_v38 = vpack.c.bf16 %v109_v31, %v107_v30 }
  0x24   :  { %v175_v39 = vpack.c.bf16 %v141_v33, %v139_v32 }
  0x2a   :  { %348 = vmatmul.mubr.bf16.gmra.mxu0 %v149_v42  ;;  %412 = vmatmul.mubr.bf16.gmra.mxu1 %v165_v43  ;;  %v111_v42 = vld [vmem:[%s1197_s0 + $0xe0] sm:$0xff]  ;;  %v113_v43 = vld [vmem:[%s1197_s0 + $0xf0] sm:$0xff] }
  0x2b   :  { %355 = vmatprep.mubr.bf16.mxu0 %v152_v44  ;;  %419 = vmatprep.mubr.bf16.mxu1 %v168_v45  ;;  %v143_v44 = vld [vmem:[%s1197_s0 + $0x1e0] sm:$0xff]  ;;  %v145_v45 = vld [vmem:[%s1197_s0 + $0x1f0] sm:$0xff]  ;;  %v161_v46 = vpack.c.bf16 %v113_v43, %v111_v42 }
  0x2c   :  { %v177_v47 = vpack.c.bf16 %v145_v45, %v143_v44 }
  0x32   :  { %356 = vmatmul.mubr.bf16.gmra.mxu0 %v151_v54  ;;  %420 = vmatmul.mubr.bf16.gmra.mxu1 %v167_v55 }
  0x33   :  { %363 = vmatprep.mubr.bf16.mxu0 %v154_v56  ;;  %427 = vmatprep.mubr.bf16.mxu1 %v170_v57 }
  0x3a   :  { %364 = vmatmul.mubr.bf16.gmra.mxu0 %v153_v2  ;;  %428 = vmatmul.mubr.bf16.gmra.mxu1 %v169_v3 }
  0x3b   :  { %371 = vmatprep.mubr.bf16.mxu0 %v156_v4  ;;  %435 = vmatprep.mubr.bf16.mxu1 %v172_v5 }
  0x42   :  { %372 = vmatmul.mubr.bf16.gmra.mxu0 %v155_v14  ;;  %436 = vmatmul.mubr.bf16.gmra.mxu1 %v171_v15 }
  0x43   :  { %379 = vmatprep.mubr.bf16.mxu0 %v158_v16  ;;  %443 = vmatprep.mubr.bf16.mxu1 %v174_v17 }
  0x4a   :  { %380 = vmatmul.mubr.bf16.gmra.mxu0 %v157_v26  ;;  %444 = vmatmul.mubr.bf16.gmra.mxu1 %v173_v27 }
  0x4b   :  { %387 = vmatprep.mubr.bf16.mxu0 %v160_v28  ;;  %451 = vmatprep.mubr.bf16.mxu1 %v176_v29 }
  0x52   :  { %388 = vmatmul.mubr.bf16.gmra.mxu0 %v159_v38  ;;  %452 = vmatmul.mubr.bf16.gmra.mxu1 %v175_v39 }
  0x53   :  { %395 = vmatprep.mubr.bf16.mxu0 %v162_v40  ;;  %459 = vmatprep.mubr.bf16.mxu1 %v178_v41 }
  0x5a   :  { %396 = vmatmul.mubr.bf16.gmra.mxu0 %v161_v46  ;;  %460 = vmatmul.mubr.bf16.gmra.mxu1 %v177_v47 }
  0xe2   :  { %v675_v48 = vpop.f32.mrf.mxu0  ;;  %v723_v49 = vpop.f32.mrf.mxu1 }
  0xe4   :  { %v676_v50 = vpop.f32.mrf.mxu0  ;;  %v724_v52 = vpop.f32.mrf.mxu1 }
  0xe5   :  { %v677_v53 = vadd.f32 %v676_v50, %v675_v48  ;;  %v725_v54 = vadd.f32 %v724_v52, %v723_v49 }
  0xe6   :  { %v678_v55 = vpop.f32.mrf.mxu0  ;;  %v726_v56 = vpop.f32.mrf.mxu1 }
  0xe7   :  { %v574_v57 = vadd.f32 %v677_v53, %v1066_v51  ;;  %v590_v58 = vadd.f32 %v725_v54, %v1066_v51 }
  0xe8   :  { %v679_v59 = vpop.f32.mrf.mxu0  ;;  %v727_v60 = vpop.f32.mrf.mxu1 }
  0xe9   :  { %606 = vst [vmem:[%s1199_s3] sm:$0xff] %v574_v57  ;;  %622 = vst [vmem:[%s1199_s3 + $0x80] sm:$0xff] %v590_v58  ;;  %v680_v61 = vadd.f32 %v679_v59, %v678_v55  ;;  %v728_v62 = vadd.f32 %v727_v60, %v726_v56 }
  0xea   :  { %v681_v63 = vpop.f32.mrf.mxu0  ;;  %v729_v0 = vpop.f32.mrf.mxu1 }
  0xeb   :  { %v575_v1 = vadd.f32 %v680_v61, %v1066_v51  ;;  %v591_v2 = vadd.f32 %v728_v62, %v1066_v51 }
  0xec   :  { %v682_v3 = vpop.f32.mrf.mxu0  ;;  %v730_v4 = vpop.f32.mrf.mxu1 }
  0xed   :  { %607 = vst [vmem:[%s1199_s3 + $0x8] sm:$0xff] %v575_v1  ;;  %623 = vst [vmem:[%s1199_s3 + $0x88] sm:$0xff] %v591_v2  ;;  %v683_v5 = vadd.f32 %v682_v3, %v681_v63  ;;  %v731_v6 = vadd.f32 %v730_v4, %v729_v0 }
  0xee   :  { %v684_v7 = vpop.f32.mrf.mxu0  ;;  %v732_v8 = vpop.f32.mrf.mxu1 }
  0xef   :  { %v576_v9 = vadd.f32 %v683_v5, %v1066_v51  ;;  %v592_v10 = vadd.f32 %v731_v6, %v1066_v51 }
  0xf0   :  { %v685_v11 = vpop.f32.mrf.mxu0  ;;  %v733_v12 = vpop.f32.mrf.mxu1 }
  0xf1   :  { %608 = vst [vmem:[%s1199_s3 + $0x10] sm:$0xff] %v576_v9  ;;  %624 = vst [vmem:[%s1199_s3 + $0x90] sm:$0xff] %v592_v10  ;;  %v686_v13 = vadd.f32 %v685_v11, %v684_v7  ;;  %v734_v14 = vadd.f32 %v733_v12, %v732_v8 }
  0xf2   :  { %v687_v15 = vpop.f32.mrf.mxu0  ;;  %v735_v16 = vpop.f32.mrf.mxu1 }
  0xf3   :  { %v577_v17 = vadd.f32 %v686_v13, %v1066_v51  ;;  %v593_v18 = vadd.f32 %v734_v14, %v1066_v51 }
  0xf4   :  { %v688_v19 = vpop.f32.mrf.mxu0  ;;  %v736_v20 = vpop.f32.mrf.mxu1 }
  0xf5   :  { %609 = vst [vmem:[%s1199_s3 + $0x18] sm:$0xff] %v577_v17  ;;  %625 = vst [vmem:[%s1199_s3 + $0x98] sm:$0xff] %v593_v18  ;;  %v689_v21 = vadd.f32 %v688_v19, %v687_v15  ;;  %v737_v22 = vadd.f32 %v736_v20, %v735_v16 }
  0xf6   :  { %v690_v23 = vpop.f32.mrf.mxu0  ;;  %v738_v24 = vpop.f32.mrf.mxu1 }
  0xf7   :  { %v578_v25 = vadd.f32 %v689_v21, %v1066_v51  ;;  %v594_v26 = vadd.f32 %v737_v22, %v1066_v51 }
  0xf8   :  { %v691_v27 = vpop.f32.mrf.mxu0  ;;  %v739_v28 = vpop.f32.mrf.mxu1 }
  0xf9   :  { %610 = vst [vmem:[%s1199_s3 + $0x20] sm:$0xff] %v578_v25  ;;  %626 = vst [vmem:[%s1199_s3 + $0xa0] sm:$0xff] %v594_v26  ;;  %v692_v29 = vadd.f32 %v691_v27, %v690_v23  ;;  %v740_v30 = vadd.f32 %v739_v28, %v738_v24 }
  0xfa   :  { %v693_v31 = vpop.f32.mrf.mxu0  ;;  %v741_v32 = vpop.f32.mrf.mxu1 }
  0xfb   :  { %v579_v33 = vadd.f32 %v692_v29, %v1066_v51  ;;  %v595_v34 = vadd.f32 %v740_v30, %v1066_v51 }
  0xfc   :  { %v694_v35 = vpop.f32.mrf.mxu0  ;;  %v742_v36 = vpop.f32.mrf.mxu1 }
  0xfd   :  { %611 = vst [vmem:[%s1199_s3 + $0x28] sm:$0xff] %v579_v33  ;;  %627 = vst [vmem:[%s1199_s3 + $0xa8] sm:$0xff] %v595_v34  ;;  %v695_v37 = vadd.f32 %v694_v35, %v693_v31  ;;  %v743_v38 = vadd.f32 %v742_v36, %v741_v32 }
  0xfe   :  { %v696_v39 = vpop.f32.mrf.mxu0  ;;  %v744_v40 = vpop.f32.mrf.mxu1 }
  0xff   :  { %v580_v41 = vadd.f32 %v695_v37, %v1066_v51  ;;  %v596_v42 = vadd.f32 %v743_v38, %v1066_v51 }
 0x100   :  { %v697_v43 = vpop.f32.mrf.mxu0  ;;  %v745_v44 = vpop.f32.mrf.mxu1 }
 0x101   :  { %612 = vst [vmem:[%s1199_s3 + $0x30] sm:$0xff] %v580_v41  ;;  %628 = vst [vmem:[%s1199_s3 + $0xb0] sm:$0xff] %v596_v42  ;;  %v698_v45 = vadd.f32 %v697_v43, %v696_v39  ;;  %v746_v46 = vadd.f32 %v745_v44, %v744_v40 }
 0x102   :  { %v699_v47 = vpop.f32.mrf.mxu0  ;;  %v747_v48 = vpop.f32.mrf.mxu1 }
 0x103   :  { %v581_v49 = vadd.f32 %v698_v45, %v1066_v51  ;;  %v597_v50 = vadd.f32 %v746_v46, %v1066_v51 }
 0x104   :  { %v700_v52 = vpop.f32.mrf.mxu0  ;;  %v748_v53 = vpop.f32.mrf.mxu1 }
 0x105   :  { %613 = vst [vmem:[%s1199_s3 + $0x38] sm:$0xff] %v581_v49  ;;  %629 = vst [vmem:[%s1199_s3 + $0xb8] sm:$0xff] %v597_v50  ;;  %v701_v54 = vadd.f32 %v700_v52, %v699_v47  ;;  %v749_v55 = vadd.f32 %v748_v53, %v747_v48 }
 0x106   :  { %v702_v56 = vpop.f32.mrf.mxu0  ;;  %v750_v57 = vpop.f32.mrf.mxu1 }
 0x107   :  { %v582_v58 = vadd.f32 %v701_v54, %v1066_v51  ;;  %v598_v59 = vadd.f32 %v749_v55, %v1066_v51 }
 0x108   :  { %v703_v60 = vpop.f32.mrf.mxu0  ;;  %v751_v61 = vpop.f32.mrf.mxu1 }
 0x109   :  { %614 = vst [vmem:[%s1199_s3 + $0x40] sm:$0xff] %v582_v58  ;;  %630 = vst [vmem:[%s1199_s3 + $0xc0] sm:$0xff] %v598_v59  ;;  %v704_v62 = vadd.f32 %v703_v60, %v702_v56  ;;  %v752_v63 = vadd.f32 %v751_v61, %v750_v57 }
 0x10a   :  { %v705_v0 = vpop.f32.mrf.mxu0  ;;  %v753_v1 = vpop.f32.mrf.mxu1 }
 0x10b   :  { %v583_v2 = vadd.f32 %v704_v62, %v1066_v51  ;;  %v599_v3 = vadd.f32 %v752_v63, %v1066_v51 }
 0x10c   :  { %v706_v4 = vpop.f32.mrf.mxu0  ;;  %v754_v5 = vpop.f32.mrf.mxu1 }
 0x10d   :  { %615 = vst [vmem:[%s1199_s3 + $0x48] sm:$0xff] %v583_v2  ;;  %631 = vst [vmem:[%s1199_s3 + $0xc8] sm:$0xff] %v599_v3  ;;  %v707_v6 = vadd.f32 %v706_v4, %v705_v0  ;;  %v755_v7 = vadd.f32 %v754_v5, %v753_v1 }
 0x10e   :  { %v708_v8 = vpop.f32.mrf.mxu0  ;;  %v756_v9 = vpop.f32.mrf.mxu1 }
 0x10f   :  { %v584_v10 = vadd.f32 %v707_v6, %v1066_v51  ;;  %v600_v11 = vadd.f32 %v755_v7, %v1066_v51 }
 0x110   :  { %v709_v12 = vpop.f32.mrf.mxu0  ;;  %v757_v13 = vpop.f32.mrf.mxu1 }
 0x111   :  { %616 = vst [vmem:[%s1199_s3 + $0x50] sm:$0xff] %v584_v10  ;;  %632 = vst [vmem:[%s1199_s3 + $0xd0] sm:$0xff] %v600_v11  ;;  %v710_v14 = vadd.f32 %v709_v12, %v708_v8  ;;  %v758_v15 = vadd.f32 %v757_v13, %v756_v9 }
 0x112   :  { %v711_v16 = vpop.f32.mrf.mxu0  ;;  %v759_v17 = vpop.f32.mrf.mxu1 }
 0x113   :  { %v585_v18 = vadd.f32 %v710_v14, %v1066_v51  ;;  %v601_v19 = vadd.f32 %v758_v15, %v1066_v51 }
 0x114   :  { %v712_v20 = vpop.f32.mrf.mxu0  ;;  %v760_v21 = vpop.f32.mrf.mxu1 }
 0x115   :  { %617 = vst [vmem:[%s1199_s3 + $0x58] sm:$0xff] %v585_v18  ;;  %633 = vst [vmem:[%s1199_s3 + $0xd8] sm:$0xff] %v601_v19  ;;  %v713_v22 = vadd.f32 %v712_v20, %v711_v16  ;;  %v761_v23 = vadd.f32 %v760_v21, %v759_v17 }
 0x116   :  { %v714_v24 = vpop.f32.mrf.mxu0  ;;  %v762_v25 = vpop.f32.mrf.mxu1 }
 0x117   :  { %v586_v26 = vadd.f32 %v713_v22, %v1066_v51  ;;  %v602_v27 = vadd.f32 %v761_v23, %v1066_v51 }
 0x118   :  { %v715_v28 = vpop.f32.mrf.mxu0  ;;  %v763_v29 = vpop.f32.mrf.mxu1 }
 0x119   :  { %618 = vst [vmem:[%s1199_s3 + $0x60] sm:$0xff] %v586_v26  ;;  %634 = vst [vmem:[%s1199_s3 + $0xe0] sm:$0xff] %v602_v27  ;;  %v716_v30 = vadd.f32 %v715_v28, %v714_v24  ;;  %v764_v31 = vadd.f32 %v763_v29, %v762_v25 }
 0x11a   :  { %v717_v32 = vpop.f32.mrf.mxu0  ;;  %v765_v33 = vpop.f32.mrf.mxu1 }
 0x11b   :  { %v587_v34 = vadd.f32 %v716_v30, %v1066_v51  ;;  %v603_v35 = vadd.f32 %v764_v31, %v1066_v51 }
 0x11c   :  { %v718_v36 = vpop.f32.mrf.mxu0  ;;  %v766_v37 = vpop.f32.mrf.mxu1 }
 0x11d   :  { %619 = vst [vmem:[%s1199_s3 + $0x68] sm:$0xff] %v587_v34  ;;  %635 = vst [vmem:[%s1199_s3 + $0xe8] sm:$0xff] %v603_v35  ;;  %v719_v38 = vadd.f32 %v718_v36, %v717_v32  ;;  %v767_v39 = vadd.f32 %v766_v37, %v765_v33 }
 0x11e   :  { %v720_v40 = vpop.f32.mrf.mxu0  ;;  %v768_v41 = vpop.f32.mrf.mxu1 }
 0x11f   :  { %v588_v42 = vadd.f32 %v719_v38, %v1066_v51  ;;  %v604_v43 = vadd.f32 %v767_v39, %v1066_v51 }
 0x120   :  { %v721_v44 = vpop.f32.mrf.mxu0  ;;  %v769_v45 = vpop.f32.mrf.mxu1 }
 0x121   :  { %620 = vst [vmem:[%s1199_s3 + $0x70] sm:$0xff] %v588_v42  ;;  %636 = vst [vmem:[%s1199_s3 + $0xf0] sm:$0xff] %v604_v43  ;;  %v722_v46 = vadd.f32 %v721_v44, %v720_v40  ;;  %v770_v47 = vadd.f32 %v769_v45, %v768_v41 }
 0x123   :  { %v589_v48 = vadd.f32 %v722_v46, %v1066_v51  ;;  %v605_v49 = vadd.f32 %v770_v47, %v1066_v51 }
 0x125   :  { %621 = vst [vmem:[%s1199_s3 + $0x78] sm:$0xff] %v589_v48  ;;  %637 = vst [vmem:[%s1199_s3 + $0xf8] sm:$0xff] %v605_v49 }

</bundles_post_ra>
